<compile_context>
chip_gen: v7x
topology: tpu7x:2x2x1
jax: 0.10.0
libtpu: 0.0.40
codegen_flags: <defaults>
</compile_context>

<pallas_src>
import functools
import math

import jax
import jax.numpy as jnp
from jax.experimental import pallas as pl
from jax.experimental.pallas import tpu as pltpu


# ------------------------------ small helpers ---------------------------------

def _round_up(v, m):
    return ((v + m - 1) // m) * m


def _row_tiles(M, cands=(1024, 512, 256, 128, 64, 32, 16, 8)):
    """Row tile + grid length.  If nothing divides M, use a cdiv grid with a masked
    tail (rows are independent in every caller) instead of one giant M-row block."""
    for c in cands:
        if M % c == 0:
            return c, M // c
    tm = min(M, 256)
    return tm, pl.cdiv(M, tm)


def _pick_chunk(L, cands=(16, 8, 4, 2)):
    for c in cands:
        if L % c == 0:
            return c
    return 1


# ------------------------- in_proj (split x / z outputs) ----------------------

def _in_proj_kernel(a_ref, wx_ref, wz_ref, ox_ref, oz_ref):
    a = a_ref[...]
    ox_ref[...] = jnp.dot(a, wx_ref[...],
                          preferred_element_type=jnp.float32).astype(ox_ref.dtype)
    oz_ref[...] = jnp.dot(a, wz_ref[...],
                          preferred_element_type=jnp.float32).astype(oz_ref.dtype)


def pallas_in_proj(x2d, w_x, w_z, out_dtype):
    """x2d @ [w_x | w_z] emitted as two separate outputs (no XLA column-slice copy)."""
    M, Dm = x2d.shape
    De = w_x.shape[1]
    tm, nblk = _row_tiles(M)
    return pl.pallas_call(
        _in_proj_kernel,
        out_shape=(jax.ShapeDtypeStruct((M, De), out_dtype),
                   jax.ShapeDtypeStruct((M, De), out_dtype)),
        grid=(nblk,),
        in_specs=[pl.BlockSpec((tm, Dm), lambda i: (i, 0)),
                  pl.BlockSpec((Dm, De), lambda i: (0, 0)),
                  pl.BlockSpec((Dm, De), lambda i: (0, 0))],
        out_specs=(pl.BlockSpec((tm, De), lambda i: (i, 0)),
                   pl.BlockSpec((tm, De), lambda i: (i, 0))),
        compiler_params=pltpu.CompilerParams(dimension_semantics=("parallel",)),
    )(x2d, w_x, w_z)


# --------------------------- depthwise conv + SiLU ----------------------------

def _dwconv_silu_kernel(x_ref, w_ref, b_ref, o_ref):
    # x_ref: (H+2p, W+2p, C) padded tile, w_ref: (k, k, C), b_ref: (1, C)
    H, W, C = o_ref.shape
    ksz = w_ref.shape[0]
    acc = jnp.zeros((H, W, C), jnp.float32)
    for dy in range(ksz):
        for dx in range(ksz):
            acc = acc + x_ref[dy:dy + H, dx:dx + W, :].astype(jnp.float32) \
                        * w_ref[dy, dx:dx + 1, :]
    acc = acc + b_ref[...]
    o_ref[...] = (acc * jax.nn.sigmoid(acc)).astype(o_ref.dtype)   # SiLU fused


def depthwise_conv_silu(x_nhwc, w, b, out_dtype):
    """Depthwise kxk conv (groups == channels) + bias + SiLU.  Grid over batch."""
    # TODO(synk): at production sizes tile over (B, row-blocks) with a halo and generate the
    # dx taps with pltpu.roll instead of whole-image blocks (v5e/v7x VMEM + core balance).
    B, H, W, C = x_nhwc.shape
    k = w.shape[0]
    pad = (k - 1) // 2
    xp = jnp.pad(x_nhwc, ((0, 0), (pad, pad), (pad, pad), (0, 0)))
    Hp, Wp = H + 2 * pad, W + 2 * pad
    return pl.pallas_call(
        _dwconv_silu_kernel,
        out_shape=jax.ShapeDtypeStruct((B, H, W, C), out_dtype),
        grid=(B,),
        in_specs=[pl.BlockSpec((None, Hp, Wp, C), lambda i: (i, 0, 0, 0)),
                  pl.BlockSpec((k, k, C), lambda i: (0, 0, 0)),
                  pl.BlockSpec((1, C), lambda i: (0, 0))],
        out_specs=pl.BlockSpec((None, H, W, C), lambda i: (i, 0, 0, 0)),
        compiler_params=pltpu.CompilerParams(dimension_semantics=("parallel",)),
    )(xp, w, b.reshape(1, C))


# -------------------- fused x_proj(+dt_proj) / selective scan -----------------

def _es2d_scan_kernel(xs_ref, wx_ref, A_ref, Dv_ref, bias_ref, o_ref,
                      delta_s, b_s, c_s, *, SD, SB, TC):
    # Per (direction k, batch b):
    #   xs_ref : (L, D)          wx_ref : (D, SD+SB+N)  columns [delta_pre | B | C], padded
    #   A_ref  : (N, D)          Dv_ref, bias_ref : (1, D)
    #   o_ref  : (L, D)          delta_s : (L, D) f32   b_s, c_s : (L, N) f32
    L, D = xs_ref.shape
    N = A_ref.shape[0]

    u = xs_ref[...]                                                     # (L, D)
    # Single concatenated projection (dt_proj folded in); lane-aligned column segments.
    proj = jnp.dot(u, wx_ref[...], preferred_element_type=jnp.float32)  # (L, SD+SB+N)

    delta_s[...] = jax.nn.softplus(proj[:, :D] + bias_ref[...])         # (L, D)
    b_s[...] = proj[:, SD:SD + N]                                       # (L, N)
    c_s[...] = proj[:, SD + SB:SD + SB + N]                             # (L, N)

    A = A_ref[...]                                                      # (N, D) f32
    Dv = Dv_ref[...]                                                    # (1, D) f32

    def chunk_body(c, h):
        t0 = pl.multiple_of(c * TC, TC)
        dt_c = delta_s[pl.ds(t0, TC), :]                                # (TC, D)
        u_c = xs_ref[pl.ds(t0, TC), :].astype(jnp.float32)              # (TC, D)
        b_c = b_s[pl.ds(t0, TC), :]                                     # (TC, N)
        c_c = c_s[pl.ds(t0, TC), :]                                     # (TC, N)
        # Batched, off-critical-path work for the whole chunk (EUP exps + VPU dBu).
        dA_c = jnp.exp(dt_c[:, None, :] * A[None, :, :])                # (TC, N, D)
        dBu_c = b_c[:, :, None] * (dt_c * u_c)[:, None, :]              # (TC, N, D)
        # Serial recurrence: only the cheap h update is on the critical path.
        hs = []
        for t in range(TC):
            h = dA_c[t] * h + dBu_c[t]                                  # (N, D)
            hs.append(h)
        h_stack = jnp.stack(hs, axis=0)                                 # (TC, N, D)
        # Batched readout (VPU mul + sublane reduce) + skip, one dense store per chunk.
        y_c = jnp.sum(c_c[:, :, None] * h_stack, axis=1) + Dv * u_c     # (TC, D)
        o_ref[pl.ds(t0, TC), :] = y_c.astype(o_ref.dtype)
        return h

    jax.lax.fori_loop(0, L // TC, chunk_body, jnp.zeros((N, D), jnp.float32))


def es2d_selective_scan(xs_t, wx_all, A_t, Ds_k, bias_k, *, SD, SB, out_dtype):
    """Fused x_proj(+dt_proj)/selective-scan.  xs_t: (B, K, L, D) -> (B, K, L, D)."""
    B, K, L, D = xs_t.shape
    N = A_t.shape[1]
    C_tot = wx_all.shape[2]
    TC = _pick_chunk(L)
    kern = functools.partial(_es2d_scan_kernel, SD=SD, SB=SB, TC=TC)
    return pl.pallas_call(
        kern,
        out_shape=jax.ShapeDtypeStruct((B, K, L, D), out_dtype),
        grid=(K, B),   # k outermost -> per-direction weights DMA'd once, revisit-skipped over b
        in_specs=[
            pl.BlockSpec((None, None, L, D), lambda k, b: (b, k, 0, 0)),   # xs, per batch
            pl.BlockSpec((None, D, C_tot), lambda k, b: (k, 0, 0)),        # [delta|B|C] weights
            pl.BlockSpec((None, N, D), lambda k, b: (k, 0, 0)),            # A = -exp(A_logs)
            pl.BlockSpec((None, 1, D), lambda k, b: (k, 0, 0)),            # Ds
            pl.BlockSpec((None, 1, D), lambda k, b: (k, 0, 0)),            # dt_projs_bias
        ],
        out_specs=pl.BlockSpec((None, None, L, D), lambda k, b: (b, k, 0, 0)),
        scratch_shapes=[pltpu.VMEM((L, D), jnp.float32),    # delta
                        pltpu.VMEM((L, N), jnp.float32),    # B
                        pltpu.VMEM((L, N), jnp.float32)],   # C
        compiler_params=pltpu.CompilerParams(
            dimension_semantics=("parallel", "parallel")),   # K*B grid points for megacore
    )(xs_t, wx_all, A_t, Ds_k, bias_k)


# --------------- fused tail: LayerNorm + y*SiLU(z) gate + out_proj ------------

def _ln_gate_proj_kernel(y_ref, z_ref, g_ref, b_ref, w_ref, o_ref):
    y = y_ref[...].astype(jnp.float32)
    mu = jnp.mean(y, axis=-1, keepdims=True)
    yc = y - mu
    var = jnp.mean(yc * yc, axis=-1, keepdims=True)
    yn = yc * jax.lax.rsqrt(var + 1e-5) * g_ref[...] + b_ref[...]   # nn.LayerNorm default eps
    z = z_ref[...].astype(jnp.float32)
    gated = yn * (z * jax.nn.sigmoid(z))                            # y * SiLU(z)
    o_ref[...] = jnp.dot(gated.astype(w_ref.dtype), w_ref[...],
                         preferred_element_type=jnp.float32).astype(o_ref.dtype)


def pallas_ln_gate_proj(y2d, z2d, gamma, beta, w_out):
    M, D = y2d.shape
    Dm = w_out.shape[1]
    tm, nblk = _row_tiles(M)
    return pl.pallas_call(
        _ln_gate_proj_kernel,
        out_shape=jax.ShapeDtypeStruct((M, Dm), jnp.float32),
        grid=(nblk,),
        in_specs=[pl.BlockSpec((tm, D), lambda i: (i, 0)),
                  pl.BlockSpec((tm, D), lambda i: (i, 0)),
                  pl.BlockSpec((1, D), lambda i: (0, 0)),
                  pl.BlockSpec((1, D), lambda i: (0, 0)),
                  pl.BlockSpec((D, Dm), lambda i: (0, 0))],
        out_specs=pl.BlockSpec((tm, Dm), lambda i: (i, 0)),
        compiler_params=pltpu.CompilerParams(dimension_semantics=("parallel",)),
    )(y2d, z2d, gamma.reshape(1, D), beta.reshape(1, D), w_out)


# ------------------- pure-layout glue (EfficientScan/Merge) -------------------
# Channels-last versions used by the Pallas forward (no NCHW feature-map transposes).

def efficient_scan_nhwc(x, step=2):
    """x: (B, H, W, C) -> xs: (B, 4, L, C) with L = (H/step)*(W/step)."""
    B, H, W, C = x.shape
    Hs, Ws = H // step, W // step
    L = Hs * Ws
    x_t = jnp.transpose(x, (0, 2, 1, 3))                       # (B, W, H, C)
    return jnp.stack([
        x[:, ::step, ::step, :].reshape(B, L, C),
        x_t[:, ::step, 1::step, :].reshape(B, L, C),
        x[:, ::step, 1::step, :].reshape(B, L, C),
        x_t[:, 1::step, 1::step, :].reshape(B, L, C),
    ], axis=1)


def efficient_merge_nhwc(ys, H, W, step=2):
    """ys: (B, 4, L, C) -> (B, H, W, C)."""
    B, K, L, C = ys.shape
    Hs, Ws = H // step, W // step
    y = jnp.zeros((B, H, W, C), ys.dtype)
    y = y.at[:, ::step, ::step, :].set(ys[:, 0].reshape(B, Hs, Ws, C))
    y = y.at[:, 1::step, ::step, :].set(
        jnp.transpose(ys[:, 1].reshape(B, Ws, Hs, C), (0, 2, 1, 3)))
    y = y.at[:, ::step, 1::step, :].set(ys[:, 2].reshape(B, Hs, Ws, C))
    y = y.at[:, 1::step, 1::step, :].set(
        jnp.transpose(ys[:, 3].reshape(B, Ws, Hs, C), (0, 2, 1, 3)))
    return y


# NCHW versions (kept only for the independent pure-JAX reference below).

def efficient_scan_nchw(x_chw, step=2):
    B, C, H, W = x_chw.shape
    x_wh = jnp.transpose(x_chw, (0, 1, 3, 2))
    L = (H // step) * (W // step)
    return jnp.stack([
        x_chw[:, :, ::step, ::step].reshape(B, C, L),
        x_wh[:, :, ::step, 1::step].reshape(B, C, L),
        x_chw[:, :, ::step, 1::step].reshape(B, C, L),
        x_wh[:, :, 1::step, 1::step].reshape(B, C, L),
    ], axis=1)


def efficient_merge_nchw(ys, H, W, step=2):
    B, K, C, L = ys.shape
    Hs, Ws = H // step, W // step
    y = jnp.zeros((B, C, H, W), ys.dtype)
    y = y.at[:, :, ::step, ::step].set(ys[:, 0].reshape(B, C, Hs, Ws))
    y = y.at[:, :, 1::step, ::step].set(
        jnp.transpose(ys[:, 1].reshape(B, C, Ws, Hs), (0, 1, 3, 2)))
    y = y.at[:, :, ::step, 1::step].set(ys[:, 2].reshape(B, C, Hs, Ws))
    y = y.at[:, :, 1::step, 1::step].set(
        jnp.transpose(ys[:, 3].reshape(B, C, Ws, Hs), (0, 1, 3, 2)))
    return y.reshape(B, C, H * W)


# ----------------------------- parameters & forward ---------------------------

def es2d_init_params(key, d_model=32, d_state=16, ssm_ratio=2.0, ssm_rank_ratio=2.0,
                     d_conv=3, dt_min=0.001, dt_max=0.1, dt_init_floor=1e-4):
    d_expand = int(ssm_ratio * d_model)
    d_inner = int(min(ssm_rank_ratio, ssm_ratio) * d_model)
    assert d_inner == d_expand  # low-rank (in_rank/out_rank) path not taken, as in defaults
    dt_rank = math.ceil(d_model / 16)
    K = 4
    ks = jax.random.split(key, 7)
    w_in = jax.random.normal(ks[0], (d_model, 2 * d_expand), jnp.float32) * d_model ** -0.5
    w_conv = jax.random.normal(ks[1], (d_conv, d_conv, d_expand), jnp.float32) * 0.1
    b_conv = jax.random.normal(ks[2], (d_expand,), jnp.float32) * 0.1
    x_proj_weight = (jax.random.normal(ks[3], (K, dt_rank + 2 * d_state, d_inner),
                                       jnp.float32) * d_inner ** -0.5)
    dt_init_std = dt_rank ** -0.5
    dt_projs_weight = jax.random.uniform(
        ks[4], (K, d_inner, dt_rank), jnp.float32, -dt_init_std, dt_init_std)
    dt = jnp.exp(jax.random.uniform(ks[5], (K, d_inner), jnp.float32)
                 * (math.log(dt_max) - math.log(dt_min)) + math.log(dt_min))
    dt = jnp.maximum(dt, dt_init_floor)
    dt_projs_bias = dt + jnp.log(-jnp.expm1(-dt))         # inverse-softplus init
    A_logs = jnp.log(jnp.tile(jnp.arange(1, d_state + 1, dtype=jnp.float32)[None, :],
                              (K * d_inner, 1)))
    Ds = jnp.ones((K * d_inner,), jnp.float32)
    ln_gamma = jnp.ones((d_inner,), jnp.float32)
    ln_beta = jnp.zeros((d_inner,), jnp.float32)
    w_out = jax.random.normal(ks[6], (d_expand, d_model), jnp.float32) * d_expand ** -0.5
    return dict(w_in=w_in, w_conv=w_conv, b_conv=b_conv, x_proj_weight=x_proj_weight,
                dt_projs_weight=dt_projs_weight, dt_projs_bias=dt_projs_bias,
                A_logs=A_logs, Ds=Ds, ln_gamma=ln_gamma, ln_beta=ln_beta, w_out=w_out)


def es2d_forward(x, p, step=2, compute_dtype=jnp.float32):
    """compute_dtype controls MXU matmul inputs + HBM intermediates (bf16 for v6e/v7x).
    SSM state, softplus/exp and LayerNorm statistics stay f32 regardless."""
    B, H, W, d_model = x.shape
    De = p["w_in"].shape[1] // 2
    D = De                                               # d_inner == d_expand (default ratios)
    K = p["x_proj_weight"].shape[0]
    N = p["A_logs"].shape[1]
    R = p["dt_projs_weight"].shape[2]
    assert H % step == 0 and W % step == 0
    M = B * H * W
    cd = compute_dtype

    # in_proj, x/z as two separate Pallas outputs (no XLA column-slice copy of xz).
    x_part, z_part = pallas_in_proj(
        x.reshape(M, d_model).astype(cd),
        p["w_in"][:, :De].astype(cd), p["w_in"][:, De:].astype(cd), out_dtype=cd)

    # depthwise 3x3 conv + SiLU (Pallas)
    xc = depthwise_conv_silu(x_part.reshape(B, H, W, De), p["w_conv"], p["b_conv"],
                             out_dtype=cd)

    # EfficientScan, channels-last (pure layout)
    # TODO(synk): fuse this layout pass into the dwconv output stage to drop its HBM traffic.
    xs_t = efficient_scan_nhwc(xc, step)                        # (B, K, L, D)

    # Per-direction weights: fold dt_proj into x_proj (Wdelta = Wx_dt @ Wdt^T, rank R) and
    # lane-align the [delta | B | C] column segments to 128 boundaries (zero pad).
    wx_t = jnp.transpose(p["x_proj_weight"], (0, 2, 1))         # (K, D, R+2N), cols [dt|B|C]
    wdt_t = jnp.transpose(p["dt_projs_weight"], (0, 2, 1))      # (K, R, D)
    w_delta = jnp.einsum("kdr,kre->kde", wx_t[:, :, :R], wdt_t)  # (K, D, D)
    SD = _round_up(D, 128)
    SB = _round_up(N, 128)
    wx_all = jnp.zeros((K, D, SD + SB + N), jnp.float32)
    wx_all = wx_all.at[:, :, :D].set(w_delta)
    wx_all = wx_all.at[:, :, SD:SD + N].set(wx_t[:, :, R:R + N])
    wx_all = wx_all.at[:, :, SD + SB:].set(wx_t[:, :, R + N:])

    A_t = jnp.transpose((-jnp.exp(p["A_logs"])).reshape(K, D, N), (0, 2, 1))   # (K, N, D)
    Ds_k = p["Ds"].reshape(K, 1, D)
    bias_k = p["dt_projs_bias"].reshape(K, 1, D)

    # fused x_proj(+dt_proj) / selective scan (Pallas, grid over (K, B))
    ys_t = es2d_selective_scan(xs_t, wx_all.astype(cd), A_t, Ds_k, bias_k,
                               SD=SD, SB=SB, out_dtype=cd)      # (B, K, L, D)

    # EfficientMerge, channels-last (pure layout) -> (M, D)
    y = efficient_merge_nhwc(ys_t, H, W, step).reshape(M, D)

    # fused out_norm LayerNorm + y*SiLU(z) gate + out_proj (one Pallas kernel)
    out = pallas_ln_gate_proj(y, z_part, p["ln_gamma"], p["ln_beta"], p["w_out"].astype(cd))
    # TODO(synk): nn.Dropout(p=0.0) is Identity; custom autograd backwards not implemented.
    return out.reshape(B, H, W, d_model)


# ----------------------------- pure-JAX reference -----------------------------

def reference_es2d(x, p, step=2):
    hi = jax.lax.Precision.HIGHEST
    B, H, W, d_model = x.shape
    d_expand = p["w_in"].shape[1] // 2
    d_inner = d_expand
    K = p["x_proj_weight"].shape[0]
    N = p["A_logs"].shape[1]
    R = p["dt_projs_weight"].shape[2]

    xz = jnp.dot(x.reshape(-1, d_model), p["w_in"], precision=hi)
    x_part = xz[:, :d_expand].reshape(B, H, W, d_expand)
    z = xz[:, d_expand:].reshape(B, H, W, d_expand)
    z = z * jax.nn.sigmoid(z)

    xp = jnp.pad(x_part, ((0, 0), (1, 1), (1, 1), (0, 0)))
    acc = jnp.zeros_like(x_part)
    for dy in range(3):
        for dx in range(3):
            acc = acc + xp[:, dy:dy + H, dx:dx + W, :] * p["w_conv"][dy, dx]
    acc = acc + p["b_conv"]
    xc = acc * jax.nn.sigmoid(acc)

    xs = efficient_scan_nchw(jnp.transpose(xc, (0, 3, 1, 2)), step)   # (B, K, D, L)
    x_dbl = jnp.einsum("bkdl,kcd->bkcl", xs, p["x_proj_weight"], precision=hi)
    dt_low, Bs, Cs = x_dbl[:, :, :R], x_dbl[:, :, R:R + N], x_dbl[:, :, R + N:]
    dts = jnp.einsum("bkrl,kdr->bkdl", dt_low, p["dt_projs_weight"], precision=hi)
    delta = jax.nn.softplus(dts + p["dt_projs_bias"][None, :, :, None])
    A4 = (-jnp.exp(p["A_logs"])).reshape(K, d_inner, N)
    D4 = p["Ds"].reshape(K, d_inner)

    dA = jnp.exp(delta[..., None] * A4[None, :, :, None, :])                 # (B,K,D,L,N)
    dBu = (delta * xs)[..., None] * jnp.transpose(Bs, (0, 1, 3, 2))[:, :, None, :, :]
    Ct = jnp.transpose(Cs, (0, 1, 3, 2))                                     # (B,K,L,N)

    def stepf(h, inp):
        a_t, bu_t, c_t = inp
        h = a_t * h + bu_t
        y_t = jnp.einsum("bkdn,bkn->bkd", h, c_t, precision=hi)
        return h, y_t

    h0 = jnp.zeros((x.shape[0], K, d_inner, N), jnp.float32)
    _, y_l = jax.lax.scan(stepf, h0, (jnp.moveaxis(dA, 3, 0),
                                      jnp.moveaxis(dBu, 3, 0),
                                      jnp.moveaxis(Ct, 2, 0)))
    ys = jnp.moveaxis(y_l, 0, 3) + xs * D4[None, :, :, None]                 # (B,K,D,L)

    y = efficient_merge_nchw(ys, H, W, step)
    y = jnp.transpose(y, (0, 2, 1)).reshape(-1, d_inner)
    mu = jnp.mean(y, axis=-1, keepdims=True)
    var = jnp.mean((y - mu) ** 2, axis=-1, keepdims=True)
    y = (y - mu) * jax.lax.rsqrt(var + 1e-5) * p["ln_gamma"] + p["ln_beta"]
    y = y * z.reshape(-1, d_expand)
    out = jnp.dot(y, p["w_out"], precision=hi)
    return out.reshape(B, H, W, d_model)


# ----------------------------------- main --------------------------------------

if __name__ == "__main__":
    key = jax.random.PRNGKey(0)
    k_param, k_x = jax.random.split(key)
    B, H, W, d_model = 2, 8, 8, 32
    params = es2d_init_params(k_param, d_model=d_model)
    x = jax.random.normal(k_x, (B, H, W, d_model), jnp.float32)

    ref = jax.block_until_ready(reference_es2d(x, params))

    # f32 MXU path: tight numeric check against the pure-JAX reference.
    fwd_f32 = jax.jit(functools.partial(es2d_forward, compute_dtype=jnp.float32))
    out_f32 = jax.block_until_ready(fwd_f32(x, params))
    assert out_f32.shape == (B, H, W, d_model), out_f32.shape
    assert bool(jnp.all(jnp.isfinite(out_f32)))
    err_f32 = float(jnp.max(jnp.abs(out_f32 - ref)))
    assert err_f32 < 3e-2, f"f32 path mismatch vs reference: max abs err = {err_f32}"

    # bf16 MXU path (v6e/v7x production setting): bf16 matmul inputs + bf16 HBM
    # intermediates, f32 SSM state / LN stats.  Looser tolerance as per review.
    fwd_bf16 = jax.jit(functools.partial(es2d_forward, compute_dtype=jnp.bfloat16))
    out_bf16 = jax.block_until_ready(fwd_bf16(x, params)).astype(jnp.float32)
    assert out_bf16.shape == (B, H, W, d_model), out_bf16.shape
    assert bool(jnp.all(jnp.isfinite(out_bf16)))
    err_bf16 = float(jnp.max(jnp.abs(out_bf16 - ref)))
    assert err_bf16 < 2e-1, f"bf16 path mismatch vs reference: max abs err = {err_bf16}"

    print("KERNEL_OK")
</pallas_src>

<mosaic_0001>
module attributes {stable_mosaic.version = 11 : i64} {
  func.func @_in_proj_kernel(%arg0: i32, %arg1: memref<128x32xf32, #tpu.memory_space<vmem>>, %arg2: memref<32x64xf32, #tpu.memory_space<vmem>>, %arg3: memref<32x64xf32, #tpu.memory_space<vmem>>, %arg4: memref<128x64xf32, #tpu.memory_space<vmem>>, %arg5: memref<128x64xf32, #tpu.memory_space<vmem>>) attributes {dimension_semantics = [#tpu.dimension_semantics<parallel>], iteration_bounds = array<i64: 1>, scalar_prefetch = 0 : i64, scratch_operands = 0 : i64, tpu.core_type = #tpu.core_type<tc>, window_params = [{transform_indices = @transform_0, window_bounds = array<i64: 128, 32>}, {pipeline_mode = #tpu.pipeline_mode<synchronous>, transform_indices = @transform_1, window_bounds = array<i64: 32, 64>}, {pipeline_mode = #tpu.pipeline_mode<synchronous>, transform_indices = @transform_2, window_bounds = array<i64: 32, 64>}, {transform_indices = @transform_3, window_bounds = array<i64: 128, 64>}, {transform_indices = @transform_4, window_bounds = array<i64: 128, 64>}]} {
    %c0 = arith.constant 0 : index
    %c0_0 = arith.constant 0 : index
    %0 = vector.load %arg1[%c0, %c0_0] : memref<128x32xf32, #tpu.memory_space<vmem>>, vector<128x32xf32>
    %c0_1 = arith.constant 0 : index
    %c0_2 = arith.constant 0 : index
    %1 = vector.load %arg2[%c0_1, %c0_2] : memref<32x64xf32, #tpu.memory_space<vmem>>, vector<32x64xf32>
    %cst = arith.constant dense<0.000000e+00> : vector<128x64xf32>
    %2 = tpu.matmul %0, %1, %cst {dimension_numbers = #tpu.dot_dimension_numbers<[1], [0], [0], [1], [0, 0, 1, 1], [], []>} : vector<128x32xf32>, vector<32x64xf32>, vector<128x64xf32> -> vector<128x64xf32>
    %c0_3 = arith.constant 0 : index
    %c0_4 = arith.constant 0 : index
    %3 = vector.load %arg4[%c0_3, %c0_4] : memref<128x64xf32, #tpu.memory_space<vmem>>, vector<128x64xf32>
    tpu.vector_store %arg4[%c0_3, %c0_4], %2 {strides = array<i32>} : memref<128x64xf32, #tpu.memory_space<vmem>>, vector<128x64xf32>,
    %c0_5 = arith.constant 0 : index
    %c0_6 = arith.constant 0 : index
    %4 = vector.load %arg3[%c0_5, %c0_6] : memref<32x64xf32, #tpu.memory_space<vmem>>, vector<32x64xf32>
    %cst_7 = arith.constant dense<0.000000e+00> : vector<128x64xf32>
    %5 = tpu.matmul %0, %4, %cst_7 {dimension_numbers = #tpu.dot_dimension_numbers<[1], [0], [0], [1], [0, 0, 1, 1], [], []>} : vector<128x32xf32>, vector<32x64xf32>, vector<128x64xf32> -> vector<128x64xf32>
    %c0_8 = arith.constant 0 : index
    %c0_9 = arith.constant 0 : index
    %6 = vector.load %arg5[%c0_8, %c0_9] : memref<128x64xf32, #tpu.memory_space<vmem>>, vector<128x64xf32>
    tpu.vector_store %arg5[%c0_8, %c0_9], %5 {strides = array<i32>} : memref<128x64xf32, #tpu.memory_space<vmem>>, vector<128x64xf32>,
    return
  }
  func.func @transform_0(%arg0: i32) -> (i32, i32) {
    %c0_i32 = arith.constant 0 : i32
    %c0_i32_0 = arith.constant 0 : i32
    return %arg0, %c0_i32 : i32, i32
  }
  func.func @transform_1(%arg0: i32) -> (i32, i32) {
    %c0_i32 = arith.constant 0 : i32
    %c0_i32_0 = arith.constant 0 : i32
    %c0_i32_1 = arith.constant 0 : i32
    return %c0_i32, %c0_i32_0 : i32, i32
  }
  func.func @transform_2(%arg0: i32) -> (i32, i32) {
    %c0_i32 = arith.constant 0 : i32
    %c0_i32_0 = arith.constant 0 : i32
    %c0_i32_1 = arith.constant 0 : i32
    return %c0_i32, %c0_i32_0 : i32, i32
  }
  func.func @transform_3(%arg0: i32) -> (i32, i32) {
    %c0_i32 = arith.constant 0 : i32
    %c0_i32_0 = arith.constant 0 : i32
    return %arg0, %c0_i32 : i32, i32
  }
  func.func @transform_4(%arg0: i32) -> (i32, i32) {
    %c0_i32 = arith.constant 0 : i32
    %c0_i32_0 = arith.constant 0 : i32
    return %arg0, %c0_i32 : i32, i32
  }
}

module attributes {stable_mosaic.version = 11 : i64} {
  func.func @_dwconv_silu_kernel(%arg0: i32, %arg1: memref<1x10x10x64xf32, #tpu.memory_space<vmem>>, %arg2: memref<3x3x64xf32, #tpu.memory_space<vmem>>, %arg3: memref<1x64xf32, #tpu.memory_space<vmem>>, %arg4: memref<1x8x8x64xf32, #tpu.memory_space<vmem>>) attributes {dimension_semantics = [#tpu.dimension_semantics<parallel>], iteration_bounds = array<i64: 2>, scalar_prefetch = 0 : i64, scratch_operands = 0 : i64, tpu.core_type = #tpu.core_type<tc>, window_params = [{transform_indices = @transform_0, window_bounds = array<i64: 1, 10, 10, 64>}, {pipeline_mode = #tpu.pipeline_mode<synchronous>, transform_indices = @transform_1, window_bounds = array<i64: 3, 3, 64>}, {pipeline_mode = #tpu.pipeline_mode<synchronous>, transform_indices = @transform_2, window_bounds = array<i64: 1, 64>}, {transform_indices = @transform_3, window_bounds = array<i64: 1, 8, 8, 64>}]} {
    %cst = arith.constant 0.000000e+00 : f32
    %0 = vector.broadcast %cst : f32 to vector<8x8x64xf32>
    %c0 = arith.constant 0 : index
    %c0_0 = arith.constant 0 : index
    %c0_1 = arith.constant 0 : index
    %c0_2 = arith.constant 0 : index
    %1 = vector.load %arg1[%c0, %c0_0, %c0_1, %c0_2] : memref<1x10x10x64xf32, #tpu.memory_space<vmem>>, vector<1x8x8x64xf32>
    %2 = vector.shape_cast %1 : vector<1x8x8x64xf32> to vector<8x8x64xf32>
    %c0_3 = arith.constant 0 : index
    %c0_4 = arith.constant 0 : index
    %c0_5 = arith.constant 0 : index
    %3 = vector.load %arg2[%c0_3, %c0_4, %c0_5] : memref<3x3x64xf32, #tpu.memory_space<vmem>>, vector<1x1x64xf32>
    %4 = vector.shape_cast %3 : vector<1x1x64xf32> to vector<1x64xf32>
    %5 = vector.shape_cast %4 : vector<1x64xf32> to vector<1x1x64xf32>
    %6 = vector.broadcast %5 : vector<1x1x64xf32> to vector<8x8x64xf32>
    %7 = arith.mulf %2, %6 : vector<8x8x64xf32>
    %8 = arith.addf %0, %7 : vector<8x8x64xf32>
    %c0_6 = arith.constant 0 : index
    %c0_7 = arith.constant 0 : index
    %c1 = arith.constant 1 : index
    %c0_8 = arith.constant 0 : index
    %9 = vector.load %arg1[%c0_6, %c0_7, %c1, %c0_8] : memref<1x10x10x64xf32, #tpu.memory_space<vmem>>, vector<1x8x8x64xf32>
    %10 = vector.shape_cast %9 : vector<1x8x8x64xf32> to vector<8x8x64xf32>
    %c0_9 = arith.constant 0 : index
    %c1_10 = arith.constant 1 : index
    %c0_11 = arith.constant 0 : index
    %11 = vector.load %arg2[%c0_9, %c1_10, %c0_11] : memref<3x3x64xf32, #tpu.memory_space<vmem>>, vector<1x1x64xf32>
    %12 = vector.shape_cast %11 : vector<1x1x64xf32> to vector<1x64xf32>
    %13 = vector.shape_cast %12 : vector<1x64xf32> to vector<1x1x64xf32>
    %14 = vector.broadcast %13 : vector<1x1x64xf32> to vector<8x8x64xf32>
    %15 = arith.mulf %10, %14 : vector<8x8x64xf32>
    %16 = arith.addf %8, %15 : vector<8x8x64xf32>
    %c0_12 = arith.constant 0 : index
    %c0_13 = arith.constant 0 : index
    %c2 = arith.constant 2 : index
    %c0_14 = arith.constant 0 : index
    %17 = vector.load %arg1[%c0_12, %c0_13, %c2, %c0_14] : memref<1x10x10x64xf32, #tpu.memory_space<vmem>>, vector<1x8x8x64xf32>
    %18 = vector.shape_cast %17 : vector<1x8x8x64xf32> to vector<8x8x64xf32>
    %c0_15 = arith.constant 0 : index
    %c2_16 = arith.constant 2 : index
    %c0_17 = arith.constant 0 : index
    %19 = vector.load %arg2[%c0_15, %c2_16, %c0_17] : memref<3x3x64xf32, #tpu.memory_space<vmem>>, vector<1x1x64xf32>
    %20 = vector.shape_cast %19 : vector<1x1x64xf32> to vector<1x64xf32>
    %21 = vector.shape_cast %20 : vector<1x64xf32> to vector<1x1x64xf32>
    %22 = vector.broadcast %21 : vector<1x1x64xf32> to vector<8x8x64xf32>
    %23 = arith.mulf %18, %22 : vector<8x8x64xf32>
    %24 = arith.addf %16, %23 : vector<8x8x64xf32>
    %c0_18 = arith.constant 0 : index
    %c1_19 = arith.constant 1 : index
    %c0_20 = arith.constant 0 : index
    %c0_21 = arith.constant 0 : index
    %25 = vector.load %arg1[%c0_18, %c1_19, %c0_20, %c0_21] : memref<1x10x10x64xf32, #tpu.memory_space<vmem>>, vector<1x8x8x64xf32>
    %26 = vector.shape_cast %25 : vector<1x8x8x64xf32> to vector<8x8x64xf32>
    %c1_22 = arith.constant 1 : index
    %c0_23 = arith.constant 0 : index
    %c0_24 = arith.constant 0 : index
    %27 = vector.load %arg2[%c1_22, %c0_23, %c0_24] : memref<3x3x64xf32, #tpu.memory_space<vmem>>, vector<1x1x64xf32>
    %28 = vector.shape_cast %27 : vector<1x1x64xf32> to vector<1x64xf32>
    %29 = vector.shape_cast %28 : vector<1x64xf32> to vector<1x1x64xf32>
    %30 = vector.broadcast %29 : vector<1x1x64xf32> to vector<8x8x64xf32>
    %31 = arith.mulf %26, %30 : vector<8x8x64xf32>
    %32 = arith.addf %24, %31 : vector<8x8x64xf32>
    %c0_25 = arith.constant 0 : index
    %c1_26 = arith.constant 1 : index
    %c1_27 = arith.constant 1 : index
    %c0_28 = arith.constant 0 : index
    %33 = vector.load %arg1[%c0_25, %c1_26, %c1_27, %c0_28] : memref<1x10x10x64xf32, #tpu.memory_space<vmem>>, vector<1x8x8x64xf32>
    %34 = vector.shape_cast %33 : vector<1x8x8x64xf32> to vector<8x8x64xf32>
    %c1_29 = arith.constant 1 : index
    %c1_30 = arith.constant 1 : index
    %c0_31 = arith.constant 0 : index
    %35 = vector.load %arg2[%c1_29, %c1_30, %c0_31] : memref<3x3x64xf32, #tpu.memory_space<vmem>>, vector<1x1x64xf32>
    %36 = vector.shape_cast %35 : vector<1x1x64xf32> to vector<1x64xf32>
    %37 = vector.shape_cast %36 : vector<1x64xf32> to vector<1x1x64xf32>
    %38 = vector.broadcast %37 : vector<1x1x64xf32> to vector<8x8x64xf32>
    %39 = arith.mulf %34, %38 : vector<8x8x64xf32>
    %40 = arith.addf %32, %39 : vector<8x8x64xf32>
    %c0_32 = arith.constant 0 : index
    %c1_33 = arith.constant 1 : index
    %c2_34 = arith.constant 2 : index
    %c0_35 = arith.constant 0 : index
    %41 = vector.load %arg1[%c0_32, %c1_33, %c2_34, %c0_35] : memref<1x10x10x64xf32, #tpu.memory_space<vmem>>, vector<1x8x8x64xf32>
    %42 = vector.shape_cast %41 : vector<1x8x8x64xf32> to vector<8x8x64xf32>
    %c1_36 = arith.constant 1 : index
    %c2_37 = arith.constant 2 : index
    %c0_38 = arith.constant 0 : index
    %43 = vector.load %arg2[%c1_36, %c2_37, %c0_38] : memref<3x3x64xf32, #tpu.memory_space<vmem>>, vector<1x1x64xf32>
    %44 = vector.shape_cast %43 : vector<1x1x64xf32> to vector<1x64xf32>
    %45 = vector.shape_cast %44 : vector<1x64xf32> to vector<1x1x64xf32>
    %46 = vector.broadcast %45 : vector<1x1x64xf32> to vector<8x8x64xf32>
    %47 = arith.mulf %42, %46 : vector<8x8x64xf32>
    %48 = arith.addf %40, %47 : vector<8x8x64xf32>
    %c0_39 = arith.constant 0 : index
    %c2_40 = arith.constant 2 : index
    %c0_41 = arith.constant 0 : index
    %c0_42 = arith.constant 0 : index
    %49 = vector.load %arg1[%c0_39, %c2_40, %c0_41, %c0_42] : memref<1x10x10x64xf32, #tpu.memory_space<vmem>>, vector<1x8x8x64xf32>
    %50 = vector.shape_cast %49 : vector<1x8x8x64xf32> to vector<8x8x64xf32>
    %c2_43 = arith.constant 2 : index
    %c0_44 = arith.constant 0 : index
    %c0_45 = arith.constant 0 : index
    %51 = vector.load %arg2[%c2_43, %c0_44, %c0_45] : memref<3x3x64xf32, #tpu.memory_space<vmem>>, vector<1x1x64xf32>
    %52 = vector.shape_cast %51 : vector<1x1x64xf32> to vector<1x64xf32>
    %53 = vector.shape_cast %52 : vector<1x64xf32> to vector<1x1x64xf32>
    %54 = vector.broadcast %53 : vector<1x1x64xf32> to vector<8x8x64xf32>
    %55 = arith.mulf %50, %54 : vector<8x8x64xf32>
    %56 = arith.addf %48, %55 : vector<8x8x64xf32>
    %c0_46 = arith.constant 0 : index
    %c2_47 = arith.constant 2 : index
    %c1_48 = arith.constant 1 : index
    %c0_49 = arith.constant 0 : index
    %57 = vector.load %arg1[%c0_46, %c2_47, %c1_48, %c0_49] : memref<1x10x10x64xf32, #tpu.memory_space<vmem>>, vector<1x8x8x64xf32>
    %58 = vector.shape_cast %57 : vector<1x8x8x64xf32> to vector<8x8x64xf32>
    %c2_50 = arith.constant 2 : index
    %c1_51 = arith.constant 1 : index
    %c0_52 = arith.constant 0 : index
    %59 = vector.load %arg2[%c2_50, %c1_51, %c0_52] : memref<3x3x64xf32, #tpu.memory_space<vmem>>, vector<1x1x64xf32>
    %60 = vector.shape_cast %59 : vector<1x1x64xf32> to vector<1x64xf32>
    %61 = vector.shape_cast %60 : vector<1x64xf32> to vector<1x1x64xf32>
    %62 = vector.broadcast %61 : vector<1x1x64xf32> to vector<8x8x64xf32>
    %63 = arith.mulf %58, %62 : vector<8x8x64xf32>
    %64 = arith.addf %56, %63 : vector<8x8x64xf32>
    %c0_53 = arith.constant 0 : index
    %c2_54 = arith.constant 2 : index
    %c2_55 = arith.constant 2 : index
    %c0_56 = arith.constant 0 : index
    %65 = vector.load %arg1[%c0_53, %c2_54, %c2_55, %c0_56] : memref<1x10x10x64xf32, #tpu.memory_space<vmem>>, vector<1x8x8x64xf32>
    %66 = vector.shape_cast %65 : vector<1x8x8x64xf32> to vector<8x8x64xf32>
    %c2_57 = arith.constant 2 : index
    %c2_58 = arith.constant 2 : index
    %c0_59 = arith.constant 0 : index
    %67 = vector.load %arg2[%c2_57, %c2_58, %c0_59] : memref<3x3x64xf32, #tpu.memory_space<vmem>>, vector<1x1x64xf32>
    %68 = vector.shape_cast %67 : vector<1x1x64xf32> to vector<1x64xf32>
    %69 = vector.shape_cast %68 : vector<1x64xf32> to vector<1x1x64xf32>
    %70 = vector.broadcast %69 : vector<1x1x64xf32> to vector<8x8x64xf32>
    %71 = arith.mulf %66, %70 : vector<8x8x64xf32>
    %72 = arith.addf %64, %71 : vector<8x8x64xf32>
    %c0_60 = arith.constant 0 : index
    %c0_61 = arith.constant 0 : index
    %73 = vector.load %arg3[%c0_60, %c0_61] : memref<1x64xf32, #tpu.memory_space<vmem>>, vector<1x64xf32>
    %74 = vector.shape_cast %73 : vector<1x64xf32> to vector<1x1x64xf32>
    %75 = vector.broadcast %74 : vector<1x1x64xf32> to vector<8x8x64xf32>
    %76 = arith.addf %72, %75 : vector<8x8x64xf32>
    %77 = arith.negf %76 : vector<8x8x64xf32>
    %78 = math.exp %77 : vector<8x8x64xf32>
    %cst_62 = arith.constant 1.000000e+00 : f32
    %79 = vector.broadcast %cst_62 : f32 to vector<8x8x64xf32>
    %80 = arith.addf %79, %78 : vector<8x8x64xf32>
    %81 = arith.divf %79, %80 : vector<8x8x64xf32>
    %82 = arith.mulf %76, %81 : vector<8x8x64xf32>
    %c0_63 = arith.constant 0 : index
    %c0_64 = arith.constant 0 : index
    %c0_65 = arith.constant 0 : index
    %c0_66 = arith.constant 0 : index
    %83 = vector.load %arg4[%c0_63, %c0_64, %c0_65, %c0_66] : memref<1x8x8x64xf32, #tpu.memory_space<vmem>>, vector<1x8x8x64xf32>
    %84 = vector.shape_cast %83 : vector<1x8x8x64xf32> to vector<8x8x64xf32>
    %85 = vector.shape_cast %82 : vector<8x8x64xf32> to vector<1x8x8x64xf32>
    tpu.vector_store %arg4[%c0_63, %c0_64, %c0_65, %c0_66], %85 {strides = array<i32>} : memref<1x8x8x64xf32, #tpu.memory_space<vmem>>, vector<1x8x8x64xf32>,
    return
  }
  func.func @transform_0(%arg0: i32) -> (i32, i32, i32, i32) {
    %c0_i32 = arith.constant 0 : i32
    %c0_i32_0 = arith.constant 0 : i32
    %c0_i32_1 = arith.constant 0 : i32
    %c0_i32_2 = arith.constant 0 : i32
    return %arg0, %c0_i32, %c0_i32_0, %c0_i32_1 : i32, i32, i32, i32
  }
  func.func @transform_1(%arg0: i32) -> (i32, i32, i32) {
    %c0_i32 = arith.constant 0 : i32
    %c0_i32_0 = arith.constant 0 : i32
    %c0_i32_1 = arith.constant 0 : i32
    %c0_i32_2 = arith.constant 0 : i32
    return %c0_i32, %c0_i32_0, %c0_i32_1 : i32, i32, i32
  }
  func.func @transform_2(%arg0: i32) -> (i32, i32) {
    %c0_i32 = arith.constant 0 : i32
    %c0_i32_0 = arith.constant 0 : i32
    %c0_i32_1 = arith.constant 0 : i32
    return %c0_i32, %c0_i32_0 : i32, i32
  }
  func.func @transform_3(%arg0: i32) -> (i32, i32, i32, i32) {
    %c0_i32 = arith.constant 0 : i32
    %c0_i32_0 = arith.constant 0 : i32
    %c0_i32_1 = arith.constant 0 : i32
    %c0_i32_2 = arith.constant 0 : i32
    return %arg0, %c0_i32, %c0_i32_0, %c0_i32_1 : i32, i32, i32, i32
  }
}

module attributes {stable_mosaic.version = 11 : i64} {
  func.func @_es2d_scan_kernel(%arg0: i32, %arg1: i32, %arg2: memref<1x1x16x64xf32, #tpu.memory_space<vmem>>, %arg3: memref<1x64x272xf32, #tpu.memory_space<vmem>>, %arg4: memref<1x16x64xf32, #tpu.memory_space<vmem>>, %arg5: memref<1x1x64xf32, #tpu.memory_space<vmem>>, %arg6: memref<1x1x64xf32, #tpu.memory_space<vmem>>, %arg7: memref<1x1x16x64xf32, #tpu.memory_space<vmem>>, %arg8: memref<16x64xf32, #tpu.memory_space<vmem>>, %arg9: memref<16x16xf32, #tpu.memory_space<vmem>>, %arg10: memref<16x16xf32, #tpu.memory_space<vmem>>) attributes {dimension_semantics = [#tpu.dimension_semantics<parallel>, #tpu.dimension_semantics<parallel>], iteration_bounds = array<i64: 4, 2>, scalar_prefetch = 0 : i64, scratch_operands = 3 : i64, tpu.core_type = #tpu.core_type<tc>, window_params = [{transform_indices = @transform_0, window_bounds = array<i64: 1, 1, 16, 64>}, {transform_indices = @transform_1, window_bounds = array<i64: 1, 64, 272>}, {transform_indices = @transform_2, window_bounds = array<i64: 1, 16, 64>}, {transform_indices = @transform_3, window_bounds = array<i64: 1, 1, 64>}, {transform_indices = @transform_4, window_bounds = array<i64: 1, 1, 64>}, {transform_indices = @transform_5, window_bounds = array<i64: 1, 1, 16, 64>}]} {
    %c0 = arith.constant 0 : index
    %c0_0 = arith.constant 0 : index
    %c0_1 = arith.constant 0 : index
    %c0_2 = arith.constant 0 : index
    %0 = vector.load %arg2[%c0, %c0_0, %c0_1, %c0_2] : memref<1x1x16x64xf32, #tpu.memory_space<vmem>>, vector<1x1x16x64xf32>
    %1 = vector.shape_cast %0 : vector<1x1x16x64xf32> to vector<16x64xf32>
    %c0_3 = arith.constant 0 : index
    %c0_4 = arith.constant 0 : index
    %c0_5 = arith.constant 0 : index
    %2 = vector.load %arg3[%c0_3, %c0_4, %c0_5] : memref<1x64x272xf32, #tpu.memory_space<vmem>>, vector<1x64x272xf32>
    %3 = vector.shape_cast %2 : vector<1x64x272xf32> to vector<64x272xf32>
    %cst = arith.constant dense<0.000000e+00> : vector<16x272xf32>
    %4 = tpu.matmul %1, %3, %cst {dimension_numbers = #tpu.dot_dimension_numbers<[1], [0], [0], [1], [0, 0, 1, 1], [], []>} : vector<16x64xf32>, vector<64x272xf32>, vector<16x272xf32> -> vector<16x272xf32>
    %5 = vector.extract_strided_slice %4 {offsets = [0, 0], sizes = [16, 64], strides = [1, 1]} : vector<16x272xf32> to vector<16x64xf32>
    %c0_6 = arith.constant 0 : index
    %c0_7 = arith.constant 0 : index
    %c0_8 = arith.constant 0 : index
    %6 = vector.load %arg6[%c0_6, %c0_7, %c0_8] : memref<1x1x64xf32, #tpu.memory_space<vmem>>, vector<1x1x64xf32>
    %7 = vector.shape_cast %6 : vector<1x1x64xf32> to vector<1x64xf32>
    %8 = vector.broadcast %7 : vector<1x64xf32> to vector<16x64xf32>
    %9 = arith.addf %5, %8 : vector<16x64xf32>
    %cst_9 = arith.constant 0.000000e+00 : f32
    %10 = vector.broadcast %cst_9 : f32 to vector<16x64xf32>
    %11 = arith.maximumf %9, %10 : vector<16x64xf32>
    %12 = vector.broadcast %cst_9 : f32 to vector<16x64xf32>
    %13 = arith.subf %9, %12 : vector<16x64xf32>
    %14 = arith.cmpf one, %13, %13 : vector<16x64xf32>
    %15 = vector.broadcast %cst_9 : f32 to vector<16x64xf32>
    %16 = arith.addf %9, %15 : vector<16x64xf32>
    %17 = math.absf %13 : vector<16x64xf32>
    %cst_10 = arith.constant 0.000000e+00 : f32
    %18 = vector.broadcast %cst_10 : f32 to vector<16x64xf32>
    %19 = arith.subf %18, %17 : vector<16x64xf32>
    %20 = math.exp %19 : vector<16x64xf32>
    %21 = math.log1p %20 : vector<16x64xf32>
    %22 = arith.addf %11, %21 : vector<16x64xf32>
    %23 = arith.select %14, %16, %22 : vector<16x64xi1>, vector<16x64xf32>
    %c0_11 = arith.constant 0 : index
    %c0_12 = arith.constant 0 : index
    %24 = vector.load %arg8[%c0_11, %c0_12] : memref<16x64xf32, #tpu.memory_space<vmem>>, vector<16x64xf32>
    tpu.vector_store %arg8[%c0_11, %c0_12], %23 {strides = array<i32>} : memref<16x64xf32, #tpu.memory_space<vmem>>, vector<16x64xf32>,
    %25 = vector.extract_strided_slice %4 {offsets = [0, 128], sizes = [16, 16], strides = [1, 1]} : vector<16x272xf32> to vector<16x16xf32>
    %c0_13 = arith.constant 0 : index
    %c0_14 = arith.constant 0 : index
    %26 = vector.load %arg9[%c0_13, %c0_14] : memref<16x16xf32, #tpu.memory_space<vmem>>, vector<16x16xf32>
    tpu.vector_store %arg9[%c0_13, %c0_14], %25 {strides = array<i32>} : memref<16x16xf32, #tpu.memory_space<vmem>>, vector<16x16xf32>,
    %27 = vector.extract_strided_slice %4 {offsets = [0, 256], sizes = [16, 16], strides = [1, 1]} : vector<16x272xf32> to vector<16x16xf32>
    %c0_15 = arith.constant 0 : index
    %c0_16 = arith.constant 0 : index
    %28 = vector.load %arg10[%c0_15, %c0_16] : memref<16x16xf32, #tpu.memory_space<vmem>>, vector<16x16xf32>
    tpu.vector_store %arg10[%c0_15, %c0_16], %27 {strides = array<i32>} : memref<16x16xf32, #tpu.memory_space<vmem>>, vector<16x16xf32>,
    %c0_17 = arith.constant 0 : index
    %c0_18 = arith.constant 0 : index
    %c0_19 = arith.constant 0 : index
    %29 = vector.load %arg4[%c0_17, %c0_18, %c0_19] : memref<1x16x64xf32, #tpu.memory_space<vmem>>, vector<1x16x64xf32>
    %30 = vector.shape_cast %29 : vector<1x16x64xf32> to vector<16x64xf32>
    %c0_20 = arith.constant 0 : index
    %c0_21 = arith.constant 0 : index
    %c0_22 = arith.constant 0 : index
    %31 = vector.load %arg5[%c0_20, %c0_21, %c0_22] : memref<1x1x64xf32, #tpu.memory_space<vmem>>, vector<1x1x64xf32>
    %32 = vector.shape_cast %31 : vector<1x1x64xf32> to vector<1x64xf32>
    %cst_23 = arith.constant 0.000000e+00 : f32
    %33 = vector.broadcast %cst_23 : f32 to vector<16x64xf32>
    %c0_i32 = arith.constant 0 : i32
    %c16_i32 = arith.constant 16 : i32
    %34 = arith.muli %c0_i32, %c16_i32 : i32
    %35 = tpu.assume_multiple %34, 16 : i32
    %36 = arith.index_cast %35 : i32 to index
    %c0_24 = arith.constant 0 : index
    %37 = vector.load %arg8[%36, %c0_24] : memref<16x64xf32, #tpu.memory_space<vmem>>, vector<16x64xf32>
    %c0_25 = arith.constant 0 : index
    %c0_26 = arith.constant 0 : index
    %38 = arith.index_cast %35 : i32 to index
    %c0_27 = arith.constant 0 : index
    %39 = vector.load %arg2[%c0_25, %c0_26, %38, %c0_27] : memref<1x1x16x64xf32, #tpu.memory_space<vmem>>, vector<1x1x16x64xf32>
    %40 = vector.shape_cast %39 : vector<1x1x16x64xf32> to vector<16x64xf32>
    %41 = arith.index_cast %35 : i32 to index
    %c0_28 = arith.constant 0 : index
    %42 = vector.load %arg9[%41, %c0_28] : memref<16x16xf32, #tpu.memory_space<vmem>>, vector<16x16xf32>
    %43 = arith.index_cast %35 : i32 to index
    %c0_29 = arith.constant 0 : index
    %44 = vector.load %arg10[%43, %c0_29] : memref<16x16xf32, #tpu.memory_space<vmem>>, vector<16x16xf32>
    %45 = vector.shape_cast %37 : vector<16x64xf32> to vector<16x1x64xf32>
    %46 = vector.shape_cast %30 : vector<16x64xf32> to vector<1x16x64xf32>
    %47 = vector.broadcast %45 : vector<16x1x64xf32> to vector<16x16x64xf32>
    %48 = vector.broadcast %46 : vector<1x16x64xf32> to vector<16x16x64xf32>
    %49 = arith.mulf %47, %48 : vector<16x16x64xf32>
    %50 = math.exp %49 : vector<16x16x64xf32>
    %51 = vector.shape_cast %42 : vector<16x16xf32> to vector<16x16x1xf32>
    %52 = arith.mulf %37, %40 : vector<16x64xf32>
    %53 = vector.shape_cast %52 : vector<16x64xf32> to vector<16x1x64xf32>
    %54 = vector.broadcast %51 : vector<16x16x1xf32> to vector<16x16x64xf32>
    %55 = vector.broadcast %53 : vector<16x1x64xf32> to vector<16x16x64xf32>
    %56 = arith.mulf %54, %55 : vector<16x16x64xf32>
    %57 = vector.extract_strided_slice %50 {offsets = [0, 0, 0], sizes = [1, 16, 64], strides = [1, 1, 1]} : vector<16x16x64xf32> to vector<1x16x64xf32>
    %58 = vector.shape_cast %57 : vector<1x16x64xf32> to vector<16x64xf32>
    %59 = arith.mulf %58, %33 : vector<16x64xf32>
    %60 = vector.extract_strided_slice %56 {offsets = [0, 0, 0], sizes = [1, 16, 64], strides = [1, 1, 1]} : vector<16x16x64xf32> to vector<1x16x64xf32>
    %61 = vector.shape_cast %60 : vector<1x16x64xf32> to vector<16x64xf32>
    %62 = arith.addf %59, %61 : vector<16x64xf32>
    %63 = vector.extract_strided_slice %50 {offsets = [1, 0, 0], sizes = [1, 16, 64], strides = [1, 1, 1]} : vector<16x16x64xf32> to vector<1x16x64xf32>
    %64 = vector.shape_cast %63 : vector<1x16x64xf32> to vector<16x64xf32>
    %65 = arith.mulf %64, %62 : vector<16x64xf32>
    %66 = vector.extract_strided_slice %56 {offsets = [1, 0, 0], sizes = [1, 16, 64], strides = [1, 1, 1]} : vector<16x16x64xf32> to vector<1x16x64xf32>
    %67 = vector.shape_cast %66 : vector<1x16x64xf32> to vector<16x64xf32>
    %68 = arith.addf %65, %67 : vector<16x64xf32>
    %69 = vector.extract_strided_slice %50 {offsets = [2, 0, 0], sizes = [1, 16, 64], strides = [1, 1, 1]} : vector<16x16x64xf32> to vector<1x16x64xf32>
    %70 = vector.shape_cast %69 : vector<1x16x64xf32> to vector<16x64xf32>
    %71 = arith.mulf %70, %68 : vector<16x64xf32>
    %72 = vector.extract_strided_slice %56 {offsets = [2, 0, 0], sizes = [1, 16, 64], strides = [1, 1, 1]} : vector<16x16x64xf32> to vector<1x16x64xf32>
    %73 = vector.shape_cast %72 : vector<1x16x64xf32> to vector<16x64xf32>
    %74 = arith.addf %71, %73 : vector<16x64xf32>
    %75 = vector.extract_strided_slice %50 {offsets = [3, 0, 0], sizes = [1, 16, 64], strides = [1, 1, 1]} : vector<16x16x64xf32> to vector<1x16x64xf32>
    %76 = vector.shape_cast %75 : vector<1x16x64xf32> to vector<16x64xf32>
    %77 = arith.mulf %76, %74 : vector<16x64xf32>
    %78 = vector.extract_strided_slice %56 {offsets = [3, 0, 0], sizes = [1, 16, 64], strides = [1, 1, 1]} : vector<16x16x64xf32> to vector<1x16x64xf32>
    %79 = vector.shape_cast %78 : vector<1x16x64xf32> to vector<16x64xf32>
    %80 = arith.addf %77, %79 : vector<16x64xf32>
    %81 = vector.extract_strided_slice %50 {offsets = [4, 0, 0], sizes = [1, 16, 64], strides = [1, 1, 1]} : vector<16x16x64xf32> to vector<1x16x64xf32>
    %82 = vector.shape_cast %81 : vector<1x16x64xf32> to vector<16x64xf32>
    %83 = arith.mulf %82, %80 : vector<16x64xf32>
    %84 = vector.extract_strided_slice %56 {offsets = [4, 0, 0], sizes = [1, 16, 64], strides = [1, 1, 1]} : vector<16x16x64xf32> to vector<1x16x64xf32>
    %85 = vector.shape_cast %84 : vector<1x16x64xf32> to vector<16x64xf32>
    %86 = arith.addf %83, %85 : vector<16x64xf32>
    %87 = vector.extract_strided_slice %50 {offsets = [5, 0, 0], sizes = [1, 16, 64], strides = [1, 1, 1]} : vector<16x16x64xf32> to vector<1x16x64xf32>
    %88 = vector.shape_cast %87 : vector<1x16x64xf32> to vector<16x64xf32>
    %89 = arith.mulf %88, %86 : vector<16x64xf32>
    %90 = vector.extract_strided_slice %56 {offsets = [5, 0, 0], sizes = [1, 16, 64], strides = [1, 1, 1]} : vector<16x16x64xf32> to vector<1x16x64xf32>
    %91 = vector.shape_cast %90 : vector<1x16x64xf32> to vector<16x64xf32>
    %92 = arith.addf %89, %91 : vector<16x64xf32>
    %93 = vector.extract_strided_slice %50 {offsets = [6, 0, 0], sizes = [1, 16, 64], strides = [1, 1, 1]} : vector<16x16x64xf32> to vector<1x16x64xf32>
    %94 = vector.shape_cast %93 : vector<1x16x64xf32> to vector<16x64xf32>
    %95 = arith.mulf %94, %92 : vector<16x64xf32>
    %96 = vector.extract_strided_slice %56 {offsets = [6, 0, 0], sizes = [1, 16, 64], strides = [1, 1, 1]} : vector<16x16x64xf32> to vector<1x16x64xf32>
    %97 = vector.shape_cast %96 : vector<1x16x64xf32> to vector<16x64xf32>
    %98 = arith.addf %95, %97 : vector<16x64xf32>
    %99 = vector.extract_strided_slice %50 {offsets = [7, 0, 0], sizes = [1, 16, 64], strides = [1, 1, 1]} : vector<16x16x64xf32> to vector<1x16x64xf32>
    %100 = vector.shape_cast %99 : vector<1x16x64xf32> to vector<16x64xf32>
    %101 = arith.mulf %100, %98 : vector<16x64xf32>
    %102 = vector.extract_strided_slice %56 {offsets = [7, 0, 0], sizes = [1, 16, 64], strides = [1, 1, 1]} : vector<16x16x64xf32> to vector<1x16x64xf32>
    %103 = vector.shape_cast %102 : vector<1x16x64xf32> to vector<16x64xf32>
    %104 = arith.addf %101, %103 : vector<16x64xf32>
    %105 = vector.extract_strided_slice %50 {offsets = [8, 0, 0], sizes = [1, 16, 64], strides = [1, 1, 1]} : vector<16x16x64xf32> to vector<1x16x64xf32>
    %106 = vector.shape_cast %105 : vector<1x16x64xf32> to vector<16x64xf32>
    %107 = arith.mulf %106, %104 : vector<16x64xf32>
    %108 = vector.extract_strided_slice %56 {offsets = [8, 0, 0], sizes = [1, 16, 64], strides = [1, 1, 1]} : vector<16x16x64xf32> to vector<1x16x64xf32>
    %109 = vector.shape_cast %108 : vector<1x16x64xf32> to vector<16x64xf32>
    %110 = arith.addf %107, %109 : vector<16x64xf32>
    %111 = vector.extract_strided_slice %50 {offsets = [9, 0, 0], sizes = [1, 16, 64], strides = [1, 1, 1]} : vector<16x16x64xf32> to vector<1x16x64xf32>
    %112 = vector.shape_cast %111 : vector<1x16x64xf32> to vector<16x64xf32>
    %113 = arith.mulf %112, %110 : vector<16x64xf32>
    %114 = vector.extract_strided_slice %56 {offsets = [9, 0, 0], sizes = [1, 16, 64], strides = [1, 1, 1]} : vector<16x16x64xf32> to vector<1x16x64xf32>
    %115 = vector.shape_cast %114 : vector<1x16x64xf32> to vector<16x64xf32>
    %116 = arith.addf %113, %115 : vector<16x64xf32>
    %117 = vector.extract_strided_slice %50 {offsets = [10, 0, 0], sizes = [1, 16, 64], strides = [1, 1, 1]} : vector<16x16x64xf32> to vector<1x16x64xf32>
    %118 = vector.shape_cast %117 : vector<1x16x64xf32> to vector<16x64xf32>
    %119 = arith.mulf %118, %116 : vector<16x64xf32>
    %120 = vector.extract_strided_slice %56 {offsets = [10, 0, 0], sizes = [1, 16, 64], strides = [1, 1, 1]} : vector<16x16x64xf32> to vector<1x16x64xf32>
    %121 = vector.shape_cast %120 : vector<1x16x64xf32> to vector<16x64xf32>
    %122 = arith.addf %119, %121 : vector<16x64xf32>
    %123 = vector.extract_strided_slice %50 {offsets = [11, 0, 0], sizes = [1, 16, 64], strides = [1, 1, 1]} : vector<16x16x64xf32> to vector<1x16x64xf32>
    %124 = vector.shape_cast %123 : vector<1x16x64xf32> to vector<16x64xf32>
    %125 = arith.mulf %124, %122 : vector<16x64xf32>
    %126 = vector.extract_strided_slice %56 {offsets = [11, 0, 0], sizes = [1, 16, 64], strides = [1, 1, 1]} : vector<16x16x64xf32> to vector<1x16x64xf32>
    %127 = vector.shape_cast %126 : vector<1x16x64xf32> to vector<16x64xf32>
    %128 = arith.addf %125, %127 : vector<16x64xf32>
    %129 = vector.extract_strided_slice %50 {offsets = [12, 0, 0], sizes = [1, 16, 64], strides = [1, 1, 1]} : vector<16x16x64xf32> to vector<1x16x64xf32>
    %130 = vector.shape_cast %129 : vector<1x16x64xf32> to vector<16x64xf32>
    %131 = arith.mulf %130, %128 : vector<16x64xf32>
    %132 = vector.extract_strided_slice %56 {offsets = [12, 0, 0], sizes = [1, 16, 64], strides = [1, 1, 1]} : vector<16x16x64xf32> to vector<1x16x64xf32>
    %133 = vector.shape_cast %132 : vector<1x16x64xf32> to vector<16x64xf32>
    %134 = arith.addf %131, %133 : vector<16x64xf32>
    %135 = vector.extract_strided_slice %50 {offsets = [13, 0, 0], sizes = [1, 16, 64], strides = [1, 1, 1]} : vector<16x16x64xf32> to vector<1x16x64xf32>
    %136 = vector.shape_cast %135 : vector<1x16x64xf32> to vector<16x64xf32>
    %137 = arith.mulf %136, %134 : vector<16x64xf32>
    %138 = vector.extract_strided_slice %56 {offsets = [13, 0, 0], sizes = [1, 16, 64], strides = [1, 1, 1]} : vector<16x16x64xf32> to vector<1x16x64xf32>
    %139 = vector.shape_cast %138 : vector<1x16x64xf32> to vector<16x64xf32>
    %140 = arith.addf %137, %139 : vector<16x64xf32>
    %141 = vector.extract_strided_slice %50 {offsets = [14, 0, 0], sizes = [1, 16, 64], strides = [1, 1, 1]} : vector<16x16x64xf32> to vector<1x16x64xf32>
    %142 = vector.shape_cast %141 : vector<1x16x64xf32> to vector<16x64xf32>
    %143 = arith.mulf %142, %140 : vector<16x64xf32>
    %144 = vector.extract_strided_slice %56 {offsets = [14, 0, 0], sizes = [1, 16, 64], strides = [1, 1, 1]} : vector<16x16x64xf32> to vector<1x16x64xf32>
    %145 = vector.shape_cast %144 : vector<1x16x64xf32> to vector<16x64xf32>
    %146 = arith.addf %143, %145 : vector<16x64xf32>
    %147 = vector.extract_strided_slice %50 {offsets = [15, 0, 0], sizes = [1, 16, 64], strides = [1, 1, 1]} : vector<16x16x64xf32> to vector<1x16x64xf32>
    %148 = vector.shape_cast %147 : vector<1x16x64xf32> to vector<16x64xf32>
    %149 = arith.mulf %148, %146 : vector<16x64xf32>
    %150 = vector.extract_strided_slice %56 {offsets = [15, 0, 0], sizes = [1, 16, 64], strides = [1, 1, 1]} : vector<16x16x64xf32> to vector<1x16x64xf32>
    %151 = vector.shape_cast %150 : vector<1x16x64xf32> to vector<16x64xf32>
    %152 = arith.addf %149, %151 : vector<16x64xf32>
    %153 = vector.shape_cast %62 : vector<16x64xf32> to vector<1x16x64xf32>
    %154 = vector.shape_cast %68 : vector<16x64xf32> to vector<1x16x64xf32>
    %155 = vector.shape_cast %74 : vector<16x64xf32> to vector<1x16x64xf32>
    %156 = vector.shape_cast %80 : vector<16x64xf32> to vector<1x16x64xf32>
    %157 = vector.shape_cast %86 : vector<16x64xf32> to vector<1x16x64xf32>
    %158 = vector.shape_cast %92 : vector<16x64xf32> to vector<1x16x64xf32>
    %159 = vector.shape_cast %98 : vector<16x64xf32> to vector<1x16x64xf32>
    %160 = vector.shape_cast %104 : vector<16x64xf32> to vector<1x16x64xf32>
    %161 = vector.shape_cast %110 : vector<16x64xf32> to vector<1x16x64xf32>
    %162 = vector.shape_cast %116 : vector<16x64xf32> to vector<1x16x64xf32>
    %163 = vector.shape_cast %122 : vector<16x64xf32> to vector<1x16x64xf32>
    %164 = vector.shape_cast %128 : vector<16x64xf32> to vector<1x16x64xf32>
    %165 = vector.shape_cast %134 : vector<16x64xf32> to vector<1x16x64xf32>
    %166 = vector.shape_cast %140 : vector<16x64xf32> to vector<1x16x64xf32>
    %167 = vector.shape_cast %146 : vector<16x64xf32> to vector<1x16x64xf32>
    %168 = vector.shape_cast %152 : vector<16x64xf32> to vector<1x16x64xf32>
    %169 = tpu.concatenate %153, %154, %155, %156, %157, %158, %159, %160, %161, %162, %163, %164, %165, %166, %167, %168 in 0 : vector<1x16x64xf32>, vector<1x16x64xf32>, vector<1x16x64xf32>, vector<1x16x64xf32>, vector<1x16x64xf32>, vector<1x16x64xf32>, vector<1x16x64xf32>, vector<1x16x64xf32>, vector<1x16x64xf32>, vector<1x16x64xf32>, vector<1x16x64xf32>, vector<1x16x64xf32>, vector<1x16x64xf32>, vector<1x16x64xf32>, vector<1x16x64xf32>, vector<1x16x64xf32> -> vector<16x16x64xf32>
    %170 = vector.shape_cast %44 : vector<16x16xf32> to vector<16x16x1xf32>
    %171 = vector.broadcast %170 : vector<16x16x1xf32> to vector<16x16x64xf32>
    %172 = arith.mulf %171, %169 : vector<16x16x64xf32>
    %cst_30 = arith.constant dense<0.000000e+00> : vector<16x64xf32>
    %173 = vector.multi_reduction <add>, %172, %cst_30 [1] : vector<16x16x64xf32> to vector<16x64xf32>
    %174 = vector.broadcast %32 : vector<1x64xf32> to vector<16x64xf32>
    %175 = arith.mulf %174, %40 : vector<16x64xf32>
    %176 = arith.addf %173, %175 : vector<16x64xf32>
    %c0_31 = arith.constant 0 : index
    %c0_32 = arith.constant 0 : index
    %177 = arith.index_cast %35 : i32 to index
    %c0_33 = arith.constant 0 : index
    %178 = vector.load %arg7[%c0_31, %c0_32, %177, %c0_33] : memref<1x1x16x64xf32, #tpu.memory_space<vmem>>, vector<1x1x16x64xf32>
    %179 = vector.shape_cast %178 : vector<1x1x16x64xf32> to vector<16x64xf32>
    %180 = vector.shape_cast %176 : vector<16x64xf32> to vector<1x1x16x64xf32>
    tpu.vector_store %arg7[%c0_31, %c0_32, %177, %c0_33], %180 {strides = array<i32>} : memref<1x1x16x64xf32, #tpu.memory_space<vmem>>, vector<1x1x16x64xf32>,
    %c1_i32 = arith.constant 1 : i32
    return
  }
  func.func @transform_0(%arg0: i32, %arg1: i32) -> (i32, i32, i32, i32) {
    %c0_i32 = arith.constant 0 : i32
    %c0_i32_0 = arith.constant 0 : i32
    %c0_i32_1 = arith.constant 0 : i32
    return %arg1, %arg0, %c0_i32, %c0_i32_0 : i32, i32, i32, i32
  }
  func.func @transform_1(%arg0: i32, %arg1: i32) -> (i32, i32, i32) {
    %c0_i32 = arith.constant 0 : i32
    %c0_i32_0 = arith.constant 0 : i32
    %c0_i32_1 = arith.constant 0 : i32
    return %arg0, %c0_i32, %c0_i32_0 : i32, i32, i32
  }
  func.func @transform_2(%arg0: i32, %arg1: i32) -> (i32, i32, i32) {
    %c0_i32 = arith.constant 0 : i32
    %c0_i32_0 = arith.constant 0 : i32
    %c0_i32_1 = arith.constant 0 : i32
    return %arg0, %c0_i32, %c0_i32_0 : i32, i32, i32
  }
  func.func @transform_3(%arg0: i32, %arg1: i32) -> (i32, i32, i32) {
    %c0_i32 = arith.constant 0 : i32
    %c0_i32_0 = arith.constant 0 : i32
    %c0_i32_1 = arith.constant 0 : i32
    return %arg0, %c0_i32, %c0_i32_0 : i32, i32, i32
  }
  func.func @transform_4(%arg0: i32, %arg1: i32) -> (i32, i32, i32) {
    %c0_i32 = arith.constant 0 : i32
    %c0_i32_0 = arith.constant 0 : i32
    %c0_i32_1 = arith.constant 0 : i32
    return %arg0, %c0_i32, %c0_i32_0 : i32, i32, i32
  }
  func.func @transform_5(%arg0: i32, %arg1: i32) -> (i32, i32, i32, i32) {
    %c0_i32 = arith.constant 0 : i32
    %c0_i32_0 = arith.constant 0 : i32
    %c0_i32_1 = arith.constant 0 : i32
    return %arg1, %arg0, %c0_i32, %c0_i32_0 : i32, i32, i32, i32
  }
}

module attributes {stable_mosaic.version = 11 : i64} {
  func.func @_ln_gate_proj_kernel(%arg0: i32, %arg1: memref<128x64xf32, #tpu.memory_space<vmem>>, %arg2: memref<128x64xf32, #tpu.memory_space<vmem>>, %arg3: memref<1x64xf32, #tpu.memory_space<vmem>>, %arg4: memref<1x64xf32, #tpu.memory_space<vmem>>, %arg5: memref<64x32xf32, #tpu.memory_space<vmem>>, %arg6: memref<128x32xf32, #tpu.memory_space<vmem>>) attributes {dimension_semantics = [#tpu.dimension_semantics<parallel>], iteration_bounds = array<i64: 1>, scalar_prefetch = 0 : i64, scratch_operands = 0 : i64, tpu.core_type = #tpu.core_type<tc>, window_params = [{transform_indices = @transform_0, window_bounds = array<i64: 128, 64>}, {transform_indices = @transform_1, window_bounds = array<i64: 128, 64>}, {pipeline_mode = #tpu.pipeline_mode<synchronous>, transform_indices = @transform_2, window_bounds = array<i64: 1, 64>}, {pipeline_mode = #tpu.pipeline_mode<synchronous>, transform_indices = @transform_3, window_bounds = array<i64: 1, 64>}, {pipeline_mode = #tpu.pipeline_mode<synchronous>, transform_indices = @transform_4, window_bounds = array<i64: 64, 32>}, {transform_indices = @transform_5, window_bounds = array<i64: 128, 32>}]} {
    %c0 = arith.constant 0 : index
    %c0_0 = arith.constant 0 : index
    %0 = vector.load %arg1[%c0, %c0_0] : memref<128x64xf32, #tpu.memory_space<vmem>>, vector<128x64xf32>
    %cst = arith.constant dense<0.000000e+00> : vector<128xf32>
    %1 = vector.multi_reduction <add>, %0, %cst [1] : vector<128x64xf32> to vector<128xf32>
    %2 = vector.shape_cast %1 : vector<128xf32> to vector<128x1xf32>
    %cst_1 = arith.constant 6.400000e+01 : f32
    %3 = vector.broadcast %cst_1 : f32 to vector<128x1xf32>
    %4 = arith.divf %2, %3 : vector<128x1xf32>
    %5 = vector.broadcast %4 : vector<128x1xf32> to vector<128x64xf32>
    %6 = arith.subf %0, %5 : vector<128x64xf32>
    %7 = arith.mulf %6, %6 : vector<128x64xf32>
    %cst_2 = arith.constant dense<0.000000e+00> : vector<128xf32>
    %8 = vector.multi_reduction <add>, %7, %cst_2 [1] : vector<128x64xf32> to vector<128xf32>
    %9 = vector.shape_cast %8 : vector<128xf32> to vector<128x1xf32>
    %cst_3 = arith.constant 6.400000e+01 : f32
    %10 = vector.broadcast %cst_3 : f32 to vector<128x1xf32>
    %11 = arith.divf %9, %10 : vector<128x1xf32>
    %cst_4 = arith.constant 9.99999974E-6 : f32
    %12 = vector.broadcast %cst_4 : f32 to vector<128x1xf32>
    %13 = arith.addf %11, %12 : vector<128x1xf32>
    %14 = math.rsqrt %13 : vector<128x1xf32>
    %15 = vector.broadcast %14 : vector<128x1xf32> to vector<128x64xf32>
    %16 = arith.mulf %6, %15 : vector<128x64xf32>
    %c0_5 = arith.constant 0 : index
    %c0_6 = arith.constant 0 : index
    %17 = vector.load %arg3[%c0_5, %c0_6] : memref<1x64xf32, #tpu.memory_space<vmem>>, vector<1x64xf32>
    %18 = vector.broadcast %17 : vector<1x64xf32> to vector<128x64xf32>
    %19 = arith.mulf %16, %18 : vector<128x64xf32>
    %c0_7 = arith.constant 0 : index
    %c0_8 = arith.constant 0 : index
    %20 = vector.load %arg4[%c0_7, %c0_8] : memref<1x64xf32, #tpu.memory_space<vmem>>, vector<1x64xf32>
    %21 = vector.broadcast %20 : vector<1x64xf32> to vector<128x64xf32>
    %22 = arith.addf %19, %21 : vector<128x64xf32>
    %c0_9 = arith.constant 0 : index
    %c0_10 = arith.constant 0 : index
    %23 = vector.load %arg2[%c0_9, %c0_10] : memref<128x64xf32, #tpu.memory_space<vmem>>, vector<128x64xf32>
    %24 = arith.negf %23 : vector<128x64xf32>
    %25 = math.exp %24 : vector<128x64xf32>
    %cst_11 = arith.constant 1.000000e+00 : f32
    %26 = vector.broadcast %cst_11 : f32 to vector<128x64xf32>
    %27 = arith.addf %26, %25 : vector<128x64xf32>
    %28 = arith.divf %26, %27 : vector<128x64xf32>
    %29 = arith.mulf %23, %28 : vector<128x64xf32>
    %30 = arith.mulf %22, %29 : vector<128x64xf32>
    %c0_12 = arith.constant 0 : index
    %c0_13 = arith.constant 0 : index
    %31 = vector.load %arg5[%c0_12, %c0_13] : memref<64x32xf32, #tpu.memory_space<vmem>>, vector<64x32xf32>
    %cst_14 = arith.constant dense<0.000000e+00> : vector<128x32xf32>
    %32 = tpu.matmul %30, %31, %cst_14 {dimension_numbers = #tpu.dot_dimension_numbers<[1], [0], [0], [1], [0, 0, 1, 1], [], []>} : vector<128x64xf32>, vector<64x32xf32>, vector<128x32xf32> -> vector<128x32xf32>
    %c0_15 = arith.constant 0 : index
    %c0_16 = arith.constant 0 : index
    %33 = vector.load %arg6[%c0_15, %c0_16] : memref<128x32xf32, #tpu.memory_space<vmem>>, vector<128x32xf32>
    tpu.vector_store %arg6[%c0_15, %c0_16], %32 {strides = array<i32>} : memref<128x32xf32, #tpu.memory_space<vmem>>, vector<128x32xf32>,
    return
  }
  func.func @transform_0(%arg0: i32) -> (i32, i32) {
    %c0_i32 = arith.constant 0 : i32
    %c0_i32_0 = arith.constant 0 : i32
    return %arg0, %c0_i32 : i32, i32
  }
  func.func @transform_1(%arg0: i32) -> (i32, i32) {
    %c0_i32 = arith.constant 0 : i32
    %c0_i32_0 = arith.constant 0 : i32
    return %arg0, %c0_i32 : i32, i32
  }
  func.func @transform_2(%arg0: i32) -> (i32, i32) {
    %c0_i32 = arith.constant 0 : i32
    %c0_i32_0 = arith.constant 0 : i32
    %c0_i32_1 = arith.constant 0 : i32
    return %c0_i32, %c0_i32_0 : i32, i32
  }
  func.func @transform_3(%arg0: i32) -> (i32, i32) {
    %c0_i32 = arith.constant 0 : i32
    %c0_i32_0 = arith.constant 0 : i32
    %c0_i32_1 = arith.constant 0 : i32
    return %c0_i32, %c0_i32_0 : i32, i32
  }
  func.func @transform_4(%arg0: i32) -> (i32, i32) {
    %c0_i32 = arith.constant 0 : i32
    %c0_i32_0 = arith.constant 0 : i32
    %c0_i32_1 = arith.constant 0 : i32
    return %c0_i32, %c0_i32_0 : i32, i32
  }
  func.func @transform_5(%arg0: i32) -> (i32, i32) {
    %c0_i32 = arith.constant 0 : i32
    %c0_i32_0 = arith.constant 0 : i32
    return %arg0, %c0_i32 : i32, i32
  }
}

</mosaic_0001>

<bundles_post_ra>
// kernel: es2d_forward.4
= control target key start
LH: loop header
LB: loop body
LE: loop exit
PB: predicated region body
PF: predicated region fallthrough
CT: control target
= control target key end

     0   :  { %vm36_vm0 = vcmask 261120   ;;  %vm230_vm1 = vcmask 523264   ;;  %s829_s1 = inlined_call_operand.vmem [shape: f32[32,64], index: 1, kind: input, shape index: {}]   ;;  %s830_s2 = inlined_call_operand.vmem [shape: f32[32,64], index: 2, kind: input, shape index: {}]   ;;  %s831_s0 = inlined_call_operand.vmem [shape: f32[128,32], index: 0, kind: input, shape index: {}]   ;;  %s832_s3 = inlined_call_operand.vmem [shape: f32[128,64], index: 3, kind: output, shape index: {0}]   ;;  %s833_s4 = inlined_call_operand.vmem [shape: f32[128,64], index: 4, kind: output, shape index: {1}]  }
   0x1   :  { %v32_v0 = vld [vmem:[%s829_s1] sm:$0xff]  ;;  %v33_v1 = vld [vmem:[%s829_s1 + $0x8] sm:$0xff]  ;;  %v34_v5 = vld [vmem:[%s829_s1 + $0x10] sm:$0xff] }
   0x2   :  { %v247_v2 = vld [vmem:[%s830_s2] sm:$0xff]  ;;  %v556_v3 = vpack.c.bf16 %v33_v1, %v32_v0  ;;  %v248_v4 = vld [vmem:[%s830_s2 + $0x8] sm:$0xff]  ;;  %v35_v6 = vld [vmem:[%s829_s1 + $0x18] sm:$0xff] }
   0x3   :  { %v564_v7 = vpack.c.bf16 %v248_v4, %v247_v2  ;;  %v560_v8 = vpack.c.bf16 %v35_v6, %v34_v5  ;;  %v249_v9 = vld [vmem:[%s830_s2 + $0x10] sm:$0xff]  ;;  %v250_v10 = vld [vmem:[%s830_s2 + $0x18] sm:$0xff]  ;;  %v16_v11 = vld [vmem:[%s831_s0] sm:$0xff] }
   0x4   :  { %557 = vmatprep.subr.bf16.mxu0 %v556_v3  ;;  %v568_v12 = vpack.c.bf16 %v250_v10, %v249_v9  ;;  %500 = vmatprep.mubr.msk.f32.mxu0 %vm36_vm0, %v16_v11  ;;  %v17_v13 = vld [vmem:[%s831_s0 + $0x8] sm:$0xff]  ;;  %v18_v14 = vld [vmem:[%s831_s0 + $0x10] sm:$0xff]  ;;  %v19_v15 = vld [vmem:[%s831_s0 + $0x18] sm:$0xff] }
   0x5   :  { %565 = vmatprep.subr.bf16.mxu1 %v564_v7  ;;  %559 = vmatpush3.bf16.msra.mxu0 %v556_v3  ;;  %v20_v16 = vld [vmem:[%s831_s0 + $0x20] sm:$0xff]  ;;  %v21_v17 = vld [vmem:[%s831_s0 + $0x28] sm:$0xff]  ;;  %v22_v18 = vld [vmem:[%s831_s0 + $0x30] sm:$0xff] }
   0x6   :  { %567 = vmatpush3.bf16.msra.mxu1 %v564_v7  ;;  %561 = vmatprep.subr.bf16.mxu0 %v560_v8  ;;  %v23_v19 = vld [vmem:[%s831_s0 + $0x38] sm:$0xff]  ;;  %v24_v20 = vld [vmem:[%s831_s0 + $0x40] sm:$0xff]  ;;  %v25_v21 = vld [vmem:[%s831_s0 + $0x48] sm:$0xff] }
   0x7   :  { %569 = vmatprep.subr.bf16.mxu1 %v568_v12  ;;  %532 = vmatprep.mubr.msk.f32.mxu1 %vm36_vm0, %v16_v11  ;;  %v26_v22 = vld [vmem:[%s831_s0 + $0x50] sm:$0xff]  ;;  %v27_v23 = vld [vmem:[%s831_s0 + $0x58] sm:$0xff]  ;;  %v28_v24 = vld [vmem:[%s831_s0 + $0x60] sm:$0xff] }
   0x8   :  { %v29_v25 = vld [vmem:[%s831_s0 + $0x68] sm:$0xff]  ;;  %v30_v26 = vld [vmem:[%s831_s0 + $0x70] sm:$0xff]  ;;  %v31_v27 = vld [vmem:[%s831_s0 + $0x78] sm:$0xff] }
   0x9   :  { %563 = vmatpush3.bf16.msra.mxu0 %v560_v8 }
   0xa   :  { %571 = vmatpush3.bf16.msra.mxu1 %v568_v12 }
   0xc   :  { %501 = vmatmul.mubr.msk.f32.vlgmr.msra.gmra.mrb[0].mxu0 %vm36_vm0, %v17_v13 }
   0xd   :  { %533 = vmatmul.mubr.msk.f32.vlgmr.msra.gmra.mrb[0].mxu1 %vm36_vm0, %v17_v13  ;;  %503 = vmatprep.mubr.msk.f32.mxu0 %vm36_vm0, %v18_v14 }
   0xe   :  { %535 = vmatprep.mubr.msk.f32.mxu1 %vm36_vm0, %v18_v14 }
  0x10   :  { %504 = vmatmul.mubr.msk.f32.gmra.mrb[2].mxu0 %vm36_vm0, %v19_v15 }
  0x11   :  { %536 = vmatmul.mubr.msk.f32.gmra.mrb[2].mxu1 %vm36_vm0, %v19_v15  ;;  %506 = vmatprep.mubr.msk.f32.mxu0 %vm36_vm0, %v20_v16 }
  0x12   :  { %538 = vmatprep.mubr.msk.f32.mxu1 %vm36_vm0, %v20_v16 }
  0x14   :  { %507 = vmatmul.mubr.msk.f32.gmra.mrb[4].mxu0 %vm36_vm0, %v21_v17 }
  0x15   :  { %539 = vmatmul.mubr.msk.f32.gmra.mrb[4].mxu1 %vm36_vm0, %v21_v17  ;;  %509 = vmatprep.mubr.msk.f32.mxu0 %vm36_vm0, %v22_v18 }
  0x16   :  { %541 = vmatprep.mubr.msk.f32.mxu1 %vm36_vm0, %v22_v18 }
  0x18   :  { %510 = vmatmul.mubr.msk.f32.gmra.mrb[6].mxu0 %vm36_vm0, %v23_v19 }
  0x19   :  { %542 = vmatmul.mubr.msk.f32.gmra.mrb[6].mxu1 %vm36_vm0, %v23_v19  ;;  %512 = vmatprep.mubr.msk.f32.mxu0 %vm36_vm0, %v24_v20 }
  0x1a   :  { %544 = vmatprep.mubr.msk.f32.mxu1 %vm36_vm0, %v24_v20 }
  0x1c   :  { %513 = vmatmul.mubr.msk.f32.gmra.mrb[8].mxu0 %vm36_vm0, %v25_v21 }
  0x1d   :  { %545 = vmatmul.mubr.msk.f32.gmra.mrb[8].mxu1 %vm36_vm0, %v25_v21  ;;  %515 = vmatprep.mubr.msk.f32.mxu0 %vm36_vm0, %v26_v22 }
  0x1e   :  { %547 = vmatprep.mubr.msk.f32.mxu1 %vm36_vm0, %v26_v22 }
  0x20   :  { %516 = vmatmul.mubr.msk.f32.gmra.mrb[10].mxu0 %vm36_vm0, %v27_v23 }
  0x21   :  { %548 = vmatmul.mubr.msk.f32.gmra.mrb[10].mxu1 %vm36_vm0, %v27_v23  ;;  %518 = vmatprep.mubr.msk.f32.mxu0 %vm36_vm0, %v28_v24 }
  0x22   :  { %550 = vmatprep.mubr.msk.f32.mxu1 %vm36_vm0, %v28_v24 }
  0x24   :  { %519 = vmatmul.mubr.msk.f32.gmra.mrb[12].mxu0 %vm36_vm0, %v29_v25 }
  0x25   :  { %551 = vmatmul.mubr.msk.f32.gmra.mrb[12].mxu1 %vm36_vm0, %v29_v25  ;;  %521 = vmatprep.mubr.msk.f32.mxu0 %vm36_vm0, %v30_v26 }
  0x26   :  { %553 = vmatprep.mubr.msk.f32.mxu1 %vm36_vm0, %v30_v26 }
  0x28   :  { %522 = vmatmul.mubr.msk.f32.gmra.mrb[14].mxu0 %vm36_vm0, %v31_v27 }
  0x29   :  { %554 = vmatmul.mubr.msk.f32.gmra.mrb[14].mxu1 %vm36_vm0, %v31_v27 }
  0xdf   :  { %v502_v28 = vpop.f32.mrb[0].mxu0 }
  0xe0   :  { %232 = vst.msk [vmem:[%s832_s3 + $0x8] sm:$0xff] %vm230_vm1, %v502_v28  ;;  %v534_v29 = vpop.f32.mrb[0].mxu1  ;;  %v151_v30 = vpop.f32.mrb[1].mxu0 }
  0xe1   :  { %397 = vst.msk [vmem:[%s833_s4 + $0x8] sm:$0xff] %vm230_vm1, %v534_v29  ;;  %231 = vst.msk [vmem:[%s832_s3] sm:$0xff] %vm230_vm1, %v151_v30  ;;  %v317_v31 = vpop.f32.mrb[1].mxu1 }
  0xe2   :  { %396 = vst.msk [vmem:[%s833_s4] sm:$0xff] %vm230_vm1, %v317_v31 }
  0xe3   :  { %v505_v32 = vpop.f32.mrb[2].mxu0 }
  0xe4   :  { %234 = vst.msk [vmem:[%s832_s3 + $0x18] sm:$0xff] %vm230_vm1, %v505_v32  ;;  %v537_v33 = vpop.f32.mrb[2].mxu1  ;;  %v161_v34 = vpop.f32.mrb[3].mxu0 }
  0xe5   :  { %399 = vst.msk [vmem:[%s833_s4 + $0x18] sm:$0xff] %vm230_vm1, %v537_v33  ;;  %233 = vst.msk [vmem:[%s832_s3 + $0x10] sm:$0xff] %vm230_vm1, %v161_v34  ;;  %v327_v35 = vpop.f32.mrb[3].mxu1 }
  0xe6   :  { %398 = vst.msk [vmem:[%s833_s4 + $0x10] sm:$0xff] %vm230_vm1, %v327_v35 }
  0xe7   :  { %v508_v36 = vpop.f32.mrb[4].mxu0 }
  0xe8   :  { %236 = vst.msk [vmem:[%s832_s3 + $0x28] sm:$0xff] %vm230_vm1, %v508_v36  ;;  %v540_v37 = vpop.f32.mrb[4].mxu1  ;;  %v171_v38 = vpop.f32.mrb[5].mxu0 }
  0xe9   :  { %401 = vst.msk [vmem:[%s833_s4 + $0x28] sm:$0xff] %vm230_vm1, %v540_v37  ;;  %235 = vst.msk [vmem:[%s832_s3 + $0x20] sm:$0xff] %vm230_vm1, %v171_v38  ;;  %v337_v39 = vpop.f32.mrb[5].mxu1 }
  0xea   :  { %400 = vst.msk [vmem:[%s833_s4 + $0x20] sm:$0xff] %vm230_vm1, %v337_v39 }
  0xeb   :  { %v511_v40 = vpop.f32.mrb[6].mxu0 }
  0xec   :  { %238 = vst.msk [vmem:[%s832_s3 + $0x38] sm:$0xff] %vm230_vm1, %v511_v40  ;;  %v543_v41 = vpop.f32.mrb[6].mxu1  ;;  %v181_v42 = vpop.f32.mrb[7].mxu0 }
  0xed   :  { %403 = vst.msk [vmem:[%s833_s4 + $0x38] sm:$0xff] %vm230_vm1, %v543_v41  ;;  %237 = vst.msk [vmem:[%s832_s3 + $0x30] sm:$0xff] %vm230_vm1, %v181_v42  ;;  %v347_v43 = vpop.f32.mrb[7].mxu1 }
  0xee   :  { %402 = vst.msk [vmem:[%s833_s4 + $0x30] sm:$0xff] %vm230_vm1, %v347_v43 }
  0xef   :  { %v514_v44 = vpop.f32.mrb[8].mxu0 }
  0xf0   :  { %240 = vst.msk [vmem:[%s832_s3 + $0x48] sm:$0xff] %vm230_vm1, %v514_v44  ;;  %v546_v45 = vpop.f32.mrb[8].mxu1  ;;  %v191_v46 = vpop.f32.mrb[9].mxu0 }
  0xf1   :  { %405 = vst.msk [vmem:[%s833_s4 + $0x48] sm:$0xff] %vm230_vm1, %v546_v45  ;;  %239 = vst.msk [vmem:[%s832_s3 + $0x40] sm:$0xff] %vm230_vm1, %v191_v46  ;;  %v357_v47 = vpop.f32.mrb[9].mxu1 }
  0xf2   :  { %404 = vst.msk [vmem:[%s833_s4 + $0x40] sm:$0xff] %vm230_vm1, %v357_v47 }
  0xf3   :  { %v517_v48 = vpop.f32.mrb[10].mxu0 }
  0xf4   :  { %242 = vst.msk [vmem:[%s832_s3 + $0x58] sm:$0xff] %vm230_vm1, %v517_v48  ;;  %v549_v49 = vpop.f32.mrb[10].mxu1  ;;  %v201_v50 = vpop.f32.mrb[11].mxu0 }
  0xf5   :  { %407 = vst.msk [vmem:[%s833_s4 + $0x58] sm:$0xff] %vm230_vm1, %v549_v49  ;;  %241 = vst.msk [vmem:[%s832_s3 + $0x50] sm:$0xff] %vm230_vm1, %v201_v50  ;;  %v367_v51 = vpop.f32.mrb[11].mxu1 }
  0xf6   :  { %406 = vst.msk [vmem:[%s833_s4 + $0x50] sm:$0xff] %vm230_vm1, %v367_v51 }
  0xf7   :  { %v520_v52 = vpop.f32.mrb[12].mxu0 }
  0xf8   :  { %244 = vst.msk [vmem:[%s832_s3 + $0x68] sm:$0xff] %vm230_vm1, %v520_v52  ;;  %v552_v53 = vpop.f32.mrb[12].mxu1  ;;  %v211_v54 = vpop.f32.mrb[13].mxu0 }
  0xf9   :  { %409 = vst.msk [vmem:[%s833_s4 + $0x68] sm:$0xff] %vm230_vm1, %v552_v53  ;;  %243 = vst.msk [vmem:[%s832_s3 + $0x60] sm:$0xff] %vm230_vm1, %v211_v54  ;;  %v377_v55 = vpop.f32.mrb[13].mxu1 }
  0xfa   :  { %408 = vst.msk [vmem:[%s833_s4 + $0x60] sm:$0xff] %vm230_vm1, %v377_v55 }
  0xfb   :  { %v523_v56 = vpop.f32.mrb[14].mxu0 }
  0xfc   :  { %246 = vst.msk [vmem:[%s832_s3 + $0x78] sm:$0xff] %vm230_vm1, %v523_v56  ;;  %v555_v57 = vpop.f32.mrb[14].mxu1  ;;  %v221_v58 = vpop.f32.mrb[15].mxu0 }
  0xfd   :  { %411 = vst.msk [vmem:[%s833_s4 + $0x78] sm:$0xff] %vm230_vm1, %v555_v57  ;;  %245 = vst.msk [vmem:[%s832_s3 + $0x70] sm:$0xff] %vm230_vm1, %v221_v58  ;;  %v387_v59 = vpop.f32.mrb[15].mxu1 }
  0xfe   :  { %410 = vst.msk [vmem:[%s833_s4 + $0x70] sm:$0xff] %vm230_vm1, %v387_v59 }

// kernel: es2d_forward.5
= control target key start
LH: loop header
LB: loop body
LE: loop exit
PB: predicated region body
PF: predicated region fallthrough
CT: control target
= control target key end

     0   :  { %s723_s12 = smov 0   ;;  %s948_s0 = inlined_call_operand.vmem [shape: f32[2,10,10,64], index: 0, kind: input, shape index: {}]   ;;  %s949_s1 = inlined_call_operand.vmem [shape: f32[3,3,64], index: 1, kind: input, shape index: {}]   ;;  %s950_s2 = inlined_call_operand.vmem [shape: f32[1,64], index: 2, kind: input, shape index: {}]   ;;  %s951_s3 = inlined_call_operand.vmem [shape: f32[2,8,8,64], index: 3, kind: output, shape index: {}]  }
   0x1 LB: > { %s571_s13 = sadd.s32 4294967295, %s701_s12   ;;  %p575_p0 = scmp.ge.s32.totalorder %s701_s12, 1  ;;  %s701_s12 = sphi %s723_s12, %s13_s12  }
   0x2   : > { %p137_p1 = scmp.lt.s32.totalorder %s701_s12, 3 }
   0x4   : > { %p138_p2 = pnand %p575_p0, %p137_p1 }
   0x5   : > { %p161_p3 = scmp.lt.s32.totalorder (!%p138_p2), %s571_s13, 1  ;;  %v736_v0 = vld [vmem:[%s949_s1] ss:$0 sm:$0xff] (!%p138_p2)  ;;  %v742_v1 = vld [vmem:[%s949_s1 + $0x1] ss:$0 sm:$0xff] (!%p138_p2)  ;;  %vm507_vm0 = vcmask (!%p138_p2), 523264  }
   0x6   : > { %141 = sbr.rel (%p138_p2) target bundleno = 98 (0x62), region = 32  ;;  %v747_v2 = vld [vmem:[%s949_s1 + $0x2] ss:$0 sm:$0xff] (!%p138_p2)  ;;  %v752_v3 = vld [vmem:[%s949_s1 + $0x4] ss:$0 sm:$0xff] (!%p138_p2) }
   0x7   : > { %v757_v4 = vld [vmem:[%s949_s1 + $0x5] ss:$0 sm:$0xff] (!%p138_p2)  ;;  %v762_v5 = vld [vmem:[%s949_s1 + $0x6] ss:$0 sm:$0xff] (!%p138_p2)  ;;  %v772_v6 = vld [vmem:[%s949_s1 + $0x8] ss:$0 sm:$0xff] (!%p138_p2) }
   0x8   : > { %v777_v7 = vld [vmem:[%s949_s1 + $0x9] ss:$0 sm:$0xff] (!%p138_p2)  ;;  %v782_v8 = vld [vmem:[%s949_s1 + $0xa] ss:$0 sm:$0xff] (!%p138_p2) }
   0xd   : > { %s953_s13 = smov (!%p161_p3, %s571_s13), 1 }
   0xe   : > { %s654_s16 = smul.u32 160, %s953_s13  ;;  %s653_s11 = sshll.u32 %s953_s13, 6 }
  0x10   : > { %s767_s29 = scalar_lea.vmem %s948_s0, %s654_s16  ;;  %s920_s16 = scalar_lea.vmem %s951_s3, %s653_s11 }
  0x11   : > { %v171_v9 = vld [vmem:[%s767_s29] sm:$0xff]  ;;  %v582_v15 = vld [vmem:[%s767_s29 + $0x10] sm:$0xff] }
  0x12   : > { %v200_v10 = vld [vmem:[%s767_s29 + $0x1] sm:$0xff]  ;;  %v184_v12 = vmul.f32 %v736_v0, %v171_v9  ;;  %v592_v16 = vld [vmem:[%s767_s29 + $0x11] sm:$0xff]  ;;  %v273_v18 = vmul.f32 %v752_v3, %v582_v15  ;;  %v185_v20 = vmul.f32 %v582_v15, %v736_v0 }
  0x13   : > { %v229_v11 = vld [vmem:[%s767_s29 + $0x2] sm:$0xff]  ;;  %v213_v13 = vmul.f32 %v742_v1, %v200_v10  ;;  %v602_v17 = vld [vmem:[%s767_s29 + $0x12] sm:$0xff]  ;;  %v302_v22 = vmul.f32 %v757_v4, %v592_v16  ;;  %v214_v29 = vmul.f32 %v592_v16, %v742_v1 }
  0x14   : > { %v242_v14 = vmul.f32 %v747_v2, %v229_v11  ;;  %v612_v19 = vld [vmem:[%s767_s29 + $0x20] sm:$0xff]  ;;  %v331_v23 = vmul.f32 %v762_v5, %v602_v17  ;;  %v243_v30 = vmul.f32 %v602_v17, %v747_v2  ;;  %v613_v35 = vld [vmem:[%s767_s29 + $0x30] sm:$0xff] }
  0x15   : > { %v221_v21 = vadd.f32 %v213_v13, %v184_v12  ;;  %v362_v24 = vmul.f32 %v772_v6, %v612_v19  ;;  %v622_v25 = vld [vmem:[%s767_s29 + $0x21] sm:$0xff]  ;;  %v274_v32 = vmul.f32 %v612_v19, %v752_v3  ;;  %v222_v36 = vadd.f32 %v214_v29, %v185_v20  ;;  %v623_v38 = vld [vmem:[%s767_s29 + $0x31] sm:$0xff] }
  0x16   : > { %v632_v26 = vld [vmem:[%s767_s29 + $0x22] sm:$0xff]  ;;  %v391_v27 = vmul.f32 %v777_v7, %v622_v25  ;;  %v303_v33 = vmul.f32 %v622_v25, %v757_v4  ;;  %v363_v37 = vmul.f32 %v772_v6, %v613_v35  ;;  %v633_v39 = vld [vmem:[%s767_s29 + $0x32] sm:$0xff]  ;;  %v186_v40 = vmul.f32 %v612_v19, %v736_v0 }
  0x17   : > { %v420_v28 = vmul.f32 %v782_v8, %v632_v26  ;;  %v250_v31 = vadd.f32 %v242_v14, %v221_v21  ;;  %v332_v34 = vmul.f32 %v632_v26, %v762_v5  ;;  %v215_v41 = vmul.f32 %v622_v25, %v742_v1  ;;  %v614_v50 = vld [vmem:[%s767_s29 + $0x40] sm:$0xff]  ;;  %v615_v14 = vld [vmem:[%s767_s29 + $0x50] sm:$0xff] }
  0x18   : > { %v392_v43 = vmul.f32 %v777_v7, %v623_v38  ;;  %v421_v44 = vmul.f32 %v782_v8, %v633_v39  ;;  %v244_v45 = vmul.f32 %v632_v26, %v747_v2  ;;  %v251_v46 = vadd.f32 %v243_v30, %v222_v36  ;;  %v624_v57 = vld [vmem:[%s767_s29 + $0x41] sm:$0xff]  ;;  %v843_v30 = vld [vmem:[%s950_s2] ss:$0 sm:$0xff] }
  0x19   : > { %v281_v42 = vadd.f32 %v273_v18, %v250_v31  ;;  %v223_v47 = vadd.f32 %v215_v41, %v186_v40  ;;  %v275_v48 = vmul.f32 %v613_v35, %v752_v3  ;;  %v304_v49 = vmul.f32 %v623_v38, %v757_v4  ;;  %v634_v58 = vld [vmem:[%s767_s29 + $0x42] sm:$0xff] }
  0x1a   : > { %v333_v52 = vmul.f32 %v633_v39, %v762_v5  ;;  %v364_v53 = vmul.f32 %v772_v6, %v614_v50  ;;  %v187_v54 = vmul.f32 %v613_v35, %v736_v0  ;;  %v282_v55 = vadd.f32 %v274_v32, %v251_v46  ;;  %v616_v46 = vld [vmem:[%s767_s29 + $0x60] sm:$0xff] }
  0x1b   : > { %v310_v51 = vadd.f32 %v302_v22, %v281_v42  ;;  %v252_v56 = vadd.f32 %v244_v45, %v223_v47  ;;  %v216_v59 = vmul.f32 %v623_v38, %v742_v1  ;;  %v245_v60 = vmul.f32 %v633_v39, %v747_v2  ;;  %v625_v22 = vld [vmem:[%s767_s29 + $0x51] sm:$0xff] }
  0x1c   : > { %v393_v62 = vmul.f32 %v777_v7, %v624_v57  ;;  %v422_v63 = vmul.f32 %v782_v8, %v634_v58  ;;  %v276_v9 = vmul.f32 %v614_v50, %v752_v3  ;;  %v311_v10 = vadd.f32 %v303_v33, %v282_v55 }
  0x1d   : > { %v339_v61 = vadd.f32 %v331_v23, %v310_v51  ;;  %v283_v11 = vadd.f32 %v275_v48, %v252_v56  ;;  %v224_v12 = vadd.f32 %v216_v59, %v187_v54  ;;  %v305_v13 = vmul.f32 %v624_v57, %v757_v4 }
  0x1e   : > { %v334_v16 = vmul.f32 %v634_v58, %v762_v5  ;;  %v365_v17 = vmul.f32 %v772_v6, %v615_v14  ;;  %v188_v18 = vmul.f32 %v614_v50, %v736_v0  ;;  %v340_v19 = vadd.f32 %v332_v34, %v311_v10  ;;  %v635_v34 = vld [vmem:[%s767_s29 + $0x52] sm:$0xff] }
  0x1f   : > { %v370_v15 = vadd.f32 %v362_v24, %v339_v61  ;;  %v312_v20 = vadd.f32 %v304_v49, %v283_v11  ;;  %v253_v21 = vadd.f32 %v245_v60, %v224_v12  ;;  %v217_v23 = vmul.f32 %v624_v57, %v742_v1  ;;  %v626_v60 = vld [vmem:[%s767_s29 + $0x61] sm:$0xff] }
  0x20   : > { %v394_v26 = vmul.f32 %v777_v7, %v625_v22  ;;  %v246_v29 = vmul.f32 %v634_v58, %v747_v2  ;;  %v277_v24 = vmul.f32 %v615_v14, %v752_v3  ;;  %v371_v31 = vadd.f32 %v363_v37, %v340_v19 }
  0x21   : > { %v399_v25 = vadd.f32 %v391_v27, %v370_v15  ;;  %v341_v32 = vadd.f32 %v333_v52, %v312_v20  ;;  %v284_v33 = vadd.f32 %v276_v9, %v253_v21  ;;  %v225_v35 = vadd.f32 %v217_v23, %v188_v18 }
  0x22   : > { %v423_v27 = vmul.f32 %v782_v8, %v635_v34  ;;  %v306_v38 = vmul.f32 %v625_v22, %v757_v4  ;;  %v335_v39 = vmul.f32 %v635_v34, %v762_v5  ;;  %v400_v40 = vadd.f32 %v392_v43, %v371_v31 }
  0x23   : > { %v428_v36 = vadd.f32 %v420_v28, %v399_v25  ;;  %v372_v41 = vadd.f32 %v364_v53, %v341_v32  ;;  %v313_v42 = vadd.f32 %v305_v13, %v284_v33  ;;  %v254_v45 = vadd.f32 %v246_v29, %v225_v35  ;;  %v636_v13 = vld [vmem:[%s767_s29 + $0x62] sm:$0xff]  ;;  %v637_v33 = vld [vmem:[%s767_s29 + $0x72] sm:$0xff] }
  0x24   : > { %v366_v37 = vmul.f32 %v772_v6, %v616_v46  ;;  %v189_v48 = vmul.f32 %v615_v14, %v736_v0  ;;  %v218_v28 = vmul.f32 %v625_v22, %v742_v1  ;;  %v429_v49 = vadd.f32 %v421_v44, %v400_v40  ;;  %v617_v14 = vld [vmem:[%s767_s29 + $0x70] sm:$0xff] }
  0x25   : > { %v851_v47 = vadd.f32 %v843_v30, %v428_v36  ;;  %v401_v50 = vadd.f32 %v393_v62, %v372_v41  ;;  %v342_v51 = vadd.f32 %v334_v16, %v313_v42  ;;  %v285_v52 = vadd.f32 %v277_v24, %v254_v45  ;;  %v627_v24 = vld [vmem:[%s767_s29 + $0x71] sm:$0xff]  ;;  %v618_v42 = vld [vmem:[%s767_s29 + $0x80] sm:$0xff] }
  0x26   : > { %v226_v53 = vadd.f32 %v218_v28, %v189_v48  ;;  %v247_v54 = vmul.f32 %v635_v34, %v747_v2  ;;  %v278_v55 = vmul.f32 %v616_v46, %v752_v3  ;;  %v860_v56 = vadd.f32 %v843_v30, %v429_v49 }
  0x27   : > { %v643_v43 = vmul.f32 -1.442695, %v851_v47  ;;  %v430_v57 = vadd.f32 %v422_v63, %v401_v50  ;;  %v373_v58 = vadd.f32 %v365_v17, %v342_v51  ;;  %v314_v59 = vadd.f32 %v306_v38, %v285_v52  ;;  %v628_v52 = vld [vmem:[%s767_s29 + $0x81] sm:$0xff] }
  0x28   : > { %v395_v44 = vmul.f32 %v777_v7, %v626_v60  ;;  %v255_v61 = vadd.f32 %v247_v54, %v226_v53  ;;  %v307_v62 = vmul.f32 %v626_v60, %v757_v4  ;;  %v644_v9 = vmul.f32 -1.442695, %v860_v56 }
  0x29   : > { %663 = vpow2.f32 %v643_v43  ;;  %v867_v10 = vadd.f32 %v843_v30, %v430_v57  ;;  %v402_v11 = vadd.f32 %v394_v26, %v373_v58  ;;  %v343_v12 = vadd.f32 %v335_v39, %v314_v59 }
  0x2a   : > { %v424_v63 = vmul.f32 %v782_v8, %v636_v13  ;;  %v286_v15 = vadd.f32 %v278_v55, %v255_v61  ;;  %v336_v16 = vmul.f32 %v636_v13, %v762_v5  ;;  %v367_v17 = vmul.f32 %v772_v6, %v617_v14 }
  0x2b   : > { %665 = vpow2.f32 %v644_v9  ;;  %v645_v18 = vmul.f32 -1.442695, %v867_v10  ;;  %v431_v19 = vadd.f32 %v423_v27, %v402_v11  ;;  %v374_v20 = vadd.f32 %v366_v37, %v343_v12  ;;  %v619_v9 = vld [vmem:[%s767_s29 + $0x90] sm:$0xff] }
  0x2c   : > { %v315_v21 = vadd.f32 %v307_v62, %v286_v15  ;;  %v190_v22 = vmul.f32 %v616_v46, %v736_v0  ;;  %v219_v23 = vmul.f32 %v626_v60, %v742_v1  ;;  %v248_v25 = vmul.f32 %v636_v13, %v747_v2 }
  0x2d   : > { %667 = vpow2.f32 %v645_v18  ;;  %v879_v26 = vadd.f32 %v843_v30, %v431_v19  ;;  %v403_v29 = vadd.f32 %v395_v44, %v374_v20  ;;  %v396_v32 = vmul.f32 %v777_v7, %v627_v24  ;;  %v639_v20 = vld [vmem:[%s767_s29 + $0x92] sm:$0xff] }
  0x2e   : > { %v344_v31 = vadd.f32 %v336_v16, %v315_v21  ;;  %v227_v34 = vadd.f32 %v219_v23, %v190_v22  ;;  %v279_v35 = vmul.f32 %v617_v14, %v752_v3  ;;  %v425_v38 = vmul.f32 %v782_v8, %v637_v33  ;;  %v629_v16 = vld [vmem:[%s767_s29 + $0x91] sm:$0xff] }
  0x2f   : > { %v646_v36 = vmul.f32 -1.442695, %v879_v26  ;;  %v432_v27 = vadd.f32 %v424_v63, %v403_v29  ;;  %v308_v41 = vmul.f32 %v627_v24, %v757_v4  ;;  %v191_v45 = vmul.f32 %v617_v14, %v736_v0 }
  0x30   : > { %v375_v39 = vadd.f32 %v367_v17, %v344_v31  ;;  %v256_v40 = vadd.f32 %v248_v25, %v227_v34  ;;  %v220_v37 = vmul.f32 %v627_v24, %v742_v1  ;;  %v249_v48 = vmul.f32 %v637_v33, %v747_v2  ;;  %v638_v1 = vld [vmem:[%s767_s29 + $0x82] sm:$0xff] }
  0x31   : > { %669 = vpow2.f32 %v646_v36  ;;  %v891_v46 = vadd.f32 %v843_v30, %v432_v27  ;;  %v337_v51 = vmul.f32 %v637_v33, %v762_v5  ;;  %v280_v54 = vmul.f32 %v618_v42, %v752_v3 }
  0x32   : > { %v404_v49 = vadd.f32 %v396_v32, %v375_v39  ;;  %v287_v50 = vadd.f32 %v279_v35, %v256_v40  ;;  %v228_v0 = vadd.f32 %v220_v37, %v191_v45  ;;  %v368_v58 = vmul.f32 %v772_v6, %v618_v42 }
  0x33   : > { %v664_v28 = vpop.eup %663  ;;  %v647_v53 = vmul.f32 -1.442695, %v891_v46  ;;  %v397_v2 = vmul.f32 %v777_v7, %v628_v52  ;;  %v309_v44 = vmul.f32 %v628_v52, %v757_v4  ;;  %v426_v12 = vmul.f32 %v782_v8, %v638_v1 }
  0x34   : > { %v475_v43 = vadd.f32 1.0, %v664_v28  ;;  %v433_v55 = vadd.f32 %v425_v38, %v404_v49  ;;  %v316_v57 = vadd.f32 %v308_v41, %v287_v50  ;;  %v257_v60 = vadd.f32 %v249_v48, %v228_v0 }
  0x35   : > { %v666_v59 = vpop.eup %665  ;;  %v338_v14 = vmul.f32 %v638_v1, %v762_v5  ;;  %v369_v18 = vmul.f32 %v772_v6, %v619_v9  ;;  %v398_v23 = vmul.f32 %v777_v7, %v629_v16  ;;  %v427_v24 = vmul.f32 %v782_v8, %v639_v20 }
  0x36   : > { %671 = vrcp.f32 %v475_v43  ;;  %v476_v61 = vadd.f32 1.0, %v666_v59  ;;  %v904_v62 = vadd.f32 %v843_v30, %v433_v55  ;;  %v345_v3 = vadd.f32 %v337_v51, %v316_v57 }
  0x37   : > { %673 = vpow2.f32 %v647_v53  ;;  %v668_v11 = vpop.eup %667  ;;  %v288_v13 = vadd.f32 %v280_v54, %v257_v60 }
  0x38   : > { %675 = vrcp.f32 %v476_v61  ;;  %v477_v63 = vadd.f32 1.0, %v668_v11  ;;  %v648_v15 = vmul.f32 -1.442695, %v904_v62  ;;  %v376_v4 = vadd.f32 %v368_v58, %v345_v3 }
  0x39   : > { %v317_v17 = vadd.f32 %v309_v44, %v288_v13 }
  0x3a   : > { %677 = vrcp.f32 %v477_v63  ;;  %v405_v19 = vadd.f32 %v397_v2, %v376_v4 }
  0x3b   : > { %v670_v21 = vpop.eup %669  ;;  %679 = vpow2.f32 %v648_v15  ;;  %v346_v22 = vadd.f32 %v338_v14, %v317_v17 }
  0x3c   : > { %v478_v25 = vadd.f32 1.0, %v670_v21  ;;  %v434_v5 = vadd.f32 %v426_v12, %v405_v19 }
  0x3d   : > { %v377_v29 = vadd.f32 %v369_v18, %v346_v22 }
  0x3e   : > { %681 = vrcp.f32 %v478_v25  ;;  %v449_v31 = vadd.f32 %v843_v30, %v434_v5 }
  0x3f   : > { %v406_v6 = vadd.f32 %v398_v23, %v377_v29 }
  0x40   : > { %v672_v32 = vpop.eup %671  ;;  %v649_v34 = vmul.f32 -1.442695, %v449_v31 }
  0x41   : > { %v674_v7 = vpop.eup %673  ;;  %v499_v33 = vmul.f32 %v672_v32, %v851_v47  ;;  %v435_v8 = vadd.f32 %v427_v24, %v406_v6 }
  0x42   : > { %v479_v35 = vadd.f32 1.0, %v674_v7  ;;  %v676_v36 = vpop.eup %675  ;;  %683 = vpow2.f32 %v649_v34 }
  0x43   : > { %508 = vst.msk [vmem:[%s920_s16] sm:$0xff] %vm507_vm0, %v499_v33  ;;  %v500_v27 = vmul.f32 %v676_v36, %v860_v56  ;;  %v450_v38 = vadd.f32 %v843_v30, %v435_v8 }
  0x44   : > { %685 = vrcp.f32 %v479_v35  ;;  %v678_v39 = vpop.eup %677 }
  0x45   : > { %v680_v40 = vpop.eup %679  ;;  %509 = vst.msk [vmem:[%s920_s16 + $0x8] sm:$0xff] %vm507_vm0, %v500_v27  ;;  %v501_v47 = vmul.f32 %v678_v39, %v867_v10  ;;  %v650_v41 = vmul.f32 -1.442695, %v450_v38 }
  0x46   : > { %v480_v42 = vadd.f32 1.0, %v680_v40 }
  0x47   : > { %510 = vst.msk [vmem:[%s920_s16 + $0x10] sm:$0xff] %vm507_vm0, %v501_v47  ;;  %687 = vpow2.f32 %v650_v41 }
  0x48   : > { %v682_v45 = vpop.eup %681  ;;  %689 = vrcp.f32 %v480_v42 }
  0x49   : > { %v502_v56 = vmul.f32 %v682_v45, %v879_v26 }
  0x4b   : > { %511 = vst.msk [vmem:[%s920_s16 + $0x18] sm:$0xff] %vm507_vm0, %v502_v56 }
  0x4c   : > { %v684_v30 = vpop.eup %683 }
  0x4d   : > { %v481_v48 = vadd.f32 1.0, %v684_v30 }
  0x4e   : > { %v686_v37 = vpop.eup %685 }
  0x4f   : > { %v503_v28 = vmul.f32 %v686_v37, %v891_v46  ;;  %691 = vrcp.f32 %v481_v48 }
  0x51   : > { %512 = vst.msk [vmem:[%s920_s16 + $0x20] sm:$0xff] %vm507_vm0, %v503_v28  ;;  %v688_v10 = vpop.eup %687 }
  0x52   : > { %v690_v49 = vpop.eup %689  ;;  %v482_v50 = vadd.f32 1.0, %v688_v10 }
  0x53   : > { %v504_v51 = vmul.f32 %v690_v49, %v904_v62 }
  0x54   : > { %693 = vrcp.f32 %v482_v50 }
  0x55   : > { %513 = vst.msk [vmem:[%s920_s16 + $0x28] sm:$0xff] %vm507_vm0, %v504_v51 }
  0x59   : > { %v692_v26 = vpop.eup %691 }
  0x5a   : > { %v505_v52 = vmul.f32 %v692_v26, %v449_v31 }
  0x5c   : > { %514 = vst.msk [vmem:[%s920_s16 + $0x30] sm:$0xff] %vm507_vm0, %v505_v52 }
  0x5e   : > { %v694_v43 = vpop.eup %693 }
  0x5f   : > { %v506_v53 = vmul.f32 %v694_v43, %v450_v38 }
  0x61   : > { %515 = vst.msk [vmem:[%s920_s16 + $0x38] sm:$0xff] %vm507_vm0, %v506_v53 }
  0x62 PF: > { %s13_s12 = sadd.s32 1, %s701_s12  }
  0x63   : > { %p10_p4 = scmp.ge.s32.totalorder %s13_s12, 4  }
  0x65   :  { %12 = sbr.rel (!%p10_p4) target bundleno = 1 (0x1), region = 66 }

// kernel: es2d_forward.6
= control target key start
LH: loop header
LB: loop body
LE: loop exit
PB: predicated region body
PF: predicated region fallthrough
CT: control target
= control target key end

     0   :  { %s2180_s18 = smov 0   ;;  %s2182_s19 = smov 0   ;;  %s2839_s0 = inlined_call_operand.vmem [shape: f32[2,4,16,64], index: 0, kind: input, shape index: {}]   ;;  %s2840_s1 = inlined_call_operand.vmem [shape: f32[4,64,272], index: 1, kind: input, shape index: {}]   ;;  %s2841_s2 = inlined_call_operand.vmem [shape: f32[4,16,64], index: 2, kind: input, shape index: {}]   ;;  %s2842_s3 = inlined_call_operand.vmem [shape: f32[4,1,64], index: 3, kind: input, shape index: {}]   ;;  %s2843_s4 = inlined_call_operand.vmem [shape: f32[4,1,64], index: 4, kind: input, shape index: {}]   ;;  %s2844_s5 = inlined_call_operand.vmem [shape: f32[2,4,16,64], index: 5, kind: output, shape index: {}]  }
   0x1   :  { %s2184_s20 = smov 0   ;;  %s2186_s21 = smov 0  }
   0x2   :  { %s2188_s22 = smov 0  }
   0x3 LB: > { %s24_s23 = sadd.s32 1, %s2138_s20  ;;  %s27_s24 = sadd.s32 1, %s2142_s21  ;;  %s2146_s22 = sphi %s2188_s22, %s15_s22   ;;  %s2142_s21 = sphi %s2186_s21, %s2881_s21   ;;  %s2138_s20 = sphi %s2184_s20, %s2880_s20   ;;  %s2134_s19 = sphi %s2182_s19, %s2879_s19   ;;  %s2130_s18 = sphi %s2180_s18, %s2878_s18  }
   0x4   : > { %p25_p0 = scmp.ge.s32.totalorder %s24_s23, 2  ;;  %p1911_p1 = scmp.ge.s32.totalorder %s2146_s22, 1 }
   0x5   : > { %p243_p2 = scmp.lt.s32.totalorder %s2146_s22, 9 }
   0x6   : > { %s2883_s23 = smov (%p25_p0, %s24_s23), 0  ;;  %s2885_s24 = smov (!%p25_p0, %s27_s24), %s2142_s21 }
   0x7   : > { %p244_p3 = pnand %p1911_p1, %p243_p2  ;;  %p29_p4 = scmp.ge.s32.totalorder %s2885_s24, 4 }
   0x9   : > { %s2887_s24 = smov (%p29_p4, %s2885_s24), 0  ;;  %247 = sbr.rel (%p244_p3) target bundleno = 533 (0x215), region = 40 }
  0x10   : > { %p297_p5 = scmp.lt.s32.totalorder %s2134_s19, 3  ;;  %p295_p6 = scmp.lt.s32.totalorder %s2130_s18, 1  ;;  %v2148_v0 = vmov 0.0   ;;  %vm355_vm0 = vcmask 523264   ;;  %v583_v40 = vlaneseq  ;;  %vm561_vm1 = vcmask 130048  }
  0x11   : > { %426 = vmatprep.mubr.f32.mxu0 %v2148_v0  ;;  %vm1732_vm6 = vcmask 1041409   ;;  %vm1735_vm7 = vcmask 1042434   ;;  %vm1738_vm8 = vcmask 1043459   ;;  %vm1741_vm9 = vcmask 1044484  }
  0x12   : > { %s2889_s19 = smov (!%p297_p5, %s2134_s19), 3  ;;  %s2891_s18 = smov (!%p295_p6, %s2130_s18), 1  ;;  %v2272_v46 = vshrl.u32 %v583_v40, 7  ;;  %vm1744_vm10 = vcmask 1045509   ;;  %vm1747_vm11 = vcmask 1046534   ;;  %vm1750_vm12 = vcmask 1047559  }
  0x13   : > { %s1991_s25 = smul.u32 192, %s2889_s19  ;;  %s1912_s26 = sshll.u32 %s2889_s19, 1 }
  0x14   : > { %s1913_s27 = sshll.u32 %s2891_s18, 3  ;;  %s319_s13 = scalar_lea.vmem %s2843_s4, %s2889_s19  ;;  %v2280_v52 = vsub.s32 1, %v2272_v46  ;;  %v2286_v58 = vsub.s32 2, %v2272_v46  ;;  %v2289_v60 = vsub.s32 0, %v2272_v46  ;;  %v2293_v62 = vsub.s32 7, %v2272_v46 }
  0x15   : > { %s2218_s30 = scalar_lea.vmem %s2840_s1, %s1991_s25  ;;  %s2220_s6 = sadd.s32 %s1913_s27, %s1912_s26  ;;  %v1925_v39 = vld [vmem:[%s319_s13] ss:$0 sm:$0xff] }
  0x16   : > { %v332_v1 = vld [vmem:[%s2218_s30 + $0x8] sm:$0xff]  ;;  %v335_v2 = vld [vmem:[%s2218_s30 + $0x20] sm:$0xff]  ;;  %v333_v3 = vld [vmem:[%s2218_s30 + $0x10] sm:$0xff]  ;;  %s1914_s7 = sshll.u32 %s2220_s6, 3  ;;  %s1929_s14 = sshll.u32 %s2889_s19, 4 }
  0x17   : > { %v1959_v4 = vpack.c.bf16 %v335_v2, %v332_v1  ;;  %v336_v5 = vld [vmem:[%s2218_s30 + $0x28] sm:$0xff]  ;;  %v331_v6 = vld [vmem:[%s2218_s30] sm:$0xff]  ;;  %v334_v7 = vld [vmem:[%s2218_s30 + $0x18] sm:$0xff]  ;;  %s303_s10 = scalar_lea.vmem %s2839_s0, %s1914_s7  ;;  %s313_s17 = scalar_lea.vmem %s2841_s2, %s1929_s14 }
  0x18   : > { %v1975_v8 = vpack.c.bf16 %v336_v5, %v333_v3  ;;  %v1961_v9 = vpack.c.bf16 %v334_v7, %v331_v6  ;;  %v338_v10 = vld [vmem:[%s2218_s30 + $0x38] sm:$0xff]  ;;  %v341_v11 = vld [vmem:[%s2218_s30 + $0x50] sm:$0xff]  ;;  %v339_v12 = vld [vmem:[%s2218_s30 + $0x40] sm:$0xff]  ;;  %v2304_v5 = vsub.s32 4, %v2272_v46  ;;  %s316_s26 = scalar_lea.vmem %s2842_s3, %s2889_s19  ;;  %s2760_s28 = scalar_lea.vmem %s2844_s5, %s1914_s7 }
  0x19   : > { %1960 = vmatprep.subr.bf16.mxu0 %v1959_v4  ;;  %v1963_v13 = vpack.c.bf16 %v341_v11, %v338_v10  ;;  %v342_v14 = vld [vmem:[%s2218_s30 + $0x58] sm:$0xff]  ;;  %v337_v15 = vld [vmem:[%s2218_s30 + $0x30] sm:$0xff]  ;;  %v340_v16 = vld [vmem:[%s2218_s30 + $0x48] sm:$0xff]  ;;  %v2308_v10 = vsub.s32 5, %v2272_v46 }
  0x1a   : > { %1976 = vmatprep.subr.bf16.mxu1 %v1975_v8  ;;  %1962 = vmatpush1.bf16.msra.mxu0 %v1961_v9  ;;  %v1979_v17 = vpack.c.bf16 %v342_v14, %v339_v12  ;;  %v1965_v18 = vpack.c.bf16 %v340_v16, %v337_v15  ;;  %v344_v19 = vld [vmem:[%s2218_s30 + $0x68] sm:$0xff]  ;;  %v347_v20 = vld [vmem:[%s2218_s30 + $0x80] sm:$0xff]  ;;  %v345_v21 = vld [vmem:[%s2218_s30 + $0x70] sm:$0xff]  ;;  %v2312_v15 = vsub.s32 6, %v2272_v46 }
  0x1b   : > { %1978 = vmatpush3.bf16.msra.mxu1 %v1975_v8  ;;  %1964 = vmatprep.subr.bf16.mxu0 %v1963_v13  ;;  %v1967_v22 = vpack.c.bf16 %v347_v20, %v344_v19  ;;  %v348_v23 = vld [vmem:[%s2218_s30 + $0x88] sm:$0xff]  ;;  %v343_v24 = vld [vmem:[%s2218_s30 + $0x60] sm:$0xff]  ;;  %v346_v25 = vld [vmem:[%s2218_s30 + $0x78] sm:$0xff] }
  0x1c   : > { %1980 = vmatprep.subr.bf16.mxu1 %v1979_v17  ;;  %v1983_v26 = vpack.c.bf16 %v348_v23, %v345_v21  ;;  %v350_v27 = vld [vmem:[%s2218_s30 + $0x98] sm:$0xff]  ;;  %v353_v28 = vld [vmem:[%s2218_s30 + $0xb0] sm:$0xff]  ;;  %v351_v29 = vld [vmem:[%s2218_s30 + $0xa0] sm:$0xff]  ;;  %v1969_v31 = vpack.c.bf16 %v346_v25, %v343_v24 }
  0x1d   : > { %v354_v30 = vld [vmem:[%s2218_s30 + $0xb8] sm:$0xff]  ;;  %v2250_v32 = vld [vmem:[%s303_s10] sm:$0xff]  ;;  %v1971_v33 = vpack.c.bf16 %v353_v28, %v350_v27  ;;  %v349_v34 = vld [vmem:[%s2218_s30 + $0x90] sm:$0xff] }
  0x1e   : > { %1966 = vmatpush1.bf16.msra.mxu0 %v1965_v18  ;;  %v352_v35 = vld [vmem:[%s2218_s30 + $0xa8] sm:$0xff]  ;;  %v1987_v36 = vpack.c.bf16 %v354_v30, %v351_v29  ;;  %1956 = vmatprep.mubr.msk.f32.mxu1 %vm355_vm0, %v2250_v32 }
  0x1f   : > { %1982 = vmatpush3.bf16.msra.mxu1 %v1979_v17  ;;  %1968 = vmatprep.subr.bf16.mxu0 %v1967_v22  ;;  %v1973_v37 = vpack.c.bf16 %v352_v35, %v349_v34  ;;  %v2256_v38 = vld [vmem:[%s303_s10 + $0x8] sm:$0xff] }
  0x20   : > { %1984 = vmatprep.subr.bf16.mxu1 %v1983_v26 }
  0x22   : > { %1970 = vmatpush1.bf16.msra.mxu0 %v1969_v31 }
  0x23   : > { %1986 = vmatpush3.bf16.msra.mxu1 %v1983_v26  ;;  %1972 = vmatprep.subr.bf16.mxu0 %v1971_v33 }
  0x24   : > { %1988 = vmatprep.subr.bf16.mxu1 %v1987_v36 }
  0x26   : > { %1974 = vmatpush1.bf16.msra.mxu0 %v1973_v37 }
  0x27   : > { %1990 = vmatpush3.bf16.msra.mxu1 %v1987_v36 }
  0x29   : > { %1921 = vmatmul.mubr.msk.f32.vlgmr.msra.gmra.mrb[0].mxu0 %vm355_vm0, %v2250_v32 }
  0x2a   : > { %1957 = vmatmul.mubr.msk.f32.vlgmr.msra.gmra.mrb[0].mxu1 %vm355_vm0, %v2256_v38  ;;  %432 = vmatprep.mubr.f32.mxu0 %v2148_v0  ;;  %v2297_v0 = vsub.s32 3, %v2272_v46 }
  0x2d   : > { %1922 = vmatmul.mubr.msk.f32.gmra.mrb[2].mxu0 %vm355_vm0, %v2256_v38 }
  0xfc   : > { %v428_v41 = vpop.f32.mrb[0].mxu0 }
  0xfd   : > { %v2269_v42 = vadd.f32 %v1925_v39, %v428_v41  ;;  %v1958_v43 = vpop.f32.mrb[0].mxu1  ;;  %v430_v44 = vpop.f32.mrb[1].mxu0  ;;  %v2149_v41 = vmov 1966171168  }
  0xfe   : > { %565 = vst.msk [vmem:[#allocation4 + $0x8] sm:$0xff] %vm561_vm1, %v1958_v43  ;;  %v505_v45 = vpop.f32.mrb[1].mxu1  ;;  %562 = vst.msk [vmem:[#allocation3] sm:$0xff] %vm561_vm1, %v430_v44 }
  0xff   : > { %v529_v47 = vand.u32 2147483647, %v2269_v42  ;;  %564 = vst.msk [vmem:[#allocation4] sm:$0xff] %vm561_vm1, %v505_v45  ;;  %v523_v22 = vmax.f32 %v2269_v42, 0.0  ;;  %vm525_vm3 = vcmp.ne.f32.partialorder %v2269_v42, %v2269_v42 }
 0x100   : > { %v434_v48 = vpop.f32.mrb[2].mxu0 }
 0x101   : > { %v531_v49 = vsub.f32 0.0, %v529_v47  ;;  %v2277_v50 = vadd.f32 %v1925_v39, %v434_v48  ;;  %v436_v51 = vpop.f32.mrb[3].mxu0 }
 0x102   : > { %563 = vst.msk [vmem:[#allocation3 + $0x8] sm:$0xff] %vm561_vm1, %v436_v51 }
 0x103   : > { %v533_v53 = vmul.f32 1.442695, %v531_v49  ;;  %v530_v54 = vand.u32 2147483647, %v2277_v50  ;;  %v524_v30 = vmax.f32 %v2277_v50, 0.0  ;;  %vm526_vm5 = vcmp.ne.f32.partialorder %v2277_v50, %v2277_v50 }
 0x105   : > { %2036 = vpow2.f32 %v533_v53  ;;  %v576_v55 = vld [vmem:[#allocation4 + $0x8] sm:$0xff]  ;;  %v532_v56 = vsub.f32 0.0, %v530_v54  ;;  %v573_v18 = vld [vmem:[#allocation3] sm:$0xff] }
 0x106   : > { %v1409_v57 = vrot.slane %v576_v55, %v2280_v52  ;;  %v1420_v61 = vrot.slane %v576_v55, %v2286_v58  ;;  %v1398_v63 = vrot.slane %v576_v55, %v2289_v60  ;;  %v2300_v1 = vrot.slane %v576_v55, %v2293_v62  ;;  %v575_v51 = vld [vmem:[#allocation4] sm:$0xff] }
 0x107   : > { %v535_v59 = vmul.f32 1.442695, %v532_v56  ;;  %v1431_v4 = vrot.slane %v576_v55, %v2297_v0  ;;  %v1442_v9 = vrot.slane %v576_v55, %v2304_v5  ;;  %v1453_v14 = vrot.slane %v576_v55, %v2308_v10 }
 0x108   : > { %1415 = vbcast.lane.b32.xlu1 %v1409_v57, 264  ;;  %1411 = vbcast.lane.b32.xlu0 %v1409_v57, 256  ;;  %v1464_v23 = vrot.slane %v576_v55, %v2312_v15  ;;  %v867_v25 = vrot.slane %v573_v18, %v2280_v52  ;;  %v856_v27 = vrot.slane %v573_v18, %v2289_v60 }
 0x109   : > { %2038 = vpow2.f32 %v535_v59  ;;  %v878_v37 = vrot.slane %v573_v18, %v2286_v58  ;;  %v889_v39 = vrot.slane %v573_v18, %v2297_v0  ;;  %v900_v40 = vrot.slane %v573_v18, %v2304_v5 }
 0x10a   : > { %v911_v43 = vrot.slane %v573_v18, %v2308_v10  ;;  %v922_v47 = vrot.slane %v573_v18, %v2312_v15  ;;  %v1321_v54 = vrot.slane %v575_v51, %v2280_v52  ;;  %v1332_v57 = vrot.slane %v575_v51, %v2286_v58 }
 0x10c   : > { %1426 = vbcast.lane.b32.xlu1 %v1420_v61, 264  ;;  %1422 = vbcast.lane.b32.xlu0 %v1420_v61, 256  ;;  %v1310_v61 = vrot.slane %v575_v51, %v2289_v60 }
 0x10f   : > { %v2037_v2 = vpop.eup %2036 }
 0x110   : > { %v537_v3 = vadd.f32 1.0, %v2037_v2  ;;  %1404 = vbcast.lane.b32.xlu1 %v1398_v63, 264  ;;  %1400 = vbcast.lane.b32.xlu0 %v1398_v63, 256  ;;  %v540_v6 = vmul.f32 -0.5, %v2037_v2  ;;  %v543_v12 = vand.u32 2147483647, %v2037_v2 }
 0x112   : > { %2040 = vlog2.f32 %v537_v3  ;;  %v541_v11 = vadd.f32 1.0, %v540_v6  ;;  %vm544_vm2 = vcmp.lt.f32.partialorder %v543_v12, 0.0004427343  ;;  %v1365_v12 = vrot.slane %v575_v51, %v2308_v10 }
 0x113   : > { %v2039_v7 = vpop.eup %2038 }
 0x114   : > { %1437 = vbcast.lane.b32.xlu1 %v1431_v4, 264  ;;  %1433 = vbcast.lane.b32.xlu0 %v1431_v4, 256  ;;  %v546_v8 = vadd.f32 1.0, %v2039_v7  ;;  %v549_v13 = vmul.f32 -0.5, %v2039_v7  ;;  %v542_v16 = vmul.f32 %v2037_v2, %v541_v11  ;;  %v552_v21 = vand.u32 2147483647, %v2039_v7 }
 0x115   : > { %v1343_v4 = vrot.slane %v575_v51, %v2297_v0 }
 0x116   : > { %2042 = vlog2.f32 %v546_v8  ;;  %v550_v19 = vadd.f32 1.0, %v549_v13  ;;  %vm553_vm4 = vcmp.lt.f32.partialorder %v552_v21, 0.0004427343  ;;  %v2377_v13 = vld [vmem:[%s313_s17] sm:$0xff]  ;;  %v574_v21 = vld [vmem:[#allocation3 + $0x8] sm:$0xff] }
 0x118   : > { %1448 = vbcast.lane.b32.xlu1 %v1442_v9, 264  ;;  %1444 = vbcast.lane.b32.xlu0 %v1442_v9, 256  ;;  %v551_v28 = vmul.f32 %v2039_v7, %v550_v19  ;;  %v1354_v7 = vrot.slane %v575_v51, %v2304_v5  ;;  %v2372_v9 = vld [vmem:[%s313_s17 + $0x8] sm:$0xff] }
 0x11c   : > { %v2041_v17 = vpop.eup %2040  ;;  %1459 = vbcast.lane.b32.xlu1 %v1453_v14, 264  ;;  %1455 = vbcast.lane.b32.xlu0 %v1453_v14, 256 }
 0x11d   : > { %v539_v20 = vmul.f32 0.6931472, %v2041_v17 }
 0x11f   : > { %v545_v24 = vsel %vm544_vm2, %v542_v16, %v539_v20 }
 0x120   : > { %v555_v26 = vadd.f32 %v545_v24, %v523_v22  ;;  %1470 = vbcast.lane.b32.xlu1 %v1464_v23, 264  ;;  %1466 = vbcast.lane.b32.xlu0 %v1464_v23, 256  ;;  %v2043_v29 = vpop.eup %2042  ;;  %v1387_v22 = vrot.slane %v575_v51, %v2293_v62  ;;  %v944_v23 = vrot.slane %v574_v21, %v2289_v60 }
 0x121   : > { %v548_v33 = vmul.f32 0.6931472, %v2043_v29  ;;  %v955_v24 = vrot.slane %v574_v21, %v2280_v52  ;;  %v999_v29 = vrot.slane %v574_v21, %v2308_v10  ;;  %v1021_v10 = vrot.slane %v574_v21, %v2293_v62 }
 0x122   : > { %v557_v31 = vsel %vm525_vm3, %v2269_v42, %v555_v26  ;;  %v581_v42 = vunpack.c.l.s4 %v2149_v41  ;;  %v977_v26 = vrot.slane %v574_v21, %v2297_v0 }
 0x123   : > { %559 = vst.msk [vmem:[#allocation2] sm:$0xff] %vm355_vm0, %v557_v31  ;;  %v554_v34 = vsel %vm553_vm4, %v551_v28, %v548_v33  ;;  %v1010_v31 = vrot.slane %v574_v21, %v2312_v15 }
 0x124   : > { %869 = vbcast.lane.b32.xlu1 %v867_v25, 256  ;;  %858 = vbcast.lane.b32.xlu0 %v856_v27, 256  ;;  %v556_v35 = vadd.f32 %v554_v34, %v524_v30  ;;  %v582_v44 = vunpack.c.0.s8 %v581_v42 }
 0x126   : > { %v558_v36 = vsel %vm526_vm5, %v2277_v50, %v556_v35  ;;  %v2337_v49 = vsub.s32 %v582_v44, %v2272_v46  ;;  %v933_v50 = vrot.slane %v573_v18, %v2293_v62  ;;  %v1376_v18 = vrot.slane %v575_v51, %v2312_v15 }
 0x127   : > { %560 = vst.msk [vmem:[#allocation2 + $0x8] sm:$0xff] %vm355_vm0, %v558_v36 }
 0x128   : > { %873 = vbcast.lane.b32.xlu1 %v867_v25, 264  ;;  %862 = vbcast.lane.b32.xlu0 %v856_v27, 264  ;;  %v966_v25 = vrot.slane %v574_v21, %v2286_v58  ;;  %v988_v27 = vrot.slane %v574_v21, %v2304_v5  ;;  %v1926_v21 = vld [vmem:[%s316_s26] ss:$0 sm:$0xff] }
 0x12a   : > { %v569_v28 = vld [vmem:[#allocation2] sm:$0xff] }
 0x12b   : > { %v586_v30 = vrot.slane %v569_v28, %v2337_v49  ;;  %v1029_v62 = vmul.f32 %v569_v28, %v2250_v32  ;;  %v579_v51 = vcombine.high %v569_v28, %v569_v28 }
 0x12c   : > { %884 = vbcast.lane.b32.xlu1 %v878_v37, 264  ;;  %880 = vbcast.lane.b32.xlu0 %v878_v37, 256 }
 0x12d   : > { %v602_v0 = vrot.slane %v586_v30, %v2337_v49  ;;  %v594_v5 = vcombine.high %v586_v30, %v586_v30 }
 0x12e   : > { %v2331_v45 = vld [vmem:[#allocation2 + $0x8] sm:$0xff] }
 0x12f   : > { %v628_v48 = vcombine.high %v2331_v45, %v2331_v45  ;;  %v2344_v56 = vmul.f32 %v2256_v38, %v2331_v45  ;;  %v680_v35 = vrot.slane %v602_v0, %v2289_v60  ;;  %v616_v36 = vrot.slane %v594_v5, %v2337_v49 }
 0x130   : > { %895 = vbcast.lane.b32.xlu1 %v889_v39, 264  ;;  %891 = vbcast.lane.b32.xlu0 %v889_v39, 256 }
 0x131   : > { %v642_v53 = vrot.slane %v628_v48, %v2337_v49  ;;  %v2352_v59 = vrot.slane %v2344_v56, %v2337_v49  ;;  %v757_v39 = vmul.f32 %v680_v35, %v2377_v13  ;;  %v758_v44 = vmul.f32 %v680_v35, %v2372_v9 }
 0x132   : > { %v2461_v35 = vmul.f32 %v1926_v21, %v2256_v38 }
 0x133   : > { %v644_v55 = vcombine.high %v642_v53, %v642_v53  ;;  %v1097_v63 = vcombine.high %v2352_v59, %v2352_v59  ;;  %v2358_v2 = vrot.slane %v642_v53, %v2337_v49 }
 0x134   : > { %906 = vbcast.lane.b32.xlu1 %v900_v40, 264  ;;  %902 = vbcast.lane.b32.xlu0 %v900_v40, 256  ;;  %v684_v40 = vrot.slane %v616_v36, %v2289_v60 }
 0x135   : > { %v2347_v46 = vrot.slane %v644_v55, %v2337_v49  ;;  %v2361_v3 = vrot.slane %v1097_v63, %v2337_v49  ;;  %v674_v6 = vcombine.high %v2358_v2, %v2358_v2  ;;  %v1033_v55 = vcombine.high %v1029_v62, %v1029_v62 }
 0x136   : > { %v759_v48 = vmul.f32 %v684_v40, %v2377_v13 }
 0x137   : > { %v736_v8 = vrot.slane %v674_v6, %v2289_v60  ;;  %v676_v11 = vcombine.high %v2347_v46, %v2347_v46  ;;  %v593_v6 = vrot.slane %v579_v51, %v2337_v49 }
 0x138   : > { %917 = vbcast.lane.b32.xlu1 %v911_v43, 264  ;;  %913 = vbcast.lane.b32.xlu0 %v911_v43, 256  ;;  %v789_v43 = vmul.f32 1.442695, %v757_v39  ;;  %v793_v63 = vmul.f32 1.442695, %v759_v48 }
 0x139   : > { %v2380_v14 = vmul.f32 %v736_v8, %v2372_v9  ;;  %v2383_v16 = vmul.f32 %v736_v8, %v2377_v13  ;;  %v740_v17 = vrot.slane %v676_v11, %v2289_v60 }
 0x13a   : > { %2044 = vpow2.f32 %v789_v43 }
 0x13b   : > { %v2388_v19 = vmul.f32 %v740_v17, %v2372_v9  ;;  %v2391_v20 = vmul.f32 %v740_v17, %v2377_v13  ;;  %v626_v17 = vcombine.high %v616_v36, %v616_v36 }
 0x13c   : > { %928 = vbcast.lane.b32.xlu1 %v922_v47, 264  ;;  %924 = vbcast.lane.b32.xlu0 %v922_v47, 256  ;;  %v624_v47 = vcombine.high %v602_v0, %v602_v0 }
 0x13d   : > { %v692_v5 = vrot.slane %v626_v17, %v2289_v60 }
 0x140   : > { %939 = vbcast.lane.b32.xlu1 %v933_v50, 264  ;;  %935 = vbcast.lane.b32.xlu0 %v933_v50, 256  ;;  %v1040_v50 = vrot.slane %v1029_v62, %v2337_v49 }
 0x142   : > { %v1056_v11 = vrot.slane %v1040_v50, %v2337_v49 }
 0x144   : > { %1327 = vbcast.lane.b32.xlu1 %v1321_v54, 264  ;;  %1323 = vbcast.lane.b32.xlu0 %v1321_v54, 256  ;;  %v791_v54 = vmul.f32 1.442695, %v758_v44  ;;  %v1134_v62 = vrot.slane %v1056_v11, %v2289_v60 }
 0x146   : > { %2046 = vpow2.f32 %v791_v54 }
 0x147   : > { %2048 = vpow2.f32 %v793_v63 }
 0x148   : > { %1338 = vbcast.lane.b32.xlu1 %v1332_v57, 264  ;;  %1334 = vbcast.lane.b32.xlu0 %v1332_v57, 256  ;;  %v688_v57 = vrot.slane %v624_v47, %v2289_v60 }
 0x14c   : > { %1316 = vbcast.lane.b32.xlu1 %v1310_v61, 264  ;;  %1312 = vbcast.lane.b32.xlu0 %v1310_v61, 256  ;;  %v760_v61 = vmul.f32 %v684_v40, %v2372_v9 }
 0x150   : > { %1349 = vbcast.lane.b32.xlu1 %v1343_v4, 264  ;;  %1345 = vbcast.lane.b32.xlu0 %v1343_v4, 256  ;;  %v1048_v4 = vcombine.high %v1040_v50, %v1040_v50 }
 0x154   : > { %1360 = vbcast.lane.b32.xlu1 %v1354_v7, 264  ;;  %1356 = vbcast.lane.b32.xlu0 %v1354_v7, 256 }
 0x158   : > { %1371 = vbcast.lane.b32.xlu1 %v1365_v12, 264  ;;  %1367 = vbcast.lane.b32.xlu0 %v1365_v12, 256  ;;  %v1047_v12 = vrot.slane %v1033_v55, %v2337_v49 }
 0x15a   : > { %v1063_v30 = vrot.slane %v1047_v12, %v2337_v49  ;;  %v1049_v36 = vcombine.high %v1047_v12, %v1047_v12 }
 0x15c   : > { %1382 = vbcast.lane.b32.xlu1 %v1376_v18, 264  ;;  %1378 = vbcast.lane.b32.xlu0 %v1376_v18, 256  ;;  %v761_v18 = vmul.f32 %v688_v57, %v2377_v13  ;;  %v1079_v51 = vcombine.high %v1063_v30, %v1063_v30  ;;  %v2472_v63 = vrot.slane %v1063_v30, %v2289_v60 }
 0x15e   : > { %v797_v0 = vmul.f32 1.442695, %v761_v18  ;;  %v635_v18 = vrot.slane %v2331_v45, %v2337_v49 }
 0x160   : > { %1393 = vbcast.lane.b32.xlu1 %v1387_v22, 264  ;;  %1389 = vbcast.lane.b32.xlu0 %v1387_v22, 256  ;;  %v795_v22 = vmul.f32 1.442695, %v760_v61 }
 0x162   : > { %2050 = vpow2.f32 %v795_v22 }
 0x163   : > { %2052 = vpow2.f32 %v797_v0 }
 0x164   : > { %950 = vbcast.lane.b32.xlu1 %v944_v23, 264  ;;  %946 = vbcast.lane.b32.xlu0 %v944_v23, 256  ;;  %v762_v23 = vmul.f32 %v688_v57, %v2372_v9  ;;  %v763_v57 = vmul.f32 %v692_v5, %v2377_v13 }
 0x166   : > { %v799_v39 = vmul.f32 1.442695, %v762_v23 }
 0x168   : > { %961 = vbcast.lane.b32.xlu1 %v955_v24, 264  ;;  %957 = vbcast.lane.b32.xlu0 %v955_v24, 256  ;;  %v1070_v24 = vrot.slane %v1048_v4, %v2337_v49  ;;  %v1077_v4 = vrot.slane %v1049_v36, %v2337_v49  ;;  %2054 = vpow2.f32 %v799_v39 }
 0x16a   : > { %v1138_v40 = vrot.slane %v1070_v24, %v2289_v60  ;;  %v1080_v50 = vcombine.high %v1070_v24, %v1070_v24  ;;  %v2491_v45 = vrot.slane %v1077_v4, %v2289_v60 }
 0x16c   : > { %972 = vbcast.lane.b32.xlu1 %v966_v25, 264  ;;  %968 = vbcast.lane.b32.xlu0 %v966_v25, 256  ;;  %v609_v25 = vrot.slane %v593_v6, %v2337_v49  ;;  %v2482_v24 = vrot.slane %v1080_v50, %v2289_v60 }
 0x16e   : > { %v625_v44 = vcombine.high %v609_v25, %v609_v25  ;;  %v696_v38 = vrot.slane %v609_v25, %v2289_v60  ;;  %v2485_v25 = vrot.slane %v1079_v51, %v2289_v60 }
 0x170   : > { %983 = vbcast.lane.b32.xlu1 %v977_v26, 264  ;;  %979 = vbcast.lane.b32.xlu0 %v977_v26, 256  ;;  %v595_v26 = vcombine.high %v593_v6, %v593_v6  ;;  %v764_v6 = vmul.f32 %v692_v5, %v2372_v9  ;;  %v704_v12 = vrot.slane %v625_v44, %v2289_v60 }
 0x171   : > { %v765_v44 = vmul.f32 %v696_v38, %v2377_v13 }
 0x172   : > { %v623_v43 = vrot.slane %v595_v26, %v2337_v49  ;;  %v766_v26 = vmul.f32 %v696_v38, %v2372_v9  ;;  %v803_v39 = vmul.f32 1.442695, %v764_v6  ;;  %v770_v50 = vmul.f32 %v704_v12, %v2372_v9 }
 0x174   : > { %994 = vbcast.lane.b32.xlu1 %v988_v27, 264  ;;  %990 = vbcast.lane.b32.xlu0 %v988_v27, 256  ;;  %v627_v17 = vcombine.high %v623_v43, %v623_v43 }
 0x176   : > { %v708_v51 = vrot.slane %v627_v17, %v2289_v60  ;;  %v805_v17 = vmul.f32 1.442695, %v765_v44 }
 0x178   : > { %1005 = vbcast.lane.b32.xlu1 %v999_v29, 264  ;;  %1001 = vbcast.lane.b32.xlu0 %v999_v29, 256  ;;  %v1078_v29 = vcombine.high %v1056_v11, %v1056_v11  ;;  %v771_v44 = vmul.f32 %v708_v51, %v2377_v13 }
 0x17a   : > { %v2401_v52 = vpop.permute.xlu1 %1415  ;;  %v2403_v58 = vpop.permute.xlu0 %1411  ;;  %v2467_v48 = vrot.slane %v1078_v29, %v2289_v60  ;;  %v700_v29 = vrot.slane %v623_v43, %v2289_v60 }
 0x17c   : > { %1016 = vbcast.lane.b32.xlu1 %v1010_v31, 264  ;;  %1012 = vbcast.lane.b32.xlu0 %v1010_v31, 256  ;;  %v2457_v31 = vmul.f32 %v1926_v21, %v2250_v32 }
 0x17e   : > { %v2407_v33 = vpop.permute.xlu1 %1426  ;;  %v2409_v34 = vpop.permute.xlu0 %1422 }
 0x17f   : > { %2846 = vst [vmem:[#allocation5_spill] sm:$0xff] %v2409_v34 }
 0x180   : > { %1027 = vbcast.lane.b32.xlu1 %v1021_v10, 264  ;;  %1023 = vbcast.lane.b32.xlu0 %v1021_v10, 256  ;;  %v2045_v10 = vpop.eup %2044 }
 0x181   : > { %v1243_v54 = vmul.f32 0.0, %v2045_v10  ;;  %v2047_v61 = vpop.eup %2046  ;;  %v801_v10 = vmul.f32 1.442695, %v763_v57  ;;  %v807_v57 = vmul.f32 1.442695, %v766_v26  ;;  %v772_v26 = vmul.f32 %v708_v51, %v2372_v9 }
 0x182   : > { %v2414_v37 = vpop.permute.xlu1 %1404  ;;  %v2416_v15 = vpop.permute.xlu0 %1400  ;;  %v1244_v30 = vmul.f32 0.0, %v2047_v61 }
 0x183   : > { %v2049_v21 = vpop.eup %2048  ;;  %2056 = vpow2.f32 %v801_v10 }
 0x184   : > { %1481 = vbcast.lane.b32.xlu1 %v2300_v1, 264  ;;  %1477 = vbcast.lane.b32.xlu0 %v2300_v1, 256  ;;  %v2051_v43 = vpop.eup %2050  ;;  %2058 = vpow2.f32 %v803_v39 }
 0x185   : > { %2060 = vpow2.f32 %v807_v57 }
 0x186   : > { %v2423_v41 = vpop.permute.xlu1 %1437  ;;  %v2425_v42 = vpop.permute.xlu0 %1433  ;;  %2062 = vpow2.f32 %v805_v17 }
 0x187   : > { %2847 = vst [vmem:[#allocation6_spill] sm:$0xff] %v2423_v41  ;;  %2848 = vst [vmem:[#allocation7_spill] sm:$0xff] %v2425_v42 }
 0x18a   : > { %v2430_v53 = vpop.permute.xlu1 %1448  ;;  %v2432_v1 = vpop.permute.xlu0 %1444 }
 0x18b   : > { %2849 = vst [vmem:[#allocation8_spill] sm:$0xff] %v2430_v53  ;;  %2850 = vst [vmem:[#allocation9_spill] sm:$0xff] %v2432_v1 }
 0x18e   : > { %v2441_v7 = vpop.permute.xlu1 %1459  ;;  %v2443_v8 = vpop.permute.xlu0 %1455 }
 0x18f   : > { %2851 = vst [vmem:[#allocation10_spill] sm:$0xff] %v2441_v7  ;;  %2852 = vst [vmem:[#allocation11_spill] sm:$0xff] %v2443_v8 }
 0x192   : > { %v2451_v27 = vpop.permute.xlu1 %1470  ;;  %v2453_v28 = vpop.permute.xlu0 %1466 }
 0x193   : > { %2853 = vst [vmem:[#allocation12_spill] sm:$0xff] %v2451_v27  ;;  %2854 = vst [vmem:[#allocation13_spill] sm:$0xff] %v2453_v28  ;;  %v2053_v28 = vpop.eup %2052 }
 0x196   : > { %v870_v47 = vpop.permute.xlu1 %869  ;;  %v859_v32 = vpop.permute.xlu0 %858 }
 0x197   : > { %v1211_v55 = vmul.f32 %v1134_v62, %v859_v32  ;;  %v1213_v36 = vmul.f32 %v1138_v40, %v870_v47  ;;  %v768_v47 = vmul.f32 %v700_v29, %v2372_v9 }
 0x199   : > { %v2476_v11 = vadd.f32 %v1243_v54, %v1211_v55  ;;  %v643_v54 = vcombine.high %v635_v18, %v635_v18 }
 0x19a   : > { %v874_v22 = vpop.permute.xlu1 %873  ;;  %v863_v23 = vpop.permute.xlu0 %862 }
 0x19b   : > { %v1212_v0 = vmul.f32 %v1134_v62, %v863_v23  ;;  %v1247_v5 = vmul.f32 %v2049_v21, %v2476_v11  ;;  %v651_v21 = vrot.slane %v635_v18, %v2337_v49  ;;  %v1214_v6 = vmul.f32 %v1138_v40, %v874_v22  ;;  %v2055_v18 = vpop.eup %2054 }
 0x19c   : > { %v767_v23 = vmul.f32 %v700_v29, %v2377_v13 }
 0x19d   : > { %v2494_v32 = vadd.f32 %v1244_v30, %v1212_v0  ;;  %v2498_v61 = vadd.f32 %v1247_v5, %v1213_v36  ;;  %v1081_v30 = vcombine.high %v1077_v4, %v1077_v4  ;;  %v769_v0 = vmul.f32 %v704_v12, %v2377_v13 }
 0x19e   : > { %v885_v55 = vpop.permute.xlu1 %884  ;;  %v881_v62 = vpop.permute.xlu0 %880  ;;  %v815_v5 = vmul.f32 1.442695, %v770_v50  ;;  %v665_v36 = vrot.slane %v643_v54, %v2337_v49  ;;  %v811_v4 = vmul.f32 1.442695, %v768_v47  ;;  %v712_v39 = vrot.slane %v651_v21, %v2289_v60 }
 0x19f   : > { %v1248_v38 = vmul.f32 %v2051_v43, %v2494_v32  ;;  %v1215_v40 = vmul.f32 %v2467_v48, %v881_v62  ;;  %v1251_v29 = vmul.f32 %v2053_v28, %v2498_v61  ;;  %v809_v12 = vmul.f32 1.442695, %v767_v23 }
 0x1a0   : > { %v673_v43 = vcombine.high %v651_v21, %v651_v21  ;;  %v2514_v50 = vrot.slane %v1081_v30, %v2289_v60  ;;  %2064 = vpow2.f32 %v815_v5  ;;  %v819_v62 = vmul.f32 1.442695, %v772_v26 }
 0x1a1   : > { %v2505_v27 = vadd.f32 %v1248_v38, %v1214_v6  ;;  %v813_v6 = vmul.f32 1.442695, %v769_v0  ;;  %v675_v38 = vcombine.high %v665_v36, %v665_v36  ;;  %v716_v28 = vrot.slane %v665_v36, %v2289_v60 }
 0x1a2   : > { %v896_v22 = vpop.permute.xlu1 %895  ;;  %v892_v10 = vpop.permute.xlu0 %891  ;;  %v1216_v47 = vmul.f32 %v2467_v48, %v885_v55  ;;  %v2521_v23 = vadd.f32 %v1251_v29, %v1215_v40  ;;  %2066 = vpow2.f32 %v811_v4  ;;  %v774_v51 = vmul.f32 %v712_v39, %v2372_v9 }
 0x1a3   : > { %v1252_v54 = vmul.f32 %v2055_v18, %v2505_v27  ;;  %2068 = vpow2.f32 %v809_v12  ;;  %v817_v21 = vmul.f32 1.442695, %v771_v44  ;;  %v773_v30 = vmul.f32 %v712_v39, %v2377_v13  ;;  %v2057_v55 = vpop.eup %2056 }
 0x1a4   : > { %v720_v17 = vrot.slane %v673_v43, %v2289_v60  ;;  %2070 = vpow2.f32 %v813_v6  ;;  %v1105_v48 = vrot.slane %v2352_v59, %v2337_v49  ;;  %v776_v26 = vmul.f32 %v716_v28, %v2372_v9  ;;  %v2059_v40 = vpop.eup %2058 }
 0x1a5   : > { %v2527_v5 = vadd.f32 %v1252_v54, %v1216_v47  ;;  %2072 = vpow2.f32 %v819_v62  ;;  %v775_v36 = vmul.f32 %v716_v28, %v2377_v13  ;;  %v724_v18 = vrot.slane %v675_v38, %v2289_v60  ;;  %v2061_v47 = vpop.eup %2060 }
 0x1a6   : > { %v2519_v8 = vpop.permute.xlu1 %906  ;;  %v903_v57 = vpop.permute.xlu0 %902  ;;  %v1217_v29 = vmul.f32 %v2482_v24, %v892_v10  ;;  %v1255_v12 = vmul.f32 %v2057_v55, %v2521_v23  ;;  %v823_v44 = vmul.f32 1.442695, %v774_v51  ;;  %v728_v59 = vrot.slane %v2358_v2, %v2289_v60 }
 0x1a7   : > { %2074 = vpow2.f32 %v817_v21  ;;  %v821_v43 = vmul.f32 1.442695, %v773_v30  ;;  %v778_v54 = vmul.f32 %v720_v17, %v2372_v9  ;;  %v1082_v6 = vcombine.high %v2344_v56, %v2344_v56  ;;  %v2063_v30 = vpop.eup %2062 }
 0x1a8   : > { %v1256_v10 = vmul.f32 %v2059_v40, %v2527_v5  ;;  %v2548_v38 = vrot.slane %v1105_v48, %v2289_v60  ;;  %v777_v28 = vmul.f32 %v720_v17, %v2377_v13  ;;  %v827_v51 = vmul.f32 1.442695, %v776_v26 }
 0x1a9   : > { %v825_v55 = vmul.f32 1.442695, %v775_v36  ;;  %v1127_v2 = vcombine.high %v1105_v48, %v1105_v48  ;;  %v780_v21 = vmul.f32 %v724_v18, %v2372_v9  ;;  %v1218_v0 = vmul.f32 %v2482_v24, %v896_v22 }
 0x1aa   : > { %v2535_v4 = vpop.permute.xlu1 %917  ;;  %v2537_v39 = vpop.permute.xlu0 %913  ;;  %v2557_v62 = vadd.f32 %v1255_v12, %v1217_v29  ;;  %2076 = vpow2.f32 %v823_v44  ;;  %v779_v40 = vmul.f32 %v724_v18, %v2377_v13  ;;  %v831_v17 = vmul.f32 1.442695, %v778_v54 }
 0x1ab   : > { %v2560_v1 = vpop.eup %2064  ;;  %2078 = vpow2.f32 %v821_v43  ;;  %v782_v48 = vmul.f32 %v728_v59, %v2372_v9  ;;  %v1096_v26 = vrot.slane %v1082_v6, %v2337_v49  ;;  %v2566_v24 = vadd.f32 %v1256_v10, %v1218_v0 }
 0x1ac   : > { %v2564_v36 = vpop.eup %2066  ;;  %v2570_v22 = vrot.slane %v2361_v3, %v2289_v60  ;;  %v829_v29 = vmul.f32 1.442695, %v777_v28  ;;  %v781_v12 = vmul.f32 %v728_v59, %v2377_v13  ;;  %2080 = vpow2.f32 %v827_v51 }
 0x1ad   : > { %v2069_v18 = vpop.eup %2068  ;;  %v835_v44 = vmul.f32 1.442695, %v780_v21  ;;  %v1129_v43 = vcombine.high %v2361_v3, %v2361_v3  ;;  %v732_v54 = vrot.slane %v2347_v46, %v2289_v60  ;;  %v1219_v0 = vmul.f32 %v2472_v63, %v903_v57 }
 0x1ae   : > { %v2553_v7 = vpop.permute.xlu1 %928  ;;  %v2555_v56 = vpop.permute.xlu0 %924  ;;  %v1259_v28 = vmul.f32 %v2063_v30, %v2557_v62  ;;  %2082 = vpow2.f32 %v825_v55  ;;  %v833_v59 = vmul.f32 1.442695, %v779_v40  ;;  %v2588_v3 = vrot.slane %v1127_v2, %v2289_v60 }
 0x1af   : > { %v2577_v6 = vpop.eup %2070  ;;  %2084 = vpow2.f32 %v831_v17  ;;  %v839_v21 = vmul.f32 1.442695, %v782_v48  ;;  %v1098_v46 = vcombine.high %v1096_v26, %v1096_v26  ;;  %v1260_v42 = vmul.f32 %v2061_v47, %v2566_v24 }
 0x1b0   : > { %v2585_v51 = vpop.eup %2072  ;;  %2086 = vpow2.f32 %v829_v29  ;;  %v1112_v57 = vrot.slane %v1096_v26, %v2337_v49  ;;  %v837_v41 = vmul.f32 1.442695, %v781_v12  ;;  %v2596_v55 = vrot.slane %v1129_v43, %v2289_v60 }
 0x1b1   : > { %v2592_v34 = vpop.eup %2074  ;;  %2088 = vpow2.f32 %v835_v44  ;;  %v784_v40 = vmul.f32 %v732_v54, %v2372_v9  ;;  %v1220_v2 = vmul.f32 %v2472_v63, %v2519_v8  ;;  %v2601_v47 = vadd.f32 %v1259_v28, %v1219_v0 }
 0x1b2   : > { %v2580_v10 = vpop.permute.xlu1 %939  ;;  %v2582_v53 = vpop.permute.xlu0 %935  ;;  %2090 = vpow2.f32 %v833_v59  ;;  %v783_v26 = vmul.f32 %v732_v54, %v2377_v13  ;;  %v1126_v44 = vrot.slane %v1098_v46, %v2337_v49  ;;  %v2612_v8 = vrot.slane %v1112_v57, %v2289_v60 }
 0x1b3   : > { %2092 = vpow2.f32 %v839_v21  ;;  %v2609_v9 = vadd.f32 %v1260_v42, %v1220_v2  ;;  %v1128_v63 = vcombine.high %v1112_v57, %v1112_v57  ;;  %v843_v54 = vmul.f32 1.442695, %v784_v40 }
 0x1b4   : > { %v2607_v43 = vpop.eup %2076  ;;  %2094 = vpow2.f32 %v837_v41  ;;  %v1221_v49 = vmul.f32 %v2491_v45, %v2537_v39  ;;  %v1263_v21 = vmul.f32 %v2069_v18, %v2601_v47  ;;  %v841_v46 = vmul.f32 1.442695, %v783_v26 }
 0x1b5   : > { %v2614_v0 = vpop.eup %2078  ;;  %v847_v40 = vmul.f32 1.442695, %v2380_v14  ;;  %v2635_v18 = vrot.slane %v1128_v63, %v2289_v60  ;;  %v1130_v26 = vcombine.high %v1126_v44, %v1126_v44  ;;  %2096 = vpow2.f32 %v843_v54 }
 0x1b6   : > { %v1328_v17 = vpop.permute.xlu1 %1327  ;;  %v1324_v48 = vpop.permute.xlu0 %1323  ;;  %v2646_v63 = vadd.f32 %v1263_v21, %v1221_v49  ;;  %2098 = vpow2.f32 %v841_v46 }
 0x1b7   : > { %v1486_v29 = vmul.f32 %v1328_v17, %v2505_v27  ;;  %v1485_v12 = vmul.f32 %v1324_v48, %v2498_v61  ;;  %v2622_v41 = vpop.eup %2080  ;;  %v2627_v17 = vrot.slane %v1126_v44, %v2289_v60  ;;  %2100 = vpow2.f32 %v847_v40 }
 0x1b8   : > { %v2630_v48 = vpop.eup %2082  ;;  %v1223_v40 = vmul.f32 %v2485_v25, %v2555_v56 }
 0x1b9   : > { %v1525_v13 = vsel %vm355_vm0, %v1486_v29, 0.0  ;;  %v1524_v27 = vsel %vm355_vm0, %v1485_v12, 0.0  ;;  %v1264_v29 = vmul.f32 %v2564_v36, %v2609_v9  ;;  %v2637_v12 = vpop.eup %2084 }
 0x1ba   : > { %v1526_v28 = vadd.f32 %v1525_v13, %v1524_v27  ;;  %v1339_v42 = vpop.permute.xlu1 %1338  ;;  %v1335_v59 = vpop.permute.xlu0 %1334  ;;  %v845_v13 = vmul.f32 1.442695, %v2383_v16  ;;  %v1222_v27 = vmul.f32 %v2491_v45, %v2535_v4  ;;  %v2655_v45 = vrot.slane %v1130_v26, %v2289_v60 }
 0x1bb   : > { %v1488_v57 = vmul.f32 %v1339_v42, %v2527_v5  ;;  %v1487_v2 = vmul.f32 %v1335_v59, %v2521_v23  ;;  %v2642_v14 = vpop.eup %2086  ;;  %v851_v4 = vmul.f32 1.442695, %v2388_v19  ;;  %v1267_v19 = vmul.f32 %v2577_v6, %v2646_v63 }
 0x1bc   : > { %v1527_v39 = vrot.slane %v1526_v28, 4  ;;  %v2648_v44 = vpop.eup %2088  ;;  %v1266_v30 = vadd.f32 %v1264_v29, %v1222_v27  ;;  %2855 = vst [vmem:[#allocation14_spill] sm:$0xff] %v2655_v45  ;;  %2102 = vpow2.f32 %v845_v13  ;;  %v1224_v6 = vmul.f32 %v2485_v25, %v2553_v7 }
 0x1bd   : > { %v1534_v5 = vsel %vm355_vm0, %v1488_v57, 0.0  ;;  %v1533_v23 = vsel %vm355_vm0, %v1487_v2, 0.0  ;;  %v2652_v16 = vpop.eup %2090  ;;  %2104 = vpow2.f32 %v851_v4  ;;  %v1269_v13 = vadd.f32 %v1267_v19, %v1223_v40 }
 0x1be   : > { %v1535_v42 = vadd.f32 %v1534_v5, %v1533_v23  ;;  %v1317_v36 = vpop.permute.xlu1 %1316  ;;  %v1313_v59 = vpop.permute.xlu0 %1312  ;;  %v1528_v61 = vadd.f32 %v1527_v39, %v1526_v28 }
 0x1bf   : > { %v1484_v57 = vmul.f32 %v1317_v36, %v2494_v32  ;;  %v1483_v54 = vmul.f32 %v1313_v59, %v2476_v11  ;;  %v2658_v49 = vpop.eup %2092  ;;  %v849_v11 = vmul.f32 1.442695, %v2391_v20  ;;  %v1268_v59 = vmul.f32 %v2560_v1, %v1266_v30 }
 0x1c0   : > { %v1536_v2 = vrot.slane %v1535_v42, 4  ;;  %v2664_v46 = vpop.eup %2094  ;;  %v1529_v5 = vrot.slane %v1528_v61, 2 }
 0x1c1   : > { %v1516_v21 = vsel %vm355_vm0, %v1484_v57, 0.0  ;;  %v1515_v28 = vsel %vm355_vm0, %v1483_v54, 0.0  ;;  %2106 = vpow2.f32 %v849_v11  ;;  %v1270_v7 = vadd.f32 %v1268_v59, %v1224_v6 }
 0x1c2   : > { %v1537_v39 = vadd.f32 %v1536_v2, %v1535_v42  ;;  %v1517_v60 = vadd.f32 %v1516_v21, %v1515_v28  ;;  %v1350_v29 = vpop.permute.xlu1 %1349  ;;  %v1346_v26 = vpop.permute.xlu0 %1345  ;;  %v1530_v28 = vadd.f32 %v1529_v5, %v1528_v61 }
 0x1c3   : > { %v1490_v23 = vmul.f32 %v1350_v29, %v2566_v24  ;;  %v1489_v27 = vmul.f32 %v1346_v26, %v2557_v62  ;;  %v2678_v21 = vpop.eup %2096 }
 0x1c4   : > { %v1538_v36 = vrot.slane %v1537_v39, 2  ;;  %v1518_v20 = vrot.slane %v1517_v60, 4  ;;  %v2683_v26 = vpop.eup %2098  ;;  %v1531_v59 = vrot.slane %v1530_v28, 1 }
 0x1c5   : > { %v1543_v56 = vsel %vm355_vm0, %v1490_v23, 0.0  ;;  %v1542_v42 = vsel %vm355_vm0, %v1489_v27, 0.0  ;;  %v2685_v25 = vpop.eup %2100 }
 0x1c6   : > { %v1519_v54 = vadd.f32 %v1518_v20, %v1517_v60  ;;  %v1544_v24 = vadd.f32 %v1543_v56, %v1542_v42  ;;  %v1361_v2 = vpop.permute.xlu1 %1360  ;;  %v1357_v62 = vpop.permute.xlu0 %1356  ;;  %v1539_v11 = vadd.f32 %v1538_v36, %v1537_v39  ;;  %v1271_v36 = vmul.f32 %v2592_v34, %v1269_v13 }
 0x1c7   : > { %v1492_v1 = vmul.f32 %v1361_v2, %v2609_v9  ;;  %v1491_v4 = vmul.f32 %v1357_v62, %v2601_v47  ;;  %v1225_v47 = vmul.f32 %v2514_v50, %v2582_v53  ;;  %v2697_v9 = vpop.eup %2102 }
 0x1c8   : > { %v1520_v23 = vrot.slane %v1519_v54, 2  ;;  %v1545_v27 = vrot.slane %v1544_v24, 4  ;;  %v1540_v2 = vrot.slane %v1539_v11, 1  ;;  %v2701_v34 = vpop.eup %2104 }
 0x1c9   : > { %v1552_v60 = vsel %vm355_vm0, %v1492_v1, 0.0  ;;  %v1551_v40 = vsel %vm355_vm0, %v1491_v4, 0.0  ;;  %v1272_v1 = vmul.f32 %v2585_v51, %v1270_v7  ;;  %2856 = vst [vmem:[#allocation15_spill] sm:$0xff] %v2701_v34 }
 0x1ca   : > { %v1521_v19 = vadd.f32 %v1520_v23, %v1519_v54  ;;  %v1546_v5 = vadd.f32 %v1545_v27, %v1544_v24  ;;  %v1372_v20 = vpop.permute.xlu1 %1371  ;;  %v1368_v39 = vpop.permute.xlu0 %1367  ;;  %v1553_v56 = vadd.f32 %v1552_v60, %v1551_v40  ;;  %v1273_v40 = vadd.f32 %v1271_v36, %v1225_v47 }
 0x1cb   : > { %v1494_v42 = vmul.f32 %v1372_v20, %v1266_v30  ;;  %v1493_v6 = vmul.f32 %v1368_v39, %v2646_v63  ;;  %v1226_v30 = vmul.f32 %v2514_v50, %v2580_v10  ;;  %v2705_v20 = vpop.eup %2106  ;;  %v1532_v39 = vadd.f32 %v1531_v59, %v1530_v28 }
 0x1cc   : > { %v1547_v62 = vrot.slane %v1546_v5, 2  ;;  %v1522_v53 = vrot.slane %v1521_v19, 1  ;;  %v1554_v54 = vrot.slane %v1553_v56, 4  ;;  %v1275_v28 = vmul.f32 %v2614_v0, %v1273_v40 }
 0x1cd   : > { %v1561_v24 = vsel %vm355_vm0, %v1494_v42, 0.0  ;;  %v1560_v23 = vsel %vm355_vm0, %v1493_v6, 0.0  ;;  %v1541_v42 = vadd.f32 %v1540_v2, %v1539_v11  ;;  %v1274_v32 = vadd.f32 %v1272_v1, %v1226_v30 }
 0x1ce   : > { %v1548_v63 = vadd.f32 %v1547_v62, %v1546_v5  ;;  %v1562_v27 = vadd.f32 %v1561_v24, %v1560_v23  ;;  %v1383_v60 = vpop.permute.xlu1 %1382  ;;  %v1379_v51 = vpop.permute.xlu0 %1378  ;;  %v1555_v4 = vadd.f32 %v1554_v54, %v1553_v56  ;;  %v1523_v34 = vadd.f32 %v1522_v53, %v1521_v19 }
 0x1cf   : > { %v1496_v61 = vmul.f32 %v1383_v60, %v1270_v7  ;;  %v1495_v29 = vmul.f32 %v1379_v51, %v1269_v13  ;;  %v2857_v13 = vrot.slane %v2457_v31, 1  ;;  %v2858_v19 = vrot.slane %v2457_v31, 2 }
 0x1d0   : > { %v1549_v57 = vrot.slane %v1548_v63, 1  ;;  %v1563_v6 = vrot.slane %v1562_v27, 4  ;;  %v1556_v45 = vrot.slane %v1555_v4, 2  ;;  %v1699_v1 = vadd.f32 %v2457_v31, %v1523_v34 }
 0x1d1   : > { %v1570_v50 = vsel %vm355_vm0, %v1496_v61, 0.0  ;;  %v1569_v10 = vsel %vm355_vm0, %v1495_v29, 0.0  ;;  %v1700_v11 = vadd.f32 %v2857_v13, %v1532_v39  ;;  %v1701_v2 = vadd.f32 %v2858_v19, %v1541_v42 }
 0x1d2   : > { %v1550_v5 = vadd.f32 %v1549_v57, %v1548_v63  ;;  %v1564_v62 = vadd.f32 %v1563_v6, %v1562_v27  ;;  %v1571_v47 = vadd.f32 %v1570_v50, %v1569_v10  ;;  %v1394_v36 = vpop.permute.xlu1 %1393  ;;  %v1390_v24 = vpop.permute.xlu0 %1389  ;;  %v1557_v7 = vadd.f32 %v1556_v45, %v1555_v4 }
 0x1d3   : > { %v1498_v59 = vmul.f32 %v1394_v36, %v1274_v32  ;;  %v1497_v56 = vmul.f32 %v1390_v24, %v1273_v40  ;;  %v1276_v57 = vmul.f32 %v2607_v43, %v1274_v32  ;;  %v2859_v45 = vrot.slane %v2457_v31, 3 }
 0x1d4   : > { %v1565_v61 = vrot.slane %v1564_v62, 2  ;;  %v1572_v29 = vrot.slane %v1571_v47, 4  ;;  %v1558_v53 = vrot.slane %v1557_v7, 1  ;;  %v1731_v51 = vrot.slane %v1700_v11, 7 }
 0x1d5   : > { %v1579_v0 = vsel %vm355_vm0, %v1498_v59, 0.0  ;;  %v1578_v54 = vsel %vm355_vm0, %v1497_v56, 0.0  ;;  %v1702_v4 = vadd.f32 %v2859_v45, %v1550_v5  ;;  %v1734_v34 = vrot.slane %v1701_v2, 6 }
 0x1d6   : > { %v1566_v23 = vadd.f32 %v1565_v61, %v1564_v62  ;;  %v1573_v30 = vadd.f32 %v1572_v29, %v1571_v47  ;;  %v1580_v63 = vadd.f32 %v1579_v0, %v1578_v54  ;;  %v951_v27 = vpop.permute.xlu1 %950  ;;  %v947_v60 = vpop.permute.xlu0 %946  ;;  %v1559_v40 = vadd.f32 %v1558_v53, %v1557_v7 }
 0x1d7   : > { %v1228_v43 = vmul.f32 %v2548_v38, %v951_v27  ;;  %v1227_v32 = vmul.f32 %v2548_v38, %v947_v60  ;;  %v1733_v50 = vsel %vm1732_vm6, %v1731_v51, %v1699_v1  ;;  %v2860_v10 = vrot.slane %v2457_v31, 4 }
 0x1d8   : > { %v1567_v39 = vrot.slane %v1566_v23, 1  ;;  %v1574_v42 = vrot.slane %v1573_v30, 2  ;;  %v1581_v6 = vrot.slane %v1580_v63, 4  ;;  %v1737_v36 = vrot.slane %v1702_v4, 5 }
 0x1d9   : > { %v1703_v5 = vadd.f32 %v2860_v10, %v1559_v40  ;;  %v1278_v62 = vadd.f32 %v1276_v57, %v1228_v43  ;;  %v1277_v47 = vadd.f32 %v1275_v28, %v1227_v32  ;;  %v2861_v61 = vrot.slane %v2457_v31, 5 }
 0x1da   : > { %v1568_v24 = vadd.f32 %v1567_v39, %v1566_v23  ;;  %v1575_v13 = vadd.f32 %v1574_v42, %v1573_v30  ;;  %v1582_v11 = vadd.f32 %v1581_v6, %v1580_v63  ;;  %v962_v7 = vpop.permute.xlu1 %961  ;;  %v958_v59 = vpop.permute.xlu0 %957  ;;  %v1736_v57 = vsel %vm1735_vm7, %v1734_v34, %v1733_v50 }
 0x1db   : > { %v1740_v56 = vrot.slane %v1703_v5, 4  ;;  %v1500_v38 = vmul.f32 %v2414_v37, %v1278_v62  ;;  %v1499_v19 = vmul.f32 %v2416_v15, %v1277_v47  ;;  %v1280_v2 = vmul.f32 %v2622_v41, %v1278_v62 }
 0x1dc   : > { %v1704_v29 = vadd.f32 %v2861_v61, %v1568_v24  ;;  %v1576_v1 = vrot.slane %v1575_v13, 1  ;;  %v1583_v53 = vrot.slane %v1582_v11, 2  ;;  %v1230_v28 = vmul.f32 %v2570_v22, %v962_v7 }
 0x1dd   : > { %v1588_v0 = vsel %vm355_vm0, %v1500_v38, 0.0  ;;  %v1587_v54 = vsel %vm355_vm0, %v1499_v19, 0.0  ;;  %v1279_v37 = vmul.f32 %v2630_v48, %v1277_v47  ;;  %v1739_v63 = vsel %vm1738_vm8, %v1737_v36, %v1736_v57 }
 0x1de   : > { %v1743_v45 = vrot.slane %v1704_v29, 3  ;;  %v1577_v15 = vadd.f32 %v1576_v1, %v1575_v13  ;;  %v1584_v4 = vadd.f32 %v1583_v53, %v1582_v11  ;;  %v1589_v41 = vadd.f32 %v1588_v0, %v1587_v54  ;;  %v973_v23 = vpop.permute.xlu1 %972  ;;  %v969_v30 = vpop.permute.xlu0 %968 }
 0x1df   : > { %v1282_v27 = vadd.f32 %v1280_v2, %v1230_v28  ;;  %v1229_v60 = vmul.f32 %v2570_v22, %v958_v59  ;;  %v1232_v51 = vmul.f32 %v2588_v3, %v973_v23  ;;  %v1742_v40 = vsel %vm1741_vm9, %v1740_v56, %v1739_v63 }
 0x1e0   : > { %v2862_v43 = vrot.slane %v2457_v31, 6  ;;  %v1585_v34 = vrot.slane %v1584_v4, 1  ;;  %v1590_v48 = vrot.slane %v1589_v41, 4  ;;  %v1231_v50 = vmul.f32 %v2588_v3, %v969_v30 }
 0x1e1   : > { %v1502_v39 = vmul.f32 %v2401_v52, %v1282_v27  ;;  %v1281_v42 = vadd.f32 %v1279_v37, %v1229_v60  ;;  %v1284_v6 = vmul.f32 %v2637_v12, %v1282_v27  ;;  %v1745_v10 = vsel %vm1744_vm10, %v1743_v45, %v1742_v40 }
 0x1e2   : > { %v1705_v32 = vadd.f32 %v2862_v43, %v1577_v15  ;;  %v1586_v22 = vadd.f32 %v1585_v34, %v1584_v4  ;;  %v1591_v62 = vadd.f32 %v1590_v48, %v1589_v41  ;;  %v984_v47 = vpop.permute.xlu1 %983  ;;  %v980_v36 = vpop.permute.xlu0 %979  ;;  %v2863_v12 = vrot.slane %v2457_v31, 7 }
 0x1e3   : > { %v1597_v24 = vsel %vm355_vm0, %v1502_v39, 0.0  ;;  %v1501_v13 = vmul.f32 %v2403_v58, %v1281_v42  ;;  %v1286_v11 = vadd.f32 %v1284_v6, %v1232_v51  ;;  %v1283_v52 = vmul.f32 %v2642_v14, %v1281_v42 }
 0x1e4   : > { %v1746_v5 = vrot.slane %v1705_v32, 2  ;;  %v1706_v3 = vadd.f32 %v2863_v12, %v1586_v22  ;;  %v1592_v59 = vrot.slane %v1591_v62, 2  ;;  %v1234_v56 = vmul.f32 %v2596_v55, %v984_v47  ;;  %v2866_v32 = vld [vmem:[#allocation7_spill] sm:$0xff] }
 0x1e5   : > { %v1596_v38 = vsel %vm355_vm0, %v1501_v13, 0.0  ;;  %v1504_v19 = vmul.f32 %v2407_v33, %v1286_v11  ;;  %v1285_v2 = vadd.f32 %v1283_v52, %v1231_v50  ;;  %v1288_v61 = vmul.f32 %v2648_v44, %v1286_v11  ;;  %v2864_v33 = vld [vmem:[#allocation5_spill] sm:$0xff] }
 0x1e6   : > { %v1748_v7 = vsel %vm1747_vm11, %v1746_v5, %v1745_v10  ;;  %v1749_v58 = vrot.slane %v1706_v3, 1  ;;  %v1593_v31 = vadd.f32 %v1592_v59, %v1591_v62  ;;  %v1598_v14 = vadd.f32 %v1597_v24, %v1596_v38  ;;  %v995_v1 = vpop.permute.xlu1 %994  ;;  %v991_v53 = vpop.permute.xlu0 %990  ;;  %v2867_v5 = vld [vmem:[#allocation8_spill] sm:$0xff] }
 0x1e7   : > { %v1233_v29 = vmul.f32 %v2596_v55, %v980_v36  ;;  %v1606_v28 = vsel %vm355_vm0, %v1504_v19, 0.0  ;;  %v1503_v57 = vmul.f32 %v2864_v33, %v1285_v2  ;;  %v1290_v0 = vadd.f32 %v1288_v61, %v1234_v56  ;;  %v2865_v55 = vld [vmem:[#allocation6_spill] sm:$0xff] }
 0x1e8   : > { %v1287_v44 = vmul.f32 %v2652_v16, %v1285_v2  ;;  %v1751_v54 = vsel %vm1750_vm12, %v1749_v58, %v1748_v7  ;;  %v1594_v37 = vrot.slane %v1593_v31, 1  ;;  %v1599_v45 = vrot.slane %v1598_v14, 4  ;;  %v2868_v7 = vld [vmem:[#allocation9_spill] sm:$0xff]  ;;  %v2869_v61 = vld [vmem:[#allocation10_spill] sm:$0xff] }
 0x1e9   : > { %v1236_v15 = vmul.f32 %v2612_v8, %v995_v1  ;;  %1768 = vst.msk [vmem:[%s2760_s28] sm:$0xff] %vm355_vm0, %v1751_v54  ;;  %v1605_v4 = vsel %vm355_vm0, %v1503_v57, 0.0  ;;  %v1506_v41 = vmul.f32 %v2865_v55, %v1290_v0  ;;  %v1292_v30 = vmul.f32 %v2658_v49, %v1290_v0 }
 0x1ea   : > { %v1289_v23 = vadd.f32 %v1287_v44, %v1233_v29  ;;  %v1595_v63 = vadd.f32 %v1594_v37, %v1593_v31  ;;  %v1600_v27 = vadd.f32 %v1599_v45, %v1598_v14  ;;  %v1607_v60 = vadd.f32 %v1606_v28, %v1605_v4  ;;  %v1006_v51 = vpop.permute.xlu1 %1005  ;;  %v1002_v40 = vpop.permute.xlu0 %1001 }
 0x1eb   : > { %v1235_v16 = vmul.f32 %v2612_v8, %v991_v53  ;;  %v1615_v43 = vsel %vm355_vm0, %v1506_v41, 0.0  ;;  %v1294_v48 = vadd.f32 %v1292_v30, %v1236_v15  ;;  %v1238_v49 = vmul.f32 %v2627_v17, %v1006_v51  ;;  %v2872_v41 = vld [vmem:[#allocation12_spill] sm:$0xff] }
 0x1ec   : > { %v1505_v34 = vmul.f32 %v2866_v32, %v1289_v23  ;;  %v1291_v39 = vmul.f32 %v2664_v46, %v1289_v23  ;;  %v1707_v42 = vadd.f32 %v2461_v35, %v1595_v63  ;;  %v1601_v6 = vrot.slane %v1600_v27, 2  ;;  %v2873_v63 = vld [vmem:[#allocation14_spill] sm:$0xff] }
 0x1ed   : > { %v1608_v50 = vrot.slane %v1607_v60, 4  ;;  %v1508_v22 = vmul.f32 %v2867_v5, %v1294_v48  ;;  %v1296_v62 = vmul.f32 %v2678_v21, %v1294_v48  ;;  %v1237_v13 = vmul.f32 %v2627_v17, %v1002_v40 }
 0x1ee   : > { %v1614_v10 = vsel %vm355_vm0, %v1505_v34, 0.0  ;;  %v1293_v8 = vadd.f32 %v1291_v39, %v1235_v16  ;;  %v1602_v47 = vadd.f32 %v1601_v6, %v1600_v27  ;;  %v1017_v11 = vpop.permute.xlu1 %1016  ;;  %v1013_v46 = vpop.permute.xlu0 %1012  ;;  %v2871_v54 = vrot.slane %v2461_v35, 1 }
 0x1ef   : > { %v1609_v36 = vadd.f32 %v1608_v50, %v1607_v60  ;;  %v1616_v24 = vadd.f32 %v1615_v43, %v1614_v10  ;;  %v1624_v52 = vsel %vm355_vm0, %v1508_v22, 0.0  ;;  %v1298_v3 = vadd.f32 %v1296_v62, %v1238_v49  ;;  %v2875_v10 = vld [vmem:[#allocation13_spill] sm:$0xff]  ;;  %v2876_v22 = vld [vmem:[#allocation15_spill] sm:$0xff] }
 0x1f0   : > { %v1507_v12 = vmul.f32 %v2868_v7, %v1293_v8  ;;  %v1295_v59 = vmul.f32 %v2683_v26, %v1293_v8  ;;  %v1603_v56 = vrot.slane %v1602_v47, 1  ;;  %v1240_v2 = vmul.f32 %v2635_v18, %v1017_v11  ;;  %v2870_v26 = vld [vmem:[#allocation11_spill] sm:$0xff] }
 0x1f1   : > { %v1610_v38 = vrot.slane %v1609_v36, 2  ;;  %v1617_v19 = vrot.slane %v1616_v24, 4  ;;  %v1510_v58 = vmul.f32 %v2869_v61, %v1298_v3  ;;  %v1300_v17 = vmul.f32 %v2685_v25, %v1298_v3 }
 0x1f2   : > { %v1623_v21 = vsel %vm355_vm0, %v1507_v12, 0.0  ;;  %v1297_v31 = vadd.f32 %v1295_v59, %v1237_v13  ;;  %v1604_v14 = vadd.f32 %v1603_v56, %v1602_v47  ;;  %v1028_v28 = vpop.permute.xlu1 %1027  ;;  %v1024_v55 = vpop.permute.xlu0 %1023  ;;  %v1239_v30 = vmul.f32 %v2635_v18, %v1013_v46 }
 0x1f3   : > { %v1611_v29 = vadd.f32 %v1610_v38, %v1609_v36  ;;  %v1618_v1 = vadd.f32 %v1617_v19, %v1616_v24  ;;  %v1625_v53 = vadd.f32 %v1624_v52, %v1623_v21  ;;  %v1633_v33 = vsel %vm355_vm0, %v1510_v58, 0.0 }
 0x1f4   : > { %v1509_v57 = vmul.f32 %v2870_v26, %v1297_v31  ;;  %v1302_v0 = vadd.f32 %v1300_v17, %v1240_v2  ;;  %v1299_v44 = vmul.f32 %v2697_v9, %v1297_v31  ;;  %v1708_v37 = vadd.f32 %v2871_v54, %v1604_v14 }
 0x1f5   : > { %v1612_v45 = vrot.slane %v1611_v29, 1  ;;  %v1619_v15 = vrot.slane %v1618_v1, 2  ;;  %v1626_v4 = vrot.slane %v1625_v53, 4  ;;  %v1242_v27 = vmul.f32 %v2873_v63, %v1028_v28 }
 0x1f6   : > { %v1632_v25 = vsel %vm355_vm0, %v1509_v57, 0.0  ;;  %v1512_v23 = vmul.f32 %v2872_v41, %v1302_v0  ;;  %v1752_v60 = vrot.slane %v1708_v37, 7  ;;  %v1301_v32 = vadd.f32 %v1299_v44, %v1239_v30  ;;  %v1482_v11 = vpop.permute.xlu1 %1481  ;;  %v1478_v46 = vpop.permute.xlu0 %1477 }
 0x1f7   : > { %v1613_v16 = vadd.f32 %v1612_v45, %v1611_v29  ;;  %v1620_v51 = vadd.f32 %v1619_v15, %v1618_v1  ;;  %v1627_v40 = vadd.f32 %v1626_v4, %v1625_v53  ;;  %v1634_v9 = vadd.f32 %v1633_v33, %v1632_v25 }
 0x1f8   : > { %v1642_v43 = vsel %vm355_vm0, %v1512_v23, 0.0  ;;  %v1241_v34 = vmul.f32 %v2873_v63, %v1024_v55  ;;  %v1753_v48 = vsel %vm1732_vm6, %v1752_v60, %v1707_v42  ;;  %v2874_v39 = vrot.slane %v2461_v35, 2 }
 0x1f9   : > { %v1621_v50 = vrot.slane %v1620_v51, 1  ;;  %v1628_v49 = vrot.slane %v1627_v40, 2  ;;  %v1635_v18 = vrot.slane %v1634_v9, 4  ;;  %v1511_v5 = vmul.f32 %v2875_v10, %v1301_v32 }
 0x1fa   : > { %v1709_v6 = vadd.f32 %v2874_v39, %v1613_v16  ;;  %v1304_v8 = vmul.f32 %v2876_v22, %v1302_v0  ;;  %v1303_v62 = vmul.f32 %v2705_v20, %v1301_v32  ;;  %v1679_v24 = vrot.slane %v2461_v35, 4 }
 0x1fb   : > { %v1622_v36 = vadd.f32 %v1621_v50, %v1620_v51  ;;  %v1629_v13 = vadd.f32 %v1628_v49, %v1627_v40  ;;  %v1636_v42 = vadd.f32 %v1635_v18, %v1634_v9  ;;  %v1641_v52 = vsel %vm355_vm0, %v1511_v5, 0.0 }
 0x1fc   : > { %v1754_v47 = vrot.slane %v1709_v6, 6  ;;  %v1306_v7 = vadd.f32 %v1304_v8, %v1242_v27  ;;  %v1305_v12 = vadd.f32 %v1303_v62, %v1241_v34  ;;  %v2877_v59 = vrot.slane %v2461_v35, 3 }
 0x1fd   : > { %v1630_v38 = vrot.slane %v1629_v13, 1  ;;  %v1643_v19 = vadd.f32 %v1642_v43, %v1641_v52  ;;  %v1637_v20 = vrot.slane %v1636_v42, 2  ;;  %v1680_v26 = vrot.slane %v2461_v35, 5 }
 0x1fe   : > { %v1755_v3 = vsel %vm1735_vm7, %v1754_v47, %v1753_v48  ;;  %v1710_v56 = vadd.f32 %v2877_v59, %v1622_v36  ;;  %v1514_v2 = vmul.f32 %v1482_v11, %v1306_v7  ;;  %v1513_v21 = vmul.f32 %v1478_v46, %v1305_v12 }
 0x1ff   : > { %v1631_v58 = vadd.f32 %v1630_v38, %v1629_v13  ;;  %v1644_v31 = vrot.slane %v1643_v19, 4  ;;  %v1638_v17 = vadd.f32 %v1637_v20, %v1636_v42  ;;  %v1681_v25 = vrot.slane %v2461_v35, 6 }
 0x200   : > { %v1756_v61 = vrot.slane %v1710_v56, 5  ;;  %v1651_v14 = vsel %vm355_vm0, %v1514_v2, 0.0  ;;  %v1650_v29 = vsel %vm355_vm0, %v1513_v21, 0.0  ;;  %v1682_v51 = vrot.slane %v2461_v35, 7 }
 0x201   : > { %v1711_v53 = vadd.f32 %v1679_v24, %v1631_v58  ;;  %v1645_v28 = vadd.f32 %v1644_v31, %v1643_v19  ;;  %v1652_v33 = vadd.f32 %v1651_v14, %v1650_v29  ;;  %v1639_v57 = vrot.slane %v1638_v17, 1 }
 0x202   : > { %v1757_v1 = vsel %vm1738_vm8, %v1756_v61, %v1755_v3 }
 0x203   : > { %v1758_v0 = vrot.slane %v1711_v53, 4  ;;  %v1646_v44 = vrot.slane %v1645_v28, 2  ;;  %v1653_v54 = vrot.slane %v1652_v33, 4  ;;  %v1640_v37 = vadd.f32 %v1639_v57, %v1638_v17 }
 0x205   : > { %v1759_v45 = vsel %vm1741_vm9, %v1758_v0, %v1757_v1  ;;  %v1647_v15 = vadd.f32 %v1646_v44, %v1645_v28  ;;  %v1654_v4 = vadd.f32 %v1653_v54, %v1652_v33  ;;  %v1712_v55 = vadd.f32 %v1680_v26, %v1640_v37 }
 0x207   : > { %v1648_v41 = vrot.slane %v1647_v15, 1  ;;  %v1655_v23 = vrot.slane %v1654_v4, 2  ;;  %v1760_v30 = vrot.slane %v1712_v55, 3 }
 0x209   : > { %v1649_v63 = vadd.f32 %v1648_v41, %v1647_v15  ;;  %v1656_v27 = vadd.f32 %v1655_v23, %v1654_v4  ;;  %v1761_v60 = vsel %vm1744_vm10, %v1760_v30, %v1759_v45 }
 0x20b   : > { %v1713_v16 = vadd.f32 %v1681_v25, %v1649_v63  ;;  %v1657_v40 = vrot.slane %v1656_v27, 1 }
 0x20d   : > { %v1762_v9 = vrot.slane %v1713_v16, 2  ;;  %v1658_v43 = vadd.f32 %v1657_v40, %v1656_v27 }
 0x20f   : > { %v1763_v32 = vsel %vm1747_vm11, %v1762_v9, %v1761_v60  ;;  %v1714_v34 = vadd.f32 %v1682_v51, %v1658_v43 }
 0x211   : > { %v1764_v48 = vrot.slane %v1714_v34, 1 }
 0x213   : > { %v1765_v39 = vsel %vm1750_vm12, %v1764_v48, %v1763_v32 }
 0x214   : > { %1769 = vst.msk [vmem:[%s2760_s28 + $0x8] sm:$0xff] %vm355_vm0, %v1765_v39 }
 0x215 PF: > { %s15_s22 = sadd.s32 1, %s2146_s22   ;;  %s2878_s18 = smov %s2138_s20 }
 0x216   : > { %p12_p7 = scmp.ge.s32.totalorder %s15_s22, 10   ;;  %s2879_s19 = smov %s2142_s21 }
 0x217   : > { %s2880_s20 = smov %s2883_s23  ;;  %s2881_s21 = smov %s2887_s24 }
 0x218   :  { %14 = sbr.rel (!%p12_p7) target bundleno = 3 (0x3), region = 82 }

// kernel: es2d_forward.7
= control target key start
LH: loop header
LB: loop body
LE: loop exit
PB: predicated region body
PF: predicated region fallthrough
CT: control target
= control target key end

     0   :  { %vm37_vm0 = vcmask 523264   ;;  %s1395_s0 = inlined_call_operand.vmem [shape: f32[128,64], index: 0, kind: input, shape index: {}]   ;;  %s1396_s1 = inlined_call_operand.vmem [shape: f32[128,64], index: 1, kind: input, shape index: {}]   ;;  %s1397_s2 = inlined_call_operand.vmem [shape: f32[1,64], index: 2, kind: input, shape index: {}]   ;;  %s1398_s3 = inlined_call_operand.vmem [shape: f32[1,64], index: 3, kind: input, shape index: {}]   ;;  %s1399_s4 = inlined_call_operand.vmem [shape: f32[64,32], index: 4, kind: input, shape index: {}]   ;;  %s1400_s5 = inlined_call_operand.hbm [shape: f32[128,32], index: 5, kind: output, shape index: {}]  }
   0x1   :  { %v21_v0 = vld [vmem:[%s1395_s0] sm:$0xff]  ;;  %v22_v1 = vld [vmem:[%s1395_s0 + $0x8] sm:$0xff]  ;;  %v23_v8 = vld [vmem:[%s1395_s0 + $0x10] sm:$0xff] }
   0x2   :  { %v29_v2 = vld [vmem:[%s1395_s0 + $0x40] sm:$0xff]  ;;  %v38_v3 = vsel %vm37_vm0, %v21_v0, 0.0  ;;  %v41_v4 = vsel %vm37_vm0, %v22_v1, 0.0  ;;  %v30_v5 = vld [vmem:[%s1395_s0 + $0x48] sm:$0xff]  ;;  %v31_v9 = vld [vmem:[%s1395_s0 + $0x50] sm:$0xff] }
   0x3   :  { %39 = vadd.xlane.f32.xlu0 %v38_v3  ;;  %42 = vadd.xlane.f32.xlu1 %v41_v4  ;;  %v62_v6 = vsel %vm37_vm0, %v29_v2, 0.0  ;;  %v65_v7 = vsel %vm37_vm0, %v30_v5, 0.0 }
   0x4   :  { %10 = vsyncpa [#allocation3], 0  ;;  %v44_v10 = vsel %vm37_vm0, %v23_v8, 0.0  ;;  %v68_v11 = vsel %vm37_vm0, %v31_v9, 0.0  ;;  %v976_v12 = vld [vmem:[%s1395_s0 + $0x18] sm:$0xff]  ;;  %v990_v16 = vld [vmem:[%s1395_s0 + $0x20] sm:$0xff] }
   0x5   :  { %v981_v13 = vld [vmem:[%s1395_s0 + $0x58] sm:$0xff]  ;;  %v47_v14 = vsel %vm37_vm0, %v976_v12, 0.0  ;;  %v995_v17 = vld [vmem:[%s1395_s0 + $0x60] sm:$0xff]  ;;  %v50_v18 = vsel %vm37_vm0, %v990_v16, 0.0  ;;  %v1004_v20 = vld [vmem:[%s1395_s0 + $0x28] sm:$0xff]  ;;  %vm638_vm1 = vcmask 261120  }
   0x6   :  { %v71_v15 = vsel %vm37_vm0, %v981_v13, 0.0  ;;  %v74_v19 = vsel %vm37_vm0, %v995_v17, 0.0  ;;  %v1009_v21 = vld [vmem:[%s1395_s0 + $0x68] sm:$0xff]  ;;  %v53_v22 = vsel %vm37_vm0, %v1004_v20, 0.0  ;;  %v1018_v24 = vld [vmem:[%s1395_s0 + $0x30] sm:$0xff]  ;;  %v1032_v28 = vld [vmem:[%s1395_s0 + $0x38] sm:$0xff] }
   0x7   :  { %63 = vadd.xlane.f32.xlu0 %v62_v6  ;;  %66 = vadd.xlane.f32.xlu1 %v65_v7  ;;  %v77_v23 = vsel %vm37_vm0, %v1009_v21, 0.0  ;;  %v1023_v25 = vld [vmem:[%s1395_s0 + $0x70] sm:$0xff]  ;;  %v56_v26 = vsel %vm37_vm0, %v1018_v24, 0.0  ;;  %v1037_v29 = vld [vmem:[%s1395_s0 + $0x78] sm:$0xff]  ;;  %v59_v30 = vsel %vm37_vm0, %v1032_v28, 0.0 }
   0x8   :  { %v80_v27 = vsel %vm37_vm0, %v1023_v25, 0.0  ;;  %v83_v31 = vsel %vm37_vm0, %v1037_v29, 0.0 }
   0xb   :  { %45 = vadd.xlane.f32.xlu0 %v44_v10  ;;  %69 = vadd.xlane.f32.xlu1 %v68_v11 }
   0xf   :  { %48 = vadd.xlane.f32.xlu0 %v47_v14  ;;  %72 = vadd.xlane.f32.xlu1 %v71_v15 }
  0x13   :  { %51 = vadd.xlane.f32.xlu0 %v50_v18  ;;  %75 = vadd.xlane.f32.xlu1 %v74_v19 }
  0x17   :  { %54 = vadd.xlane.f32.xlu0 %v53_v22  ;;  %78 = vadd.xlane.f32.xlu1 %v77_v23 }
  0x1b   :  { %57 = vadd.xlane.f32.xlu0 %v56_v26  ;;  %81 = vadd.xlane.f32.xlu1 %v80_v27 }
  0x1f   :  { %60 = vadd.xlane.f32.xlu0 %v59_v30  ;;  %84 = vadd.xlane.f32.xlu1 %v83_v31 }
  0x90   :  { %v40_v32 = vpop.xlane.xlu0 %39  ;;  %v43_v33 = vpop.xlane.xlu1 %42 }
  0x91   :  { %v87_v34 = vmul.f32 0.015625, %v40_v32  ;;  %v88_v35 = vmul.f32 0.015625, %v43_v33 }
  0x93   :  { %v1043_v36 = vsub.f32 %v21_v0, %v87_v34  ;;  %v1045_v37 = vsub.f32 %v22_v1, %v88_v35 }
  0x94   :  { %v64_v38 = vpop.xlane.xlu0 %63  ;;  %v67_v39 = vpop.xlane.xlu1 %66 }
  0x95   :  { %v95_v40 = vmul.f32 0.015625, %v64_v38  ;;  %v96_v41 = vmul.f32 0.015625, %v67_v39  ;;  %v119_v42 = vmul.f32 %v1043_v36, %v1043_v36  ;;  %v120_v43 = vmul.f32 %v1045_v37, %v1045_v37 }
  0x97   :  { %v1051_v44 = vsub.f32 %v29_v2, %v95_v40  ;;  %v1053_v45 = vsub.f32 %v30_v5, %v96_v41  ;;  %v135_v46 = vsel %vm37_vm0, %v119_v42, 0.0  ;;  %v138_v49 = vsel %vm37_vm0, %v120_v43, 0.0 }
  0x98   :  { %136 = vadd.xlane.f32.xlu0 %v135_v46  ;;  %v46_v47 = vpop.xlane.xlu0 %45  ;;  %v70_v48 = vpop.xlane.xlu1 %69 }
  0x99   :  { %v89_v50 = vmul.f32 0.015625, %v46_v47  ;;  %v97_v51 = vmul.f32 0.015625, %v70_v48  ;;  %v127_v52 = vmul.f32 %v1051_v44, %v1051_v44  ;;  %v128_v53 = vmul.f32 %v1053_v45, %v1053_v45 }
  0x9b   :  { %v1061_v54 = vsub.f32 %v23_v8, %v89_v50  ;;  %v1063_v55 = vsub.f32 %v31_v9, %v97_v51  ;;  %v159_v56 = vsel %vm37_vm0, %v127_v52, 0.0  ;;  %v162_v59 = vsel %vm37_vm0, %v128_v53, 0.0  ;;  %v438_v50 = vld [vmem:[%s1399_s4 + $0x8] sm:$0xff] }
  0x9c   :  { %139 = vadd.xlane.f32.xlu0 %v138_v49  ;;  %160 = vadd.xlane.f32.xlu1 %v159_v56  ;;  %v49_v57 = vpop.xlane.xlu0 %48  ;;  %v73_v58 = vpop.xlane.xlu1 %72  ;;  %v437_v49 = vld [vmem:[%s1399_s4] sm:$0xff]  ;;  %v439_v56 = vld [vmem:[%s1399_s4 + $0x10] sm:$0xff] }
  0x9d   :  { %v90_v60 = vmul.f32 0.015625, %v49_v57  ;;  %v98_v61 = vmul.f32 0.015625, %v73_v58  ;;  %v121_v62 = vmul.f32 %v1061_v54, %v1061_v54  ;;  %v129_v63 = vmul.f32 %v1063_v55, %v1063_v55  ;;  %v440_v57 = vld [vmem:[%s1399_s4 + $0x18] sm:$0xff] }
  0x9e   :  { %v769_v51 = vpack.c.bf16 %v438_v50, %v437_v49  ;;  %v773_v58 = vpack.c.bf16 %v440_v57, %v439_v56  ;;  %v1231_v50 = vld [vmem:[%s1396_s1 + $0x68] sm:$0xff] }
  0x9f   :  { %v1072_v0 = vsub.f32 %v976_v12, %v90_v60  ;;  %v1075_v1 = vsub.f32 %v981_v13, %v98_v61  ;;  %v141_v2 = vsel %vm37_vm0, %v121_v62, 0.0  ;;  %v165_v5 = vsel %vm37_vm0, %v129_v63, 0.0  ;;  %v441_v60 = vld [vmem:[%s1399_s4 + $0x20] sm:$0xff]  ;;  %v442_v61 = vld [vmem:[%s1399_s4 + $0x28] sm:$0xff]  ;;  %v443_v63 = vld [vmem:[%s1399_s4 + $0x30] sm:$0xff] }
  0xa0   :  { %163 = vadd.xlane.f32.xlu1 %v162_v59  ;;  %142 = vadd.xlane.f32.xlu0 %v141_v2  ;;  %v52_v3 = vpop.xlane.xlu0 %51  ;;  %v76_v4 = vpop.xlane.xlu1 %75  ;;  %v777_v62 = vpack.c.bf16 %v442_v61, %v441_v60  ;;  %v444_v2 = vld [vmem:[%s1399_s4 + $0x38] sm:$0xff] }
  0xa1   :  { %v91_v6 = vmul.f32 0.015625, %v52_v3  ;;  %v99_v7 = vmul.f32 0.015625, %v76_v4  ;;  %v122_v8 = vmul.f32 %v1072_v0, %v1072_v0  ;;  %v130_v9 = vmul.f32 %v1075_v1, %v1075_v1  ;;  %770 = vmatprep.subr.bf16.mxu0 %v769_v51  ;;  %785 = vmatprep.subr.bf16.mxu1 %v769_v51  ;;  %v1160_v4 = vld [vmem:[%s1396_s1] sm:$0xff] }
  0xa2   :  { %772 = vmatpush3.bf16.msra.mxu0 %v769_v51  ;;  %789 = vmatpush3.bf16.msra.mxu1 %v769_v51  ;;  %v781_v3 = vpack.c.bf16 %v444_v2, %v443_v63 }
  0xa3   :  { %v1084_v10 = vsub.f32 %v990_v16, %v91_v6  ;;  %v1087_v11 = vsub.f32 %v995_v17, %v99_v7  ;;  %v144_v12 = vsel %vm37_vm0, %v122_v8, 0.0  ;;  %v168_v15 = vsel %vm37_vm0, %v130_v9, 0.0  ;;  %774 = vmatprep.subr.bf16.mxu0 %v773_v58  ;;  %786 = vmatprep.subr.bf16.mxu1 %v773_v58  ;;  %v1171_v7 = vld [vmem:[%s1396_s1 + $0x8] sm:$0xff] }
  0xa4   :  { %166 = vadd.xlane.f32.xlu1 %v165_v5  ;;  %145 = vadd.xlane.f32.xlu0 %v144_v12  ;;  %v55_v13 = vpop.xlane.xlu0 %54  ;;  %v79_v14 = vpop.xlane.xlu1 %78  ;;  %v1165_v5 = vld [vmem:[%s1396_s1 + $0x40] sm:$0xff]  ;;  %v673_v6 = vmul.f32 -1.442695, %v1160_v4  ;;  %v674_v9 = vmul.f32 -1.442695, %v1171_v7  ;;  %v1178_v12 = vld [vmem:[%s1396_s1 + $0x48] sm:$0xff] }
  0xa5   :  { %v92_v18 = vmul.f32 0.015625, %v55_v13  ;;  %v100_v19 = vmul.f32 0.015625, %v79_v14  ;;  %v123_v22 = vmul.f32 %v1084_v10, %v1084_v10  ;;  %v131_v16 = vmul.f32 %v1087_v11, %v1087_v11  ;;  %v1183_v13 = vld [vmem:[%s1396_s1 + $0x10] sm:$0xff] }
  0xa6   :  { %776 = vmatpush3.bf16.msra.mxu0 %v773_v58  ;;  %790 = vmatpush3.bf16.msra.mxu1 %v773_v58  ;;  %v681_v8 = vmul.f32 -1.442695, %v1165_v5  ;;  %796 = vpow2.f32 %v673_v6  ;;  %v682_v14 = vmul.f32 -1.442695, %v1178_v12  ;;  %v1238_v58 = vld [vmem:[%s1396_s1 + $0x38] sm:$0xff] }
  0xa7   :  { %v1096_v23 = vsub.f32 %v1004_v20, %v92_v18  ;;  %v1099_v17 = vsub.f32 %v1009_v21, %v100_v19  ;;  %v147_v26 = vsel %vm37_vm0, %v123_v22, 0.0  ;;  %v171_v31 = vsel %vm37_vm0, %v131_v16, 0.0  ;;  %778 = vmatprep.subr.bf16.mxu0 %v777_v62  ;;  %787 = vmatprep.subr.bf16.mxu1 %v777_v62  ;;  %v1190_v18 = vld [vmem:[%s1396_s1 + $0x18] sm:$0xff]  ;;  %v1195_v19 = vld [vmem:[%s1396_s1 + $0x50] sm:$0xff]  ;;  %v1201_v16 = vld [vmem:[%s1396_s1 + $0x20] sm:$0xff] }
  0xa8   :  { %169 = vadd.xlane.f32.xlu1 %v168_v15  ;;  %148 = vadd.xlane.f32.xlu0 %v147_v26  ;;  %v58_v27 = vpop.xlane.xlu0 %57  ;;  %v82_v30 = vpop.xlane.xlu1 %81  ;;  %798 = vpow2.f32 %v681_v8  ;;  %v675_v15 = vmul.f32 -1.442695, %v1183_v13  ;;  %v676_v22 = vmul.f32 -1.442695, %v1190_v18  ;;  %v683_v26 = vmul.f32 -1.442695, %v1195_v19 }
  0xa9   :  { %v93_v32 = vmul.f32 0.015625, %v58_v27  ;;  %v101_v33 = vmul.f32 0.015625, %v82_v30  ;;  %v124_v34 = vmul.f32 %v1096_v23, %v1096_v23  ;;  %v132_v20 = vmul.f32 %v1099_v17, %v1099_v17 }
  0xaa   :  { %780 = vmatpush3.bf16.msra.mxu0 %v777_v62  ;;  %791 = vmatpush3.bf16.msra.mxu1 %v777_v62  ;;  %800 = vpow2.f32 %v674_v9  ;;  %v677_v30 = vmul.f32 -1.442695, %v1201_v16  ;;  %v680_v63 = vmul.f32 -1.442695, %v1238_v58  ;;  %v1244_v9 = vld [vmem:[%s1396_s1 + $0x70] sm:$0xff] }
  0xab   :  { %v1108_v35 = vsub.f32 %v1018_v24, %v93_v32  ;;  %v1111_v21 = vsub.f32 %v1023_v25, %v101_v33  ;;  %v150_v38 = vsel %vm37_vm0, %v124_v34, 0.0  ;;  %v174_v41 = vsel %vm37_vm0, %v132_v20, 0.0  ;;  %782 = vmatprep.subr.bf16.mxu0 %v781_v3  ;;  %788 = vmatprep.subr.bf16.mxu1 %v781_v3 }
  0xac   :  { %172 = vadd.xlane.f32.xlu1 %v171_v31  ;;  %151 = vadd.xlane.f32.xlu0 %v150_v38  ;;  %v61_v39 = vpop.xlane.xlu0 %60  ;;  %v85_v40 = vpop.xlane.xlu1 %84  ;;  %802 = vpow2.f32 %v682_v14  ;;  %v1208_v31 = vld [vmem:[%s1396_s1 + $0x58] sm:$0xff]  ;;  %v1214_v38 = vld [vmem:[%s1396_s1 + $0x28] sm:$0xff] }
  0xad   :  { %v94_v42 = vmul.f32 0.015625, %v61_v39  ;;  %v102_v43 = vmul.f32 0.015625, %v85_v40  ;;  %v125_v46 = vmul.f32 %v1108_v35, %v1108_v35  ;;  %v133_v24 = vmul.f32 %v1111_v21, %v1111_v21  ;;  %v1219_v40 = vld [vmem:[%s1396_s1 + $0x60] sm:$0xff] }
  0xae   :  { %784 = vmatpush3.bf16.msra.mxu0 %v781_v3  ;;  %792 = vmatpush3.bf16.msra.mxu1 %v781_v3  ;;  %804 = vpow2.f32 %v675_v15  ;;  %v684_v20 = vmul.f32 -1.442695, %v1208_v31 }
  0xaf   :  { %v1120_v47 = vsub.f32 %v1032_v28, %v94_v42  ;;  %v1123_v25 = vsub.f32 %v1037_v29, %v102_v43  ;;  %v153_v48 = vsel %vm37_vm0, %v125_v46, 0.0  ;;  %v177_v52 = vsel %vm37_vm0, %v133_v24, 0.0 }
  0xb0   :  { %175 = vadd.xlane.f32.xlu1 %v174_v41  ;;  %154 = vadd.xlane.f32.xlu0 %v153_v48  ;;  %v797_v27 = vpop.eup %796  ;;  %806 = vpow2.f32 %v676_v22  ;;  %v678_v46 = vmul.f32 -1.442695, %v1214_v38  ;;  %v685_v24 = vmul.f32 -1.442695, %v1219_v40  ;;  %v1226_v48 = vld [vmem:[%s1396_s1 + $0x30] sm:$0xff] }
  0xb1   :  { %v126_v28 = vmul.f32 %v1120_v47, %v1120_v47  ;;  %v134_v29 = vmul.f32 %v1123_v25, %v1123_v25  ;;  %808 = vpow2.f32 %v683_v26  ;;  %v357_v34 = vadd.f32 1.0, %v797_v27 }
  0xb2   :  { %v799_v32 = vpop.eup %798  ;;  %810 = vpow2.f32 %v677_v30 }
  0xb3   :  { %v156_v53 = vsel %vm37_vm0, %v126_v28, 0.0  ;;  %v180_v59 = vsel %vm37_vm0, %v134_v29, 0.0  ;;  %v365_v39 = vadd.f32 1.0, %v799_v32  ;;  %812 = vrcp.f32 %v357_v34 }
  0xb4   :  { %178 = vadd.xlane.f32.xlu1 %v177_v52  ;;  %157 = vadd.xlane.f32.xlu0 %v156_v53  ;;  %v801_v33 = vpop.eup %800  ;;  %814 = vpow2.f32 %v684_v20  ;;  %v679_v28 = vmul.f32 -1.442695, %v1226_v48  ;;  %v686_v53 = vmul.f32 -1.442695, %v1231_v50 }
  0xb5   :  { %v358_v42 = vadd.f32 1.0, %v801_v33  ;;  %816 = vrcp.f32 %v365_v39  ;;  %v687_v33 = vmul.f32 -1.442695, %v1244_v9 }
  0xb6   :  { %v803_v41 = vpop.eup %802 }
  0xb7   :  { %v366_v49 = vadd.f32 1.0, %v803_v41  ;;  %818 = vrcp.f32 %v358_v42 }
  0xb8   :  { %181 = vadd.xlane.f32.xlu1 %v180_v59  ;;  %v805_v43 = vpop.eup %804  ;;  %820 = vpow2.f32 %v678_v46 }
  0xb9   :  { %v359_v52 = vadd.f32 1.0, %v805_v43  ;;  %822 = vpow2.f32 %v685_v24 }
  0xba   :  { %v807_v51 = vpop.eup %806  ;;  %824 = vrcp.f32 %v366_v49 }
  0xbb   :  { %v809_v29 = vpop.eup %808  ;;  %v360_v57 = vadd.f32 1.0, %v807_v51  ;;  %826 = vrcp.f32 %v359_v52 }
  0xbc   :  { %v811_v59 = vpop.eup %810  ;;  %v367_v61 = vadd.f32 1.0, %v809_v29  ;;  %828 = vpow2.f32 %v679_v28 }
  0xbd   :  { %830 = vpow2.f32 %v686_v53  ;;  %v813_v2 = vpop.eup %812  ;;  %v361_v8 = vadd.f32 1.0, %v811_v59  ;;  %v1250_v59 = vld [vmem:[%s1396_s1 + $0x78] sm:$0xff] }
  0xbe   :  { %832 = vrcp.f32 %v360_v57  ;;  %v815_v14 = vpop.eup %814 }
  0xbf   :  { %v817_v26 = vpop.eup %816  ;;  %v368_v41 = vadd.f32 1.0, %v815_v14 }
  0xc1   :  { %v819_v27 = vpop.eup %818 }
  0xc2   :  { %v821_v34 = vpop.eup %820 }
  0xc3   :  { %v823_v42 = vpop.eup %822  ;;  %v362_v28 = vadd.f32 1.0, %v821_v34  ;;  %v405_v34 = vmul.f32 %v813_v2, %v1160_v4  ;;  %v406_v4 = vmul.f32 %v819_v27, %v1171_v7 }
  0xc4   :  { %v825_v24 = vpop.eup %824  ;;  %v369_v57 = vadd.f32 1.0, %v823_v42 }
  0xc5   :  { %v827_v49 = vpop.eup %826  ;;  %v1271_v2 = vmul.f32 %v825_v24, %v1178_v12 }
  0xc6   :  { %v829_v29 = vpop.eup %828 }
 0x125   :  { %v137_v56 = vpop.xlane.xlu0 %136 }
 0x126   :  { %v183_v60 = vmul.f32 0.015625, %v137_v56 }
 0x128   :  { %v199_v62 = vadd.f32 1e-05, %v183_v60  ;;  %v831_v60 = vpop.eup %830 }
 0x129   :  { %v161_v3 = vpop.xlane.xlu1 %160  ;;  %v140_v6 = vpop.xlane.xlu0 %139 }
 0x12a   :  { %834 = vrsqrt.f32 %v199_v62  ;;  %v191_v15 = vmul.f32 0.015625, %v161_v3  ;;  %v184_v22 = vmul.f32 0.015625, %v140_v6  ;;  %v1255_v3 = vld [vmem:[%s1397_s2] ss:$0 sm:$0xff] }
 0x12b   :  { %836 = vrcp.f32 %v367_v61 }
 0x12c   :  { %v207_v30 = vadd.f32 1e-05, %v191_v15  ;;  %v200_v32 = vadd.f32 1e-05, %v184_v22  ;;  %838 = vpow2.f32 %v680_v63  ;;  %v833_v63 = vpop.eup %832  ;;  %v688_v15 = vmul.f32 -1.442695, %v1250_v59 }
 0x12d   :  { %v164_v20 = vpop.xlane.xlu1 %163  ;;  %v143_v39 = vpop.xlane.xlu0 %142  ;;  %840 = vrcp.f32 %v361_v8 }
 0x12e   :  { %842 = vrsqrt.f32 %v207_v30  ;;  %v192_v43 = vmul.f32 0.015625, %v164_v20  ;;  %v185_v46 = vmul.f32 0.015625, %v143_v39  ;;  %v363_v20 = vadd.f32 1.0, %v829_v29 }
 0x12f   :  { %844 = vrsqrt.f32 %v200_v32 }
 0x130   :  { %v208_v51 = vadd.f32 1e-05, %v192_v43  ;;  %v201_v52 = vadd.f32 1e-05, %v185_v46  ;;  %846 = vpow2.f32 %v687_v33  ;;  %v1263_v43 = vld [vmem:[%s1398_s3] ss:$0 sm:$0xff]  ;;  %v413_v46 = vmul.f32 %v817_v26, %v1165_v5 }
 0x131   :  { %v167_v53 = vpop.xlane.xlu1 %166  ;;  %v146_v56 = vpop.xlane.xlu0 %145  ;;  %848 = vrcp.f32 %v368_v41  ;;  %s916_s3 = smov [#allocation2]  }
 0x132   :  { %850 = vrsqrt.f32 %v208_v51  ;;  %v193_v61 = vmul.f32 0.015625, %v167_v53  ;;  %v186_v62 = vmul.f32 0.015625, %v146_v56  ;;  %v1274_v53 = vmul.f32 %v827_v49, %v1183_v13  ;;  %s660_s21 = sshll.u32 %s916_s3, 4  ;;  %s661_s21 = int_to_ptr.vmem [resolvable:$true] %s660_s21 }
 0x133   :  { %852 = vrsqrt.f32 %v201_v52  ;;  %s892_s22 = scalar_lea.vmem %s661_s21, 2048  ;;  %p897_p1 = scmp.lt.s32.totalorder %s661_s21, %s661_s21 }
 0x134   :  { %v835_v6 = vpop.eup %834  ;;  %v209_v8 = vadd.f32 1e-05, %v193_v61  ;;  %v202_v14 = vadd.f32 1e-05, %v186_v62  ;;  %854 = vrcp.f32 %v362_v28  ;;  %v370_v62 = vadd.f32 1.0, %v831_v60  ;;  %p893_p0 = scmp.ne.s32.totalorder %s661_s21, %s892_s22  ;;  %p898_p2 = scmp.lt.s32.totalorder %s892_s22, %s892_s22 }
 0x135   :  { %v837_v22 = vpop.eup %836  ;;  %v170_v30 = vpop.xlane.xlu1 %169  ;;  %v231_v33 = vmul.f32 %v835_v6, %v1043_v36  ;;  %856 = vrcp.f32 %v369_v57 }
 0x136   :  { %v149_v32 = vpop.xlane.xlu0 %148  ;;  %v839_v39 = vpop.eup %838  ;;  %858 = vrsqrt.f32 %v209_v8  ;;  %v194_v41 = vmul.f32 0.015625, %v170_v30  ;;  %v1283_v8 = vmul.f32 %v833_v63, %v1190_v18  ;;  %v415_v30 = vmul.f32 %v837_v22, %v1195_v19  ;;  %p899_p3 = por %p898_p2, %p897_p1 }
 0x137   :  { %v187_v42 = vmul.f32 0.015625, %v149_v32  ;;  %v1266_v51 = vpop.eup %840  ;;  %860 = vrsqrt.f32 %v202_v14  ;;  %v254_v36 = vmul.f32 %v1255_v3, %v231_v33 }
 0x138   :  { %v843_v52 = vpop.eup %842  ;;  %v210_v28 = vadd.f32 1e-05, %v194_v41  ;;  %862 = vpow2.f32 %v688_v15  ;;  %v364_v41 = vadd.f32 1.0, %v839_v39  ;;  %p900_p4 = pnand %p899_p3, %p893_p0 }
 0x139   :  { %v203_v29 = vadd.f32 1e-05, %v187_v42  ;;  %v845_v56 = vpop.eup %844  ;;  %v173_v57 = vpop.xlane.xlu1 %172  ;;  %v277_v26 = vadd.f32 %v1263_v43, %v254_v36  ;;  %v239_v61 = vmul.f32 %v843_v52, %v1051_v44  ;;  %864 = vrcp.f32 %v363_v20 }
 0x13a   :  { %v152_v5 = vpop.xlane.xlu0 %151  ;;  %v847_v7 = vpop.eup %846  ;;  %v232_v12 = vmul.f32 %v845_v56, %v1045_v37  ;;  %866 = vrsqrt.f32 %v210_v28  ;;  %v195_v27 = vmul.f32 0.015625, %v173_v57 }
 0x13b   :  { %v188_v24 = vmul.f32 0.015625, %v152_v5  ;;  %v1279_v6 = vpop.eup %848  ;;  %868 = vrsqrt.f32 %v203_v29  ;;  %v421_v13 = vmul.f32 %v405_v34, %v277_v26  ;;  %v262_v49 = vmul.f32 %v1255_v3, %v239_v61 }
 0x13c   :  { %v851_v14 = vpop.eup %850  ;;  %v211_v15 = vadd.f32 1e-05, %v195_v27  ;;  %v255_v60 = vmul.f32 %v1255_v3, %v232_v12  ;;  %870 = vrcp.f32 %v370_v62  ;;  %v371_v57 = vadd.f32 1.0, %v847_v7 }
 0x13d   :  { %v204_v44 = vadd.f32 1e-05, %v188_v24  ;;  %v853_v37 = vpop.eup %852  ;;  %v240_v32 = vmul.f32 %v851_v14, %v1053_v45  ;;  %v176_v33 = vpop.xlane.xlu1 %175  ;;  %745 = vmatprep.mubr.msk.f32.mxu0 %vm37_vm0, %v421_v13  ;;  %v285_v34 = vadd.f32 %v1263_v43, %v262_v49 }
 0x13e   :  { %v155_v20 = vpop.xlane.xlu0 %154  ;;  %v1290_v18 = vpop.eup %854  ;;  %v233_v63 = vmul.f32 %v853_v37, %v1061_v54  ;;  %872 = vrsqrt.f32 %v211_v15  ;;  %v196_v42 = vmul.f32 0.015625, %v176_v33  ;;  %v278_v45 = vadd.f32 %v1263_v43, %v255_v60 }
 0x13f   :  { %v189_v36 = vmul.f32 0.015625, %v155_v20  ;;  %v1293_v52 = vpop.eup %856  ;;  %874 = vrsqrt.f32 %v204_v44  ;;  %v429_v19 = vmul.f32 %v413_v46, %v285_v34  ;;  %v263_v22 = vmul.f32 %v1255_v3, %v240_v32 }
 0x140   :  { %v859_v28 = vpop.eup %858  ;;  %v212_v29 = vadd.f32 1e-05, %v196_v42  ;;  %v256_v39 = vmul.f32 %v1255_v3, %v233_v63  ;;  %v422_v61 = vmul.f32 %v406_v4, %v278_v45  ;;  %876 = vrcp.f32 %v364_v41 }
 0x141   :  { %v205_v56 = vadd.f32 1e-05, %v189_v36  ;;  %v861_v5 = vpop.eup %860  ;;  %v241_v54 = vmul.f32 %v859_v28, %v1063_v55  ;;  %757 = vmatprep.mubr.msk.f32.mxu1 %vm37_vm0, %v429_v19  ;;  %v179_v26 = vpop.xlane.xlu1 %178  ;;  %v286_v46 = vadd.f32 %v1263_v43, %v263_v22  ;;  %v416_v19 = vmul.f32 %v1279_v6, %v1208_v31 }
 0x142   :  { %v158_v62 = vpop.xlane.xlu0 %157  ;;  %v863_v12 = vpop.eup %862  ;;  %v234_v27 = vmul.f32 %v861_v5, %v1072_v0  ;;  %878 = vrsqrt.f32 %v212_v29  ;;  %v197_v24 = vmul.f32 0.015625, %v179_v26  ;;  %746 = vmatmul.mubr.msk.f32.vlgmr.msra.gmra.mrb[0].mxu0 %vm37_vm0, %v422_v61  ;;  %v279_v7 = vadd.f32 %v1263_v43, %v256_v39 }
 0x143   :  { %v190_v13 = vmul.f32 0.015625, %v158_v62  ;;  %v1302_v49 = vpop.eup %864  ;;  %880 = vrsqrt.f32 %v205_v56  ;;  %v430_v55 = vmul.f32 %v1271_v2, %v286_v46  ;;  %v264_v4 = vmul.f32 %v1255_v3, %v241_v54 }
 0x144   :  { %v867_v14 = vpop.eup %866  ;;  %v213_v15 = vadd.f32 1e-05, %v197_v24  ;;  %v257_v60 = vmul.f32 %v1255_v3, %v234_v27  ;;  %882 = vrcp.f32 %v371_v57  ;;  %v423_v33 = vmul.f32 %v1274_v53, %v279_v7 }
 0x145   :  { %v206_v44 = vadd.f32 1e-05, %v190_v13  ;;  %v869_v0 = vpop.eup %868  ;;  %v242_v37 = vmul.f32 %v867_v14, %v1075_v1  ;;  %758 = vmatmul.mubr.msk.f32.vlgmr.msra.gmra.mrb[0].mxu1 %vm37_vm0, %v430_v55  ;;  %v182_v32 = vpop.xlane.xlu1 %181  ;;  %v287_v2 = vadd.f32 %v1263_v43, %v264_v4  ;;  %v372_v20 = vadd.f32 1.0, %v863_v12 }
 0x146   :  { %v235_v34 = vmul.f32 %v869_v0, %v1084_v10  ;;  %884 = vrsqrt.f32 %v213_v15  ;;  %v198_v41 = vmul.f32 0.015625, %v182_v32  ;;  %v280_v63 = vadd.f32 %v1263_v43, %v257_v60  ;;  %v871_v42 = vpop.eup %870  ;;  %748 = vmatprep.mubr.msk.f32.mxu0 %vm37_vm0, %v423_v33 }
 0x147   :  { %886 = vrsqrt.f32 %v206_v44  ;;  %v431_v36 = vmul.f32 %v415_v30, %v287_v2  ;;  %v265_v1 = vmul.f32 %v1255_v3, %v242_v37  ;;  %v409_v28 = vmul.f32 %v1266_v51, %v1201_v16 }
 0x148   :  { %v873_v53 = vpop.eup %872  ;;  %v214_v45 = vadd.f32 1e-05, %v198_v41  ;;  %v424_v22 = vmul.f32 %v1283_v8, %v280_v63  ;;  %v258_v10 = vmul.f32 %v1255_v3, %v235_v34  ;;  %888 = vrcp.f32 %v372_v20 }
 0x149   :  { %v875_v29 = vpop.eup %874  ;;  %v243_v56 = vmul.f32 %v873_v53, %v1087_v11  ;;  %760 = vmatprep.mubr.msk.f32.mxu1 %vm37_vm0, %v431_v36  ;;  %v288_v30 = vadd.f32 %v1263_v43, %v265_v1  ;;  %v417_v16 = vmul.f32 %v1293_v52, %v1219_v40  ;;  %v410_v54 = vmul.f32 %v1290_v18, %v1214_v38 }
 0x14a   :  { %v236_v39 = vmul.f32 %v875_v29, %v1096_v23  ;;  %890 = vrsqrt.f32 %v214_v45  ;;  %749 = vmatmul.mubr.msk.f32.gmra.mrb[2].mxu0 %vm37_vm0, %v424_v22  ;;  %v281_v31 = vadd.f32 %v1263_v43, %v258_v10  ;;  %v877_v6 = vpop.eup %876  ;;  %v418_v27 = vmul.f32 %v871_v42, %v1231_v50 }
 0x14b   :  { %v432_v8 = vmul.f32 %v416_v19, %v288_v30  ;;  %v266_v57 = vmul.f32 %v1255_v3, %v243_v56  ;;  %v411_v24 = vmul.f32 %v1302_v49, %v1226_v48  ;;  %v412_v60 = vmul.f32 %v877_v6, %v1238_v58 }
 0x14c   :  { %v879_v11 = vpop.eup %878  ;;  %v425_v51 = vmul.f32 %v409_v28, %v281_v31  ;;  %v259_v5 = vmul.f32 %v1255_v3, %v236_v39 }
 0x14d   :  { %v881_v23 = vpop.eup %880  ;;  %v244_v26 = vmul.f32 %v879_v11, %v1099_v17  ;;  %761 = vmatmul.mubr.msk.f32.gmra.mrb[2].mxu1 %vm37_vm0, %v432_v8  ;;  %v289_v61 = vadd.f32 %v1263_v43, %v266_v57 }
 0x14e   :  { %v883_v62 = vpop.eup %882  ;;  %v237_v46 = vmul.f32 %v881_v23, %v1108_v35  ;;  %751 = vmatprep.mubr.msk.f32.mxu0 %vm37_vm0, %v425_v51  ;;  %v282_v40 = vadd.f32 %v1263_v43, %v259_v5 }
 0x14f   :  { %v433_v52 = vmul.f32 %v417_v16, %v289_v61  ;;  %v267_v12 = vmul.f32 %v1255_v3, %v244_v26  ;;  %v419_v44 = vmul.f32 %v883_v62, %v1244_v9 }
 0x150   :  { %v885_v38 = vpop.eup %884  ;;  %v426_v18 = vmul.f32 %v410_v54, %v282_v40  ;;  %v260_v17 = vmul.f32 %v1255_v3, %v237_v46 }
 0x151   :  { %v887_v13 = vpop.eup %886  ;;  %v245_v55 = vmul.f32 %v885_v38, %v1111_v21  ;;  %763 = vmatprep.mubr.msk.f32.mxu1 %vm37_vm0, %v433_v52  ;;  %v290_v35 = vadd.f32 %v1263_v43, %v267_v12 }
 0x152   :  { %v238_v7 = vmul.f32 %v887_v13, %v1120_v47  ;;  %752 = vmatmul.mubr.msk.f32.gmra.mrb[4].mxu0 %vm37_vm0, %v426_v18  ;;  %v283_v50 = vadd.f32 %v1263_v43, %v260_v17  ;;  %v889_v4 = vpop.eup %888 }
 0x153   :  { %v434_v14 = vmul.f32 %v418_v27, %v290_v35  ;;  %v268_v15 = vmul.f32 %v1255_v3, %v245_v55  ;;  %v420_v9 = vmul.f32 %v889_v4, %v1250_v59 }
 0x154   :  { %v891_v48 = vpop.eup %890  ;;  %v427_v49 = vmul.f32 %v411_v24, %v283_v50  ;;  %v261_v21 = vmul.f32 %v1255_v3, %v238_v7 }
 0x155   :  { %v246_v0 = vmul.f32 %v891_v48, %v1123_v25  ;;  %764 = vmatmul.mubr.msk.f32.gmra.mrb[4].mxu1 %vm37_vm0, %v434_v14  ;;  %v291_v47 = vadd.f32 %v1263_v43, %v268_v15 }
 0x156   :  { %754 = vmatprep.mubr.msk.f32.mxu0 %vm37_vm0, %v427_v49  ;;  %v284_v37 = vadd.f32 %v1263_v43, %v261_v21 }
 0x157   :  { %v435_v32 = vmul.f32 %v419_v44, %v291_v47  ;;  %v269_v33 = vmul.f32 %v1255_v3, %v246_v0 }
 0x158   :  { %v428_v2 = vmul.f32 %v412_v60, %v284_v37 }
 0x159   :  { %766 = vmatprep.mubr.msk.f32.mxu1 %vm37_vm0, %v435_v32  ;;  %v292_v58 = vadd.f32 %v1263_v43, %v269_v33 }
 0x15a   :  { %755 = vmatmul.mubr.msk.f32.gmra.mrb[6].mxu0 %vm37_vm0, %v428_v2 }
 0x15b   :  { %v436_v25 = vmul.f32 %v420_v9, %v292_v58 }
 0x15d   :  { %767 = vmatmul.mubr.msk.f32.gmra.mrb[6].mxu1 %vm37_vm0, %v436_v25 }
 0x215   :  { %v747_v20 = vpop.f32.mrb[0].mxu0 }
 0x216   :  { %640 = vst.msk [vmem:[#allocation2 + $0x8] sm:$0xff] %vm638_vm1, %v747_v20  ;;  %v559_v34 = vpop.f32.mrb[1].mxu0 }
 0x217   :  { %639 = vst.msk [vmem:[#allocation2] sm:$0xff] %vm638_vm1, %v559_v34 }
 0x218   :  { %v759_v3 = vpop.f32.mrb[0].mxu1 }
 0x219   :  { %648 = vst.msk [vmem:[#allocation2 + $0x48] sm:$0xff] %vm638_vm1, %v759_v3  ;;  %v599_v59 = vpop.f32.mrb[1].mxu1 }
 0x21a   :  { %647 = vst.msk [vmem:[#allocation2 + $0x40] sm:$0xff] %vm638_vm1, %v599_v59 }
 0x21d   :  { %v750_v41 = vpop.f32.mrb[2].mxu0 }
 0x21e   :  { %642 = vst.msk [vmem:[#allocation2 + $0x18] sm:$0xff] %vm638_vm1, %v750_v41  ;;  %v569_v43 = vpop.f32.mrb[3].mxu0 }
 0x21f   :  { %641 = vst.msk [vmem:[#allocation2 + $0x10] sm:$0xff] %vm638_vm1, %v569_v43 }
 0x220   :  { %v762_v63 = vpop.f32.mrb[2].mxu1 }
 0x221   :  { %650 = vst.msk [vmem:[#allocation2 + $0x58] sm:$0xff] %vm638_vm1, %v762_v63  ;;  %v609_v42 = vpop.f32.mrb[3].mxu1 }
 0x222   :  { %649 = vst.msk [vmem:[#allocation2 + $0x50] sm:$0xff] %vm638_vm1, %v609_v42 }
 0x225   :  { %v753_v36 = vpop.f32.mrb[4].mxu0 }
 0x226   :  { %644 = vst.msk [vmem:[#allocation2 + $0x28] sm:$0xff] %vm638_vm1, %v753_v36  ;;  %v579_v1 = vpop.f32.mrb[5].mxu0 }
 0x227   :  { %643 = vst.msk [vmem:[#allocation2 + $0x20] sm:$0xff] %vm638_vm1, %v579_v1 }
 0x228   :  { %v765_v19 = vpop.f32.mrb[4].mxu1 }
 0x229   :  { %652 = vst.msk [vmem:[#allocation2 + $0x68] sm:$0xff] %vm638_vm1, %v765_v19  ;;  %v619_v53 = vpop.f32.mrb[5].mxu1 }
 0x22a   :  { %651 = vst.msk [vmem:[#allocation2 + $0x60] sm:$0xff] %vm638_vm1, %v619_v53 }
 0x22d   :  { %v756_v45 = vpop.f32.mrb[6].mxu0 }
 0x22e   :  { %646 = vst.msk [vmem:[#allocation2 + $0x38] sm:$0xff] %vm638_vm1, %v756_v45  ;;  %v589_v22 = vpop.f32.mrb[7].mxu0 }
 0x22f   :  { %645 = vst.msk [vmem:[#allocation2 + $0x30] sm:$0xff] %vm638_vm1, %v589_v22 }
 0x230   :  { %v768_v10 = vpop.f32.mrb[6].mxu1 }
 0x231   :  { %654 = vst.msk [vmem:[#allocation2 + $0x78] sm:$0xff] %vm638_vm1, %v768_v10  ;;  %v629_v28 = vpop.f32.mrb[7].mxu1 }
 0x232   :  { %653 = vst.msk [vmem:[#allocation2 + $0x70] sm:$0xff] %vm638_vm1, %v629_v28 }
 0x233   :  { %903 = shalt.err (!%p900_p4)
}
 0x234   :  { %s904_s0 = scalar_lea.hbm %s1400_s5, 2048 }
 0x235   :  { %p905_p5 = scmp.ne.s32.totalorder %s1400_s5, %s904_s0  ;;  %p908_p6 = scmp.lt.u32.totalorder %s904_s0, %s1400_s5 }
 0x237   :  { %p910_p7 = pnand %p908_p6, %p905_p5 }
 0x239   :  { %913 = shalt.err (!%p910_p7)
}
 0x23a   :  { %s917_s29 = smov 128   ;;  %s918_s30 = smov 8  }
 0x23b   :  { %666 = dma.vmem_to_hbm [thread:$0]  %s661_s21, 2048, %s1400_s5, [#allocation3], %s917_s29, %s917_s29, %s918_s30  }
 0x23c   :  { %914 = dma.done.wait [#allocation3], 2048  }
 0x23d   :  { %915 = vsyncadd [#allocation3], 4294965248 }
 0x23e   :  { %670 = vsyncpa [#allocation3], 1 }

</bundles_post_ra>
